<compile_context>
chip_gen: v7x
topology: tpu7x:2x2x1
jax: 0.10.0
libtpu: 0.0.40
codegen_flags: <defaults>
</compile_context>

<pallas_src>
import functools

import jax
import jax.numpy as jnp
from jax.experimental import pallas as pl
from jax.experimental.pallas import tpu as pltpu


# ---------------------------------------------------------------------------
# Hardware-dependent knobs (queried once; conservative fallbacks if unavailable).
# ---------------------------------------------------------------------------
@functools.lru_cache(maxsize=None)
def _vmem_info():
    try:
        cap = int(pltpu.get_tpu_info().vmem_capacity_bytes)
    except Exception:
        cap = 64 * 1024 * 1024            # assume the smallest (v7x) if query fails
    limit = min(cap // 2, 96 * 1024 * 1024)
    return cap, limit


def _mosaic(dimension_semantics):
    _, limit = _vmem_info()
    return pltpu.CompilerParams(
        dimension_semantics=dimension_semantics,
        vmem_limit_bytes=limit,
    )


def _pick_tile(dim, pref, align):
    """Largest `align`-aligned tile <= pref that divides dim; else the full dim."""
    if dim <= pref:
        return dim
    t = pref - (pref % align)
    while t >= align:
        if dim % t == 0:
            return t
        t -= align
    # TODO(synk): pad + mask edge tiles for pathological (e.g. prime) N instead of the
    # full-dimension fallback, which can exceed VMEM for very large graphs.
    return dim


def _pick_chunk(seq, cap=16):
    """Timesteps per recurrence grid step: bounded unroll, (8,128)-friendly block shapes."""
    if seq <= cap:
        return seq
    for d in range(cap - cap % 8, 7, -8):     # multiples of 8 dividing seq
        if seq % d == 0:
            return d
    # TODO(synk): pad the node axis to a multiple of 8 when no such divisor exists.
    return seq


# ----------------------------------------------------------------------------
# Kernel 1: fused GCN aggregation + LSTM input projection.
#   gates_x_t = ReLU( Â_t @ (X_t @ W) + b_gcn ) @ W_ihᵀ + (b_ih + b_hh)
#   The XW K-panel is recomputed per k-step (F is tiny) instead of round-tripping HBM.
# ----------------------------------------------------------------------------
def _gcn_gates_kernel(a_ref, x_ref, w_ref, bg_ref, wih_ref, bl_ref, o_ref, acc_ref):
    k = pl.program_id(2)

    @pl.when(k == 0)
    def _():
        acc_ref[...] = jnp.zeros_like(acc_ref)

    # Prologue: XW panel on the fly — (tk, F) x (F, H), bf16 MXU operands, f32 accumulate.
    xw = jnp.dot(x_ref[0], w_ref[...],
                 preferred_element_type=jnp.float32).astype(jnp.bfloat16)       # (tk, H)
    # Aggregation: (tm, tk) x (tk, H) with f32 accumulator scratch.
    acc_ref[...] += jnp.dot(a_ref[0], xw, preferred_element_type=jnp.float32)

    @pl.when(k == pl.num_programs(2) - 1)
    def _():
        # Bias + ReLU stay in f32 on the VPU.
        g = jnp.maximum(acc_ref[...] + bg_ref[...], 0.0)                        # (tm, H)
        # Fused LSTM input projection: lane-dense (tm, 4H) output block.
        gates_x = jnp.dot(g.astype(jnp.bfloat16), wih_ref[...],
                          preferred_element_type=jnp.float32) + bl_ref[...]
        o_ref[0] = gates_x.astype(o_ref.dtype)


def gcn_gates(a_hat_bf16, x_bf16, gcn_w_bf16, gcn_b, w_ih_t_bf16, lstm_b):
    T, N, _ = a_hat_bf16.shape
    F = x_bf16.shape[-1]
    H = gcn_w_bf16.shape[-1]
    G = w_ih_t_bf16.shape[-1]                       # 4H
    cap, _ = _vmem_info()
    tm_pref = 512 if cap >= 128 * 1024 * 1024 else 256
    tm = _pick_tile(N, tm_pref, 8)                  # sublane-aligned row tile
    tk = _pick_tile(N, 512, 128)                    # lane-aligned K tile of Â
    return pl.pallas_call(
        _gcn_gates_kernel,
        out_shape=jax.ShapeDtypeStruct((T, N, G), jnp.float32),
        grid_spec=pltpu.PrefetchScalarGridSpec(
            num_scalar_prefetch=0,
            grid=(T, N // tm, N // tk),
            in_specs=[
                pl.BlockSpec((1, tm, tk), lambda t, i, k: (t, i, k)),   # Â row panel
                pl.BlockSpec((1, tk, F), lambda t, i, k: (t, k, 0)),    # X K-panel
                pl.BlockSpec((F, H), lambda t, i, k: (0, 0)),           # W (resident)
                pl.BlockSpec((1, H), lambda t, i, k: (0, 0)),           # GCN bias (resident)
                pl.BlockSpec((H, G), lambda t, i, k: (0, 0)),           # W_ihᵀ (resident)
                pl.BlockSpec((1, G), lambda t, i, k: (0, 0)),           # fused LSTM bias
            ],
            out_specs=pl.BlockSpec((1, tm, G), lambda t, i, k: (t, i, 0)),
            scratch_shapes=[pltpu.VMEM((tm, H), jnp.float32)],          # f32 accumulator
        ),
        compiler_params=_mosaic(("parallel", "parallel", "arbitrary")),
        cost_estimate=pl.CostEstimate(
            flops=(2 * T * N * N * H
                   + 2 * T * (N // tm) * N * F * H
                   + 2 * T * N * H * G),
            transcendentals=0,
            bytes_accessed=(2 * T * N * N + 2 * T * (N // tm) * N * F
                            + 4 * T * N * G + 2 * F * H + 2 * H * G)),
    )(a_hat_bf16, x_bf16, gcn_w_bf16, gcn_b, w_ih_t_bf16, lstm_b)


# ----------------------------------------------------------------------------
# Kernel 2: LSTM recurrence over the node/sequence axis, batch-major, no transposes.
#   Input is the precomputed gate pre-activation gates_x (T, N, 4H); per step only
#   h @ W_hhᵀ is computed.  h/c carried in VMEM scratch.  Leading grid axis splits the
#   independent per-snapshot recurrences across TensorCores (v7x megacore).
# ----------------------------------------------------------------------------
def _lstm_kernel(gx_ref, whh_ref, o_ref, h_sc, c_sc, *, hidden, chunk):
    @pl.when(pl.program_id(1) == 0)
    def _():
        h_sc[...] = jnp.zeros_like(h_sc)
        c_sc[...] = jnp.zeros_like(c_sc)

    Hd = hidden
    # Bounded static unroll (chunk <= 16): static trip count + static indexing.
    for j in range(chunk):
        gates = gx_ref[:, j, :] + jnp.dot(h_sc[...].astype(jnp.bfloat16), whh_ref[...],
                                          preferred_element_type=jnp.float32)   # (B, 4H) f32
        i = jax.nn.sigmoid(gates[:, 0 * Hd:1 * Hd])
        f = jax.nn.sigmoid(gates[:, 1 * Hd:2 * Hd])
        g = jnp.tanh(gates[:, 2 * Hd:3 * Hd])
        o = jax.nn.sigmoid(gates[:, 3 * Hd:4 * Hd])
        c = f * c_sc[...] + i * g
        h = o * jnp.tanh(c)
        c_sc[...] = c
        h_sc[...] = h
        o_ref[:, j, :] = h.astype(o_ref.dtype)


def lstm_recurrence(gates_x, w_hh_t_bf16):
    # gates_x: (T, S, 4H) f32, batch-major (batch = T snapshots, sequence = S nodes).
    T, S, G = gates_x.shape
    H = w_hh_t_bf16.shape[0]
    # Split the batch across the two TensorCores when it divides evenly (v7x win,
    # neutral on single-core v5e/v6e since axis 0 is just the outer loop there).
    P = 2 if (T % 2 == 0 and T >= 2) else 1
    B = T // P
    chunk = _pick_chunk(S, cap=16)
    kernel = functools.partial(_lstm_kernel, hidden=H, chunk=chunk)
    return pl.pallas_call(
        kernel,
        out_shape=jax.ShapeDtypeStruct((T, S, H), jnp.float32),
        grid_spec=pltpu.PrefetchScalarGridSpec(
            num_scalar_prefetch=0,
            grid=(P, S // chunk),
            in_specs=[
                pl.BlockSpec((B, chunk, G), lambda p, s: (p, s, 0)),
                pl.BlockSpec((H, G), lambda p, s: (0, 0)),
            ],
            out_specs=pl.BlockSpec((B, chunk, H), lambda p, s: (p, s, 0)),
            scratch_shapes=[
                pltpu.VMEM((B, H), jnp.float32),   # h_t
                pltpu.VMEM((B, H), jnp.float32),   # c_t
            ],
        ),
        compiler_params=_mosaic(("parallel", "arbitrary")),
        cost_estimate=pl.CostEstimate(
            flops=2 * T * S * H * G,
            transcendentals=5 * T * S * H,
            bytes_accessed=4 * T * S * G + 4 * T * S * H + 2 * H * G),
    )(gates_x, w_hh_t_bf16)


# ----------------------------------------------------------------------------
# Glue: Â = D̂^{-1/2}(A + I)D̂^{-1/2} from edge_index (2, E); scatter-add so that
# duplicate edges are counted like torch_geometric's scatter.
# ----------------------------------------------------------------------------
def normalized_adjacency(edge_index, num_nodes):
    src, dst = edge_index[0], edge_index[1]
    a = jnp.zeros((num_nodes, num_nodes), jnp.float32)
    a = a.at[dst, src].add(1.0)                       # A[i, j] += 1 for edge j -> i
    a = a + jnp.eye(num_nodes, dtype=jnp.float32)     # self loops
    deg = a.sum(axis=1)
    d_inv_sqrt = jnp.where(deg > 0, 1.0 / jnp.sqrt(deg), 0.0)
    return d_inv_sqrt[:, None] * a * d_inv_sqrt[None, :]


def prepare_params(params):
    """One-time parameter layout prep (transposes / bias fuse hoisted out of the forward)."""
    H = params["lstm_w_hh"].shape[1]
    return {
        "gcn_w": params["gcn_w"].astype(jnp.bfloat16),                       # (F, H)
        "gcn_b": params["gcn_b"].reshape(1, H).astype(jnp.float32),          # (1, H)
        "w_ih_t": jnp.transpose(params["lstm_w_ih"]).astype(jnp.bfloat16),   # (H, 4H)
        "w_hh_t": jnp.transpose(params["lstm_w_hh"]).astype(jnp.bfloat16),   # (H, 4H)
        "lstm_b": (params["lstm_b_ih"] + params["lstm_b_hh"])
                  .reshape(1, 4 * H).astype(jnp.float32),                    # (1, 4H)
    }


# ----------------------------------------------------------------------------
# Full WD_GCN forward.
# ----------------------------------------------------------------------------
@jax.jit
def wd_gcn_forward(x, a_hat, prepped):
    T = x.shape[0]
    gates_x = gcn_gates(a_hat.astype(jnp.bfloat16), x.astype(jnp.bfloat16),
                        prepped["gcn_w"], prepped["gcn_b"],
                        prepped["w_ih_t"], prepped["lstm_b"])      # (T, N, 4H) f32
    lstm_out = lstm_recurrence(gates_x, prepped["w_hh_t"])          # (T, N, H) f32
    # PyTorch .squeeze(0): for T == 1 the LSTM sees an unbatched (N, H) sequence -> (N, H) out.
    return lstm_out[0] if T == 1 else lstm_out


# ----------------------------------------------------------------------------
# Pure-JAX f32 reference (for tolerance check only).
# ----------------------------------------------------------------------------
def reference_forward(x, a_hat, params):
    xw = jnp.einsum("tnf,fh->tnh", x, params["gcn_w"])
    gcn = jax.nn.relu(jnp.einsum("tnm,tmh->tnh", a_hat, xw) + params["gcn_b"])
    w_ih, w_hh = params["lstm_w_ih"], params["lstm_w_hh"]
    b = params["lstm_b_ih"] + params["lstm_b_hh"]
    T, N, H = gcn.shape

    def step(carry, g_t):
        h, c = carry
        gates = g_t @ w_ih.T + h @ w_hh.T + b
        i = jax.nn.sigmoid(gates[:, :H])
        f = jax.nn.sigmoid(gates[:, H:2 * H])
        g = jnp.tanh(gates[:, 2 * H:3 * H])
        o = jax.nn.sigmoid(gates[:, 3 * H:])
        c = f * c + i * g
        h = o * jnp.tanh(c)
        return (h, c), h

    init = (jnp.zeros((T, H), jnp.float32), jnp.zeros((T, H), jnp.float32))
    _, hs = jax.lax.scan(step, init, jnp.swapaxes(gcn, 0, 1))    # seq over the node axis
    out = jnp.swapaxes(hs, 0, 1)                                 # (T, N, H)
    return out[0] if T == 1 else out


if __name__ == "__main__":
    # Small deterministic config.
    T = 2           # number of graph snapshots in data_list
    N = 16          # nodes per snapshot (max_nodes)
    F_IN = 8        # input_dim
    H = 32          # hidden_dim

    key = jax.random.PRNGKey(0)
    k_x, k_gw, k_gb, k_wih, k_whh, k_bih, k_bhh = jax.random.split(key, 7)

    # Node features per snapshot.
    x = jax.random.normal(k_x, (T, N, F_IN), jnp.float32)

    # Deterministic edge_index per snapshot (a ring plus shifted ring), made undirected.
    a_hats = []
    for t in range(T):
        src = jnp.arange(N, dtype=jnp.int32)
        dst = (src + 1 + t) % N
        src_full = jnp.concatenate([src, dst])
        dst_full = jnp.concatenate([dst, src])
        edge_index = jnp.stack([src_full, dst_full])   # (2, 2N)
        a_hats.append(normalized_adjacency(edge_index, N))
    a_hat = jnp.stack(a_hats)                          # (T, N, N)

    params = {
        "gcn_w":     0.1 * jax.random.normal(k_gw,  (F_IN, H),   jnp.float32),
        "gcn_b":     0.1 * jax.random.normal(k_gb,  (H,),        jnp.float32),
        "lstm_w_ih": 0.1 * jax.random.normal(k_wih, (4 * H, H),  jnp.float32),
        "lstm_w_hh": 0.1 * jax.random.normal(k_whh, (4 * H, H),  jnp.float32),
        "lstm_b_ih": 0.1 * jax.random.normal(k_bih, (4 * H,),    jnp.float32),
        "lstm_b_hh": 0.1 * jax.random.normal(k_bhh, (4 * H,),    jnp.float32),
    }
    prepped = prepare_params(params)

    out = wd_gcn_forward(x, a_hat, prepped)
    out = jax.block_until_ready(out)
    assert out.shape == (T, N, H), out.shape
    assert bool(jnp.all(jnp.isfinite(out)))

    # Tolerance check vs pure-JAX f32 reference (bf16 MXU operands -> loose bound).
    ref = jax.block_until_ready(reference_forward(x, a_hat, params))
    max_err = float(jnp.max(jnp.abs(out - ref)))
    assert max_err < 3e-2, f"max abs error vs reference: {max_err}"

    # TODO(synk): dropout is identity (eval mode); training-mode masks would need pltpu.prng_*
    # inside the aggregation kernel's epilogue.  The scorer/decode path is not exercised by
    # forward() and is therefore not implemented here.
    print("KERNEL_OK")
</pallas_src>

<mosaic_0001>
module attributes {stable_mosaic.version = 11 : i64} {
  func.func @_gcn_gates_kernel(%arg0: i32, %arg1: i32, %arg2: i32, %arg3: memref<1x16x16xbf16, #tpu.memory_space<vmem>>, %arg4: memref<1x16x8xbf16, #tpu.memory_space<vmem>>, %arg5: memref<8x32xbf16, #tpu.memory_space<vmem>>, %arg6: memref<1x32xf32, #tpu.memory_space<vmem>>, %arg7: memref<32x128xbf16, #tpu.memory_space<vmem>>, %arg8: memref<1x128xf32, #tpu.memory_space<vmem>>, %arg9: memref<1x16x128xf32, #tpu.memory_space<vmem>>, %arg10: memref<16x32xf32, #tpu.memory_space<vmem>>) attributes {dimension_semantics = [#tpu.dimension_semantics<parallel>, #tpu.dimension_semantics<parallel>, #tpu.dimension_semantics<arbitrary>], iteration_bounds = array<i64: 2, 1, 1>, scalar_prefetch = 0 : i64, scratch_operands = 1 : i64, tpu.core_type = #tpu.core_type<tc>, window_params = [{transform_indices = @transform_0, window_bounds = array<i64: 1, 16, 16>}, {transform_indices = @transform_1, window_bounds = array<i64: 1, 16, 8>}, {pipeline_mode = #tpu.pipeline_mode<synchronous>, transform_indices = @transform_2, window_bounds = array<i64: 8, 32>}, {pipeline_mode = #tpu.pipeline_mode<synchronous>, transform_indices = @transform_3, window_bounds = array<i64: 1, 32>}, {pipeline_mode = #tpu.pipeline_mode<synchronous>, transform_indices = @transform_4, window_bounds = array<i64: 32, 128>}, {pipeline_mode = #tpu.pipeline_mode<synchronous>, transform_indices = @transform_5, window_bounds = array<i64: 1, 128>}, {transform_indices = @transform_6, window_bounds = array<i64: 1, 16, 128>}]} {
    %c0_i32 = arith.constant 0 : i32
    %0 = arith.cmpi eq, %arg2, %c0_i32 : i32
    %1 = arith.extui %0 : i1 to i32
    %c0_i32_0 = arith.constant 0 : i32
    %2 = arith.cmpi ne, %1, %c0_i32_0 : i32
    scf.if %2 {
      %cst_15 = arith.constant 0.000000e+00 : f32
      %17 = vector.broadcast %cst_15 : f32 to vector<16x32xf32>
      %c0_16 = arith.constant 0 : index
      %c0_17 = arith.constant 0 : index
      %18 = vector.load %arg10[%c0_16, %c0_17] : memref<16x32xf32, #tpu.memory_space<vmem>>, vector<16x32xf32>
      tpu.vector_store %arg10[%c0_16, %c0_17], %17 {strides = array<i32>} : memref<16x32xf32, #tpu.memory_space<vmem>>, vector<16x32xf32>,
    } else {
    }
    %c0 = arith.constant 0 : index
    %c0_1 = arith.constant 0 : index
    %c0_2 = arith.constant 0 : index
    %3 = vector.load %arg4[%c0, %c0_1, %c0_2] : memref<1x16x8xbf16, #tpu.memory_space<vmem>>, vector<1x16x8xbf16>
    %4 = vector.shape_cast %3 : vector<1x16x8xbf16> to vector<16x8xbf16>
    %c0_3 = arith.constant 0 : index
    %c0_4 = arith.constant 0 : index
    %5 = vector.load %arg5[%c0_3, %c0_4] : memref<8x32xbf16, #tpu.memory_space<vmem>>, vector<8x32xbf16>
    %cst = arith.constant dense<0.000000e+00> : vector<16x32xf32>
    %6 = tpu.matmul %4, %5, %cst {dimension_numbers = #tpu.dot_dimension_numbers<[1], [0], [0], [1], [0, 0, 1, 1], [], []>} : vector<16x8xbf16>, vector<8x32xbf16>, vector<16x32xf32> -> vector<16x32xf32>
    %7 = arith.truncf %6 : vector<16x32xf32> to vector<16x32xbf16>
    %c0_5 = arith.constant 0 : index
    %c0_6 = arith.constant 0 : index
    %8 = vector.load %arg10[%c0_5, %c0_6] : memref<16x32xf32, #tpu.memory_space<vmem>>, vector<16x32xf32>
    %c0_7 = arith.constant 0 : index
    %c0_8 = arith.constant 0 : index
    %c0_9 = arith.constant 0 : index
    %9 = vector.load %arg3[%c0_7, %c0_8, %c0_9] : memref<1x16x16xbf16, #tpu.memory_space<vmem>>, vector<1x16x16xbf16>
    %10 = vector.shape_cast %9 : vector<1x16x16xbf16> to vector<16x16xbf16>
    %cst_10 = arith.constant dense<0.000000e+00> : vector<16x32xf32>
    %11 = tpu.matmul %10, %7, %cst_10 {dimension_numbers = #tpu.dot_dimension_numbers<[1], [0], [0], [1], [0, 0, 1, 1], [], []>} : vector<16x16xbf16>, vector<16x32xbf16>, vector<16x32xf32> -> vector<16x32xf32>
    %12 = arith.addf %8, %11 : vector<16x32xf32>
    %c0_11 = arith.constant 0 : index
    %c0_12 = arith.constant 0 : index
    %13 = vector.load %arg10[%c0_11, %c0_12] : memref<16x32xf32, #tpu.memory_space<vmem>>, vector<16x32xf32>
    tpu.vector_store %arg10[%c0_11, %c0_12], %12 {strides = array<i32>} : memref<16x32xf32, #tpu.memory_space<vmem>>, vector<16x32xf32>,
    %c0_i32_13 = arith.constant 0 : i32
    %14 = arith.cmpi eq, %arg2, %c0_i32_13 : i32
    %15 = arith.extui %14 : i1 to i32
    %c0_i32_14 = arith.constant 0 : i32
    %16 = arith.cmpi ne, %15, %c0_i32_14 : i32
    scf.if %16 {
      %c0_15 = arith.constant 0 : index
      %c0_16 = arith.constant 0 : index
      %17 = vector.load %arg10[%c0_15, %c0_16] : memref<16x32xf32, #tpu.memory_space<vmem>>, vector<16x32xf32>
      %c0_17 = arith.constant 0 : index
      %c0_18 = arith.constant 0 : index
      %18 = vector.load %arg6[%c0_17, %c0_18] : memref<1x32xf32, #tpu.memory_space<vmem>>, vector<1x32xf32>
      %19 = vector.broadcast %18 : vector<1x32xf32> to vector<16x32xf32>
      %20 = arith.addf %17, %19 : vector<16x32xf32>
      %cst_19 = arith.constant 0.000000e+00 : f32
      %21 = vector.broadcast %cst_19 : f32 to vector<16x32xf32>
      %22 = arith.maximumf %20, %21 : vector<16x32xf32>
      %23 = arith.truncf %22 : vector<16x32xf32> to vector<16x32xbf16>
      %c0_20 = arith.constant 0 : index
      %c0_21 = arith.constant 0 : index
      %24 = vector.load %arg7[%c0_20, %c0_21] : memref<32x128xbf16, #tpu.memory_space<vmem>>, vector<32x128xbf16>
      %cst_22 = arith.constant dense<0.000000e+00> : vector<16x128xf32>
      %25 = tpu.matmul %23, %24, %cst_22 {dimension_numbers = #tpu.dot_dimension_numbers<[1], [0], [0], [1], [0, 0, 1, 1], [], []>} : vector<16x32xbf16>, vector<32x128xbf16>, vector<16x128xf32> -> vector<16x128xf32>
      %c0_23 = arith.constant 0 : index
      %c0_24 = arith.constant 0 : index
      %26 = vector.load %arg8[%c0_23, %c0_24] : memref<1x128xf32, #tpu.memory_space<vmem>>, vector<1x128xf32>
      %27 = vector.broadcast %26 : vector<1x128xf32> to vector<16x128xf32>
      %28 = arith.addf %25, %27 : vector<16x128xf32>
      %c0_25 = arith.constant 0 : index
      %c0_26 = arith.constant 0 : index
      %c0_27 = arith.constant 0 : index
      %29 = vector.load %arg9[%c0_25, %c0_26, %c0_27] : memref<1x16x128xf32, #tpu.memory_space<vmem>>, vector<1x16x128xf32>
      %30 = vector.shape_cast %29 : vector<1x16x128xf32> to vector<16x128xf32>
      %31 = vector.shape_cast %28 : vector<16x128xf32> to vector<1x16x128xf32>
      tpu.vector_store %arg9[%c0_25, %c0_26, %c0_27], %31 {strides = array<i32>} : memref<1x16x128xf32, #tpu.memory_space<vmem>>, vector<1x16x128xf32>,
    } else {
    }
    return
  }
  func.func @transform_0(%arg0: i32, %arg1: i32, %arg2: i32) -> (i32, i32, i32) {
    %c0_i32 = arith.constant 0 : i32
    return %arg0, %arg1, %arg2 : i32, i32, i32
  }
  func.func @transform_1(%arg0: i32, %arg1: i32, %arg2: i32) -> (i32, i32, i32) {
    %c0_i32 = arith.constant 0 : i32
    %c0_i32_0 = arith.constant 0 : i32
    return %arg0, %arg2, %c0_i32 : i32, i32, i32
  }
  func.func @transform_2(%arg0: i32, %arg1: i32, %arg2: i32) -> (i32, i32) {
    %c0_i32 = arith.constant 0 : i32
    %c0_i32_0 = arith.constant 0 : i32
    %c0_i32_1 = arith.constant 0 : i32
    return %c0_i32, %c0_i32_0 : i32, i32
  }
  func.func @transform_3(%arg0: i32, %arg1: i32, %arg2: i32) -> (i32, i32) {
    %c0_i32 = arith.constant 0 : i32
    %c0_i32_0 = arith.constant 0 : i32
    %c0_i32_1 = arith.constant 0 : i32
    return %c0_i32, %c0_i32_0 : i32, i32
  }
  func.func @transform_4(%arg0: i32, %arg1: i32, %arg2: i32) -> (i32, i32) {
    %c0_i32 = arith.constant 0 : i32
    %c0_i32_0 = arith.constant 0 : i32
    %c0_i32_1 = arith.constant 0 : i32
    return %c0_i32, %c0_i32_0 : i32, i32
  }
  func.func @transform_5(%arg0: i32, %arg1: i32, %arg2: i32) -> (i32, i32) {
    %c0_i32 = arith.constant 0 : i32
    %c0_i32_0 = arith.constant 0 : i32
    %c0_i32_1 = arith.constant 0 : i32
    return %c0_i32, %c0_i32_0 : i32, i32
  }
  func.func @transform_6(%arg0: i32, %arg1: i32, %arg2: i32) -> (i32, i32, i32) {
    %c0_i32 = arith.constant 0 : i32
    %c0_i32_0 = arith.constant 0 : i32
    return %arg0, %arg1, %c0_i32 : i32, i32, i32
  }
}

module attributes {stable_mosaic.version = 11 : i64} {
  func.func @_lstm_kernel(%arg0: i32, %arg1: i32, %arg2: memref<1x16x128xf32, #tpu.memory_space<vmem>>, %arg3: memref<32x128xbf16, #tpu.memory_space<vmem>>, %arg4: memref<1x16x32xf32, #tpu.memory_space<vmem>>, %arg5: memref<1x32xf32, #tpu.memory_space<vmem>>, %arg6: memref<1x32xf32, #tpu.memory_space<vmem>>) attributes {dimension_semantics = [#tpu.dimension_semantics<parallel>, #tpu.dimension_semantics<arbitrary>], iteration_bounds = array<i64: 2, 1>, scalar_prefetch = 0 : i64, scratch_operands = 2 : i64, tpu.core_type = #tpu.core_type<tc>, window_params = [{transform_indices = @transform_0, window_bounds = array<i64: 1, 16, 128>}, {pipeline_mode = #tpu.pipeline_mode<synchronous>, transform_indices = @transform_1, window_bounds = array<i64: 32, 128>}, {transform_indices = @transform_2, window_bounds = array<i64: 1, 16, 32>}]} {
    %c0_i32 = arith.constant 0 : i32
    %0 = arith.cmpi eq, %arg1, %c0_i32 : i32
    %1 = arith.extui %0 : i1 to i32
    %c0_i32_0 = arith.constant 0 : i32
    %2 = arith.cmpi ne, %1, %c0_i32_0 : i32
    scf.if %2 {
      %cst_304 = arith.constant 0.000000e+00 : f32
      %611 = vector.broadcast %cst_304 : f32 to vector<1x32xf32>
      %c0_305 = arith.constant 0 : index
      %c0_306 = arith.constant 0 : index
      %612 = vector.load %arg5[%c0_305, %c0_306] : memref<1x32xf32, #tpu.memory_space<vmem>>, vector<1x32xf32>
      tpu.vector_store %arg5[%c0_305, %c0_306], %611 {strides = array<i32>} : memref<1x32xf32, #tpu.memory_space<vmem>>, vector<1x32xf32>,
      %cst_307 = arith.constant 0.000000e+00 : f32
      %613 = vector.broadcast %cst_307 : f32 to vector<1x32xf32>
      %c0_308 = arith.constant 0 : index
      %c0_309 = arith.constant 0 : index
      %614 = vector.load %arg6[%c0_308, %c0_309] : memref<1x32xf32, #tpu.memory_space<vmem>>, vector<1x32xf32>
      tpu.vector_store %arg6[%c0_308, %c0_309], %613 {strides = array<i32>} : memref<1x32xf32, #tpu.memory_space<vmem>>, vector<1x32xf32>,
    } else {
    }
    %c0 = arith.constant 0 : index
    %c0_1 = arith.constant 0 : index
    %c0_2 = arith.constant 0 : index
    %3 = vector.load %arg2[%c0, %c0_1, %c0_2] : memref<1x16x128xf32, #tpu.memory_space<vmem>>, vector<1x1x128xf32>
    %4 = vector.shape_cast %3 : vector<1x1x128xf32> to vector<1x128xf32>
    %c0_3 = arith.constant 0 : index
    %c0_4 = arith.constant 0 : index
    %5 = vector.load %arg5[%c0_3, %c0_4] : memref<1x32xf32, #tpu.memory_space<vmem>>, vector<1x32xf32>
    %6 = arith.truncf %5 : vector<1x32xf32> to vector<1x32xbf16>
    %c0_5 = arith.constant 0 : index
    %c0_6 = arith.constant 0 : index
    %7 = vector.load %arg3[%c0_5, %c0_6] : memref<32x128xbf16, #tpu.memory_space<vmem>>, vector<32x128xbf16>
    %cst = arith.constant dense<0.000000e+00> : vector<1x128xf32>
    %8 = tpu.matmul %6, %7, %cst {dimension_numbers = #tpu.dot_dimension_numbers<[1], [0], [0], [1], [0, 0, 1, 1], [], []>} : vector<1x32xbf16>, vector<32x128xbf16>, vector<1x128xf32> -> vector<1x128xf32>
    %9 = arith.addf %4, %8 : vector<1x128xf32>
    %10 = vector.extract_strided_slice %9 {offsets = [0, 0], sizes = [1, 32], strides = [1, 1]} : vector<1x128xf32> to vector<1x32xf32>
    %11 = arith.negf %10 : vector<1x32xf32>
    %12 = math.exp %11 : vector<1x32xf32>
    %cst_7 = arith.constant 1.000000e+00 : f32
    %13 = vector.broadcast %cst_7 : f32 to vector<1x32xf32>
    %14 = arith.addf %13, %12 : vector<1x32xf32>
    %15 = arith.divf %13, %14 : vector<1x32xf32>
    %16 = vector.extract_strided_slice %9 {offsets = [0, 32], sizes = [1, 32], strides = [1, 1]} : vector<1x128xf32> to vector<1x32xf32>
    %17 = arith.negf %16 : vector<1x32xf32>
    %18 = math.exp %17 : vector<1x32xf32>
    %cst_8 = arith.constant 1.000000e+00 : f32
    %19 = vector.broadcast %cst_8 : f32 to vector<1x32xf32>
    %20 = arith.addf %19, %18 : vector<1x32xf32>
    %21 = arith.divf %19, %20 : vector<1x32xf32>
    %22 = vector.extract_strided_slice %9 {offsets = [0, 64], sizes = [1, 32], strides = [1, 1]} : vector<1x128xf32> to vector<1x32xf32>
    %23 = math.tanh %22 : vector<1x32xf32>
    %24 = vector.extract_strided_slice %9 {offsets = [0, 96], sizes = [1, 32], strides = [1, 1]} : vector<1x128xf32> to vector<1x32xf32>
    %25 = arith.negf %24 : vector<1x32xf32>
    %26 = math.exp %25 : vector<1x32xf32>
    %cst_9 = arith.constant 1.000000e+00 : f32
    %27 = vector.broadcast %cst_9 : f32 to vector<1x32xf32>
    %28 = arith.addf %27, %26 : vector<1x32xf32>
    %29 = arith.divf %27, %28 : vector<1x32xf32>
    %c0_10 = arith.constant 0 : index
    %c0_11 = arith.constant 0 : index
    %30 = vector.load %arg6[%c0_10, %c0_11] : memref<1x32xf32, #tpu.memory_space<vmem>>, vector<1x32xf32>
    %31 = arith.mulf %21, %30 : vector<1x32xf32>
    %32 = arith.mulf %15, %23 : vector<1x32xf32>
    %33 = arith.addf %31, %32 : vector<1x32xf32>
    %34 = math.tanh %33 : vector<1x32xf32>
    %35 = arith.mulf %29, %34 : vector<1x32xf32>
    %c0_12 = arith.constant 0 : index
    %c0_13 = arith.constant 0 : index
    %36 = vector.load %arg6[%c0_12, %c0_13] : memref<1x32xf32, #tpu.memory_space<vmem>>, vector<1x32xf32>
    tpu.vector_store %arg6[%c0_12, %c0_13], %33 {strides = array<i32>} : memref<1x32xf32, #tpu.memory_space<vmem>>, vector<1x32xf32>,
    %c0_14 = arith.constant 0 : index
    %c0_15 = arith.constant 0 : index
    %37 = vector.load %arg5[%c0_14, %c0_15] : memref<1x32xf32, #tpu.memory_space<vmem>>, vector<1x32xf32>
    tpu.vector_store %arg5[%c0_14, %c0_15], %35 {strides = array<i32>} : memref<1x32xf32, #tpu.memory_space<vmem>>, vector<1x32xf32>,
    %c0_16 = arith.constant 0 : index
    %c0_17 = arith.constant 0 : index
    %c0_18 = arith.constant 0 : index
    %38 = vector.load %arg4[%c0_16, %c0_17, %c0_18] : memref<1x16x32xf32, #tpu.memory_space<vmem>>, vector<1x1x32xf32>
    %39 = vector.shape_cast %38 : vector<1x1x32xf32> to vector<1x32xf32>
    %40 = vector.shape_cast %35 : vector<1x32xf32> to vector<1x1x32xf32>
    tpu.vector_store %arg4[%c0_16, %c0_17, %c0_18], %40 {strides = array<i32>} : memref<1x16x32xf32, #tpu.memory_space<vmem>>, vector<1x1x32xf32>,
    %c0_19 = arith.constant 0 : index
    %c1 = arith.constant 1 : index
    %c0_20 = arith.constant 0 : index
    %41 = vector.load %arg2[%c0_19, %c1, %c0_20] : memref<1x16x128xf32, #tpu.memory_space<vmem>>, vector<1x1x128xf32>
    %42 = vector.shape_cast %41 : vector<1x1x128xf32> to vector<1x128xf32>
    %c0_21 = arith.constant 0 : index
    %c0_22 = arith.constant 0 : index
    %43 = vector.load %arg5[%c0_21, %c0_22] : memref<1x32xf32, #tpu.memory_space<vmem>>, vector<1x32xf32>
    %44 = arith.truncf %43 : vector<1x32xf32> to vector<1x32xbf16>
    %c0_23 = arith.constant 0 : index
    %c0_24 = arith.constant 0 : index
    %45 = vector.load %arg3[%c0_23, %c0_24] : memref<32x128xbf16, #tpu.memory_space<vmem>>, vector<32x128xbf16>
    %cst_25 = arith.constant dense<0.000000e+00> : vector<1x128xf32>
    %46 = tpu.matmul %44, %45, %cst_25 {dimension_numbers = #tpu.dot_dimension_numbers<[1], [0], [0], [1], [0, 0, 1, 1], [], []>} : vector<1x32xbf16>, vector<32x128xbf16>, vector<1x128xf32> -> vector<1x128xf32>
    %47 = arith.addf %42, %46 : vector<1x128xf32>
    %48 = vector.extract_strided_slice %47 {offsets = [0, 0], sizes = [1, 32], strides = [1, 1]} : vector<1x128xf32> to vector<1x32xf32>
    %49 = arith.negf %48 : vector<1x32xf32>
    %50 = math.exp %49 : vector<1x32xf32>
    %cst_26 = arith.constant 1.000000e+00 : f32
    %51 = vector.broadcast %cst_26 : f32 to vector<1x32xf32>
    %52 = arith.addf %51, %50 : vector<1x32xf32>
    %53 = arith.divf %51, %52 : vector<1x32xf32>
    %54 = vector.extract_strided_slice %47 {offsets = [0, 32], sizes = [1, 32], strides = [1, 1]} : vector<1x128xf32> to vector<1x32xf32>
    %55 = arith.negf %54 : vector<1x32xf32>
    %56 = math.exp %55 : vector<1x32xf32>
    %cst_27 = arith.constant 1.000000e+00 : f32
    %57 = vector.broadcast %cst_27 : f32 to vector<1x32xf32>
    %58 = arith.addf %57, %56 : vector<1x32xf32>
    %59 = arith.divf %57, %58 : vector<1x32xf32>
    %60 = vector.extract_strided_slice %47 {offsets = [0, 64], sizes = [1, 32], strides = [1, 1]} : vector<1x128xf32> to vector<1x32xf32>
    %61 = math.tanh %60 : vector<1x32xf32>
    %62 = vector.extract_strided_slice %47 {offsets = [0, 96], sizes = [1, 32], strides = [1, 1]} : vector<1x128xf32> to vector<1x32xf32>
    %63 = arith.negf %62 : vector<1x32xf32>
    %64 = math.exp %63 : vector<1x32xf32>
    %cst_28 = arith.constant 1.000000e+00 : f32
    %65 = vector.broadcast %cst_28 : f32 to vector<1x32xf32>
    %66 = arith.addf %65, %64 : vector<1x32xf32>
    %67 = arith.divf %65, %66 : vector<1x32xf32>
    %c0_29 = arith.constant 0 : index
    %c0_30 = arith.constant 0 : index
    %68 = vector.load %arg6[%c0_29, %c0_30] : memref<1x32xf32, #tpu.memory_space<vmem>>, vector<1x32xf32>
    %69 = arith.mulf %59, %68 : vector<1x32xf32>
    %70 = arith.mulf %53, %61 : vector<1x32xf32>
    %71 = arith.addf %69, %70 : vector<1x32xf32>
    %72 = math.tanh %71 : vector<1x32xf32>
    %73 = arith.mulf %67, %72 : vector<1x32xf32>
    %c0_31 = arith.constant 0 : index
    %c0_32 = arith.constant 0 : index
    %74 = vector.load %arg6[%c0_31, %c0_32] : memref<1x32xf32, #tpu.memory_space<vmem>>, vector<1x32xf32>
    tpu.vector_store %arg6[%c0_31, %c0_32], %71 {strides = array<i32>} : memref<1x32xf32, #tpu.memory_space<vmem>>, vector<1x32xf32>,
    %c0_33 = arith.constant 0 : index
    %c0_34 = arith.constant 0 : index
    %75 = vector.load %arg5[%c0_33, %c0_34] : memref<1x32xf32, #tpu.memory_space<vmem>>, vector<1x32xf32>
    tpu.vector_store %arg5[%c0_33, %c0_34], %73 {strides = array<i32>} : memref<1x32xf32, #tpu.memory_space<vmem>>, vector<1x32xf32>,
    %c0_35 = arith.constant 0 : index
    %c1_36 = arith.constant 1 : index
    %c0_37 = arith.constant 0 : index
    %76 = vector.load %arg4[%c0_35, %c1_36, %c0_37] : memref<1x16x32xf32, #tpu.memory_space<vmem>>, vector<1x1x32xf32>
    %77 = vector.shape_cast %76 : vector<1x1x32xf32> to vector<1x32xf32>
    %78 = vector.shape_cast %73 : vector<1x32xf32> to vector<1x1x32xf32>
    tpu.vector_store %arg4[%c0_35, %c1_36, %c0_37], %78 {strides = array<i32>} : memref<1x16x32xf32, #tpu.memory_space<vmem>>, vector<1x1x32xf32>,
    %c0_38 = arith.constant 0 : index
    %c2 = arith.constant 2 : index
    %c0_39 = arith.constant 0 : index
    %79 = vector.load %arg2[%c0_38, %c2, %c0_39] : memref<1x16x128xf32, #tpu.memory_space<vmem>>, vector<1x1x128xf32>
    %80 = vector.shape_cast %79 : vector<1x1x128xf32> to vector<1x128xf32>
    %c0_40 = arith.constant 0 : index
    %c0_41 = arith.constant 0 : index
    %81 = vector.load %arg5[%c0_40, %c0_41] : memref<1x32xf32, #tpu.memory_space<vmem>>, vector<1x32xf32>
    %82 = arith.truncf %81 : vector<1x32xf32> to vector<1x32xbf16>
    %c0_42 = arith.constant 0 : index
    %c0_43 = arith.constant 0 : index
    %83 = vector.load %arg3[%c0_42, %c0_43] : memref<32x128xbf16, #tpu.memory_space<vmem>>, vector<32x128xbf16>
    %cst_44 = arith.constant dense<0.000000e+00> : vector<1x128xf32>
    %84 = tpu.matmul %82, %83, %cst_44 {dimension_numbers = #tpu.dot_dimension_numbers<[1], [0], [0], [1], [0, 0, 1, 1], [], []>} : vector<1x32xbf16>, vector<32x128xbf16>, vector<1x128xf32> -> vector<1x128xf32>
    %85 = arith.addf %80, %84 : vector<1x128xf32>
    %86 = vector.extract_strided_slice %85 {offsets = [0, 0], sizes = [1, 32], strides = [1, 1]} : vector<1x128xf32> to vector<1x32xf32>
    %87 = arith.negf %86 : vector<1x32xf32>
    %88 = math.exp %87 : vector<1x32xf32>
    %cst_45 = arith.constant 1.000000e+00 : f32
    %89 = vector.broadcast %cst_45 : f32 to vector<1x32xf32>
    %90 = arith.addf %89, %88 : vector<1x32xf32>
    %91 = arith.divf %89, %90 : vector<1x32xf32>
    %92 = vector.extract_strided_slice %85 {offsets = [0, 32], sizes = [1, 32], strides = [1, 1]} : vector<1x128xf32> to vector<1x32xf32>
    %93 = arith.negf %92 : vector<1x32xf32>
    %94 = math.exp %93 : vector<1x32xf32>
    %cst_46 = arith.constant 1.000000e+00 : f32
    %95 = vector.broadcast %cst_46 : f32 to vector<1x32xf32>
    %96 = arith.addf %95, %94 : vector<1x32xf32>
    %97 = arith.divf %95, %96 : vector<1x32xf32>
    %98 = vector.extract_strided_slice %85 {offsets = [0, 64], sizes = [1, 32], strides = [1, 1]} : vector<1x128xf32> to vector<1x32xf32>
    %99 = math.tanh %98 : vector<1x32xf32>
    %100 = vector.extract_strided_slice %85 {offsets = [0, 96], sizes = [1, 32], strides = [1, 1]} : vector<1x128xf32> to vector<1x32xf32>
    %101 = arith.negf %100 : vector<1x32xf32>
    %102 = math.exp %101 : vector<1x32xf32>
    %cst_47 = arith.constant 1.000000e+00 : f32
    %103 = vector.broadcast %cst_47 : f32 to vector<1x32xf32>
    %104 = arith.addf %103, %102 : vector<1x32xf32>
    %105 = arith.divf %103, %104 : vector<1x32xf32>
    %c0_48 = arith.constant 0 : index
    %c0_49 = arith.constant 0 : index
    %106 = vector.load %arg6[%c0_48, %c0_49] : memref<1x32xf32, #tpu.memory_space<vmem>>, vector<1x32xf32>
    %107 = arith.mulf %97, %106 : vector<1x32xf32>
    %108 = arith.mulf %91, %99 : vector<1x32xf32>
    %109 = arith.addf %107, %108 : vector<1x32xf32>
    %110 = math.tanh %109 : vector<1x32xf32>
    %111 = arith.mulf %105, %110 : vector<1x32xf32>
    %c0_50 = arith.constant 0 : index
    %c0_51 = arith.constant 0 : index
    %112 = vector.load %arg6[%c0_50, %c0_51] : memref<1x32xf32, #tpu.memory_space<vmem>>, vector<1x32xf32>
    tpu.vector_store %arg6[%c0_50, %c0_51], %109 {strides = array<i32>} : memref<1x32xf32, #tpu.memory_space<vmem>>, vector<1x32xf32>,
    %c0_52 = arith.constant 0 : index
    %c0_53 = arith.constant 0 : index
    %113 = vector.load %arg5[%c0_52, %c0_53] : memref<1x32xf32, #tpu.memory_space<vmem>>, vector<1x32xf32>
    tpu.vector_store %arg5[%c0_52, %c0_53], %111 {strides = array<i32>} : memref<1x32xf32, #tpu.memory_space<vmem>>, vector<1x32xf32>,
    %c0_54 = arith.constant 0 : index
    %c2_55 = arith.constant 2 : index
    %c0_56 = arith.constant 0 : index
    %114 = vector.load %arg4[%c0_54, %c2_55, %c0_56] : memref<1x16x32xf32, #tpu.memory_space<vmem>>, vector<1x1x32xf32>
    %115 = vector.shape_cast %114 : vector<1x1x32xf32> to vector<1x32xf32>
    %116 = vector.shape_cast %111 : vector<1x32xf32> to vector<1x1x32xf32>
    tpu.vector_store %arg4[%c0_54, %c2_55, %c0_56], %116 {strides = array<i32>} : memref<1x16x32xf32, #tpu.memory_space<vmem>>, vector<1x1x32xf32>,
    %c0_57 = arith.constant 0 : index
    %c3 = arith.constant 3 : index
    %c0_58 = arith.constant 0 : index
    %117 = vector.load %arg2[%c0_57, %c3, %c0_58] : memref<1x16x128xf32, #tpu.memory_space<vmem>>, vector<1x1x128xf32>
    %118 = vector.shape_cast %117 : vector<1x1x128xf32> to vector<1x128xf32>
    %c0_59 = arith.constant 0 : index
    %c0_60 = arith.constant 0 : index
    %119 = vector.load %arg5[%c0_59, %c0_60] : memref<1x32xf32, #tpu.memory_space<vmem>>, vector<1x32xf32>
    %120 = arith.truncf %119 : vector<1x32xf32> to vector<1x32xbf16>
    %c0_61 = arith.constant 0 : index
    %c0_62 = arith.constant 0 : index
    %121 = vector.load %arg3[%c0_61, %c0_62] : memref<32x128xbf16, #tpu.memory_space<vmem>>, vector<32x128xbf16>
    %cst_63 = arith.constant dense<0.000000e+00> : vector<1x128xf32>
    %122 = tpu.matmul %120, %121, %cst_63 {dimension_numbers = #tpu.dot_dimension_numbers<[1], [0], [0], [1], [0, 0, 1, 1], [], []>} : vector<1x32xbf16>, vector<32x128xbf16>, vector<1x128xf32> -> vector<1x128xf32>
    %123 = arith.addf %118, %122 : vector<1x128xf32>
    %124 = vector.extract_strided_slice %123 {offsets = [0, 0], sizes = [1, 32], strides = [1, 1]} : vector<1x128xf32> to vector<1x32xf32>
    %125 = arith.negf %124 : vector<1x32xf32>
    %126 = math.exp %125 : vector<1x32xf32>
    %cst_64 = arith.constant 1.000000e+00 : f32
    %127 = vector.broadcast %cst_64 : f32 to vector<1x32xf32>
    %128 = arith.addf %127, %126 : vector<1x32xf32>
    %129 = arith.divf %127, %128 : vector<1x32xf32>
    %130 = vector.extract_strided_slice %123 {offsets = [0, 32], sizes = [1, 32], strides = [1, 1]} : vector<1x128xf32> to vector<1x32xf32>
    %131 = arith.negf %130 : vector<1x32xf32>
    %132 = math.exp %131 : vector<1x32xf32>
    %cst_65 = arith.constant 1.000000e+00 : f32
    %133 = vector.broadcast %cst_65 : f32 to vector<1x32xf32>
    %134 = arith.addf %133, %132 : vector<1x32xf32>
    %135 = arith.divf %133, %134 : vector<1x32xf32>
    %136 = vector.extract_strided_slice %123 {offsets = [0, 64], sizes = [1, 32], strides = [1, 1]} : vector<1x128xf32> to vector<1x32xf32>
    %137 = math.tanh %136 : vector<1x32xf32>
    %138 = vector.extract_strided_slice %123 {offsets = [0, 96], sizes = [1, 32], strides = [1, 1]} : vector<1x128xf32> to vector<1x32xf32>
    %139 = arith.negf %138 : vector<1x32xf32>
    %140 = math.exp %139 : vector<1x32xf32>
    %cst_66 = arith.constant 1.000000e+00 : f32
    %141 = vector.broadcast %cst_66 : f32 to vector<1x32xf32>
    %142 = arith.addf %141, %140 : vector<1x32xf32>
    %143 = arith.divf %141, %142 : vector<1x32xf32>
    %c0_67 = arith.constant 0 : index
    %c0_68 = arith.constant 0 : index
    %144 = vector.load %arg6[%c0_67, %c0_68] : memref<1x32xf32, #tpu.memory_space<vmem>>, vector<1x32xf32>
    %145 = arith.mulf %135, %144 : vector<1x32xf32>
    %146 = arith.mulf %129, %137 : vector<1x32xf32>
    %147 = arith.addf %145, %146 : vector<1x32xf32>
    %148 = math.tanh %147 : vector<1x32xf32>
    %149 = arith.mulf %143, %148 : vector<1x32xf32>
    %c0_69 = arith.constant 0 : index
    %c0_70 = arith.constant 0 : index
    %150 = vector.load %arg6[%c0_69, %c0_70] : memref<1x32xf32, #tpu.memory_space<vmem>>, vector<1x32xf32>
    tpu.vector_store %arg6[%c0_69, %c0_70], %147 {strides = array<i32>} : memref<1x32xf32, #tpu.memory_space<vmem>>, vector<1x32xf32>,
    %c0_71 = arith.constant 0 : index
    %c0_72 = arith.constant 0 : index
    %151 = vector.load %arg5[%c0_71, %c0_72] : memref<1x32xf32, #tpu.memory_space<vmem>>, vector<1x32xf32>
    tpu.vector_store %arg5[%c0_71, %c0_72], %149 {strides = array<i32>} : memref<1x32xf32, #tpu.memory_space<vmem>>, vector<1x32xf32>,
    %c0_73 = arith.constant 0 : index
    %c3_74 = arith.constant 3 : index
    %c0_75 = arith.constant 0 : index
    %152 = vector.load %arg4[%c0_73, %c3_74, %c0_75] : memref<1x16x32xf32, #tpu.memory_space<vmem>>, vector<1x1x32xf32>
    %153 = vector.shape_cast %152 : vector<1x1x32xf32> to vector<1x32xf32>
    %154 = vector.shape_cast %149 : vector<1x32xf32> to vector<1x1x32xf32>
    tpu.vector_store %arg4[%c0_73, %c3_74, %c0_75], %154 {strides = array<i32>} : memref<1x16x32xf32, #tpu.memory_space<vmem>>, vector<1x1x32xf32>,
    %c0_76 = arith.constant 0 : index
    %c4 = arith.constant 4 : index
    %c0_77 = arith.constant 0 : index
    %155 = vector.load %arg2[%c0_76, %c4, %c0_77] : memref<1x16x128xf32, #tpu.memory_space<vmem>>, vector<1x1x128xf32>
    %156 = vector.shape_cast %155 : vector<1x1x128xf32> to vector<1x128xf32>
    %c0_78 = arith.constant 0 : index
    %c0_79 = arith.constant 0 : index
    %157 = vector.load %arg5[%c0_78, %c0_79] : memref<1x32xf32, #tpu.memory_space<vmem>>, vector<1x32xf32>
    %158 = arith.truncf %157 : vector<1x32xf32> to vector<1x32xbf16>
    %c0_80 = arith.constant 0 : index
    %c0_81 = arith.constant 0 : index
    %159 = vector.load %arg3[%c0_80, %c0_81] : memref<32x128xbf16, #tpu.memory_space<vmem>>, vector<32x128xbf16>
    %cst_82 = arith.constant dense<0.000000e+00> : vector<1x128xf32>
    %160 = tpu.matmul %158, %159, %cst_82 {dimension_numbers = #tpu.dot_dimension_numbers<[1], [0], [0], [1], [0, 0, 1, 1], [], []>} : vector<1x32xbf16>, vector<32x128xbf16>, vector<1x128xf32> -> vector<1x128xf32>
    %161 = arith.addf %156, %160 : vector<1x128xf32>
    %162 = vector.extract_strided_slice %161 {offsets = [0, 0], sizes = [1, 32], strides = [1, 1]} : vector<1x128xf32> to vector<1x32xf32>
    %163 = arith.negf %162 : vector<1x32xf32>
    %164 = math.exp %163 : vector<1x32xf32>
    %cst_83 = arith.constant 1.000000e+00 : f32
    %165 = vector.broadcast %cst_83 : f32 to vector<1x32xf32>
    %166 = arith.addf %165, %164 : vector<1x32xf32>
    %167 = arith.divf %165, %166 : vector<1x32xf32>
    %168 = vector.extract_strided_slice %161 {offsets = [0, 32], sizes = [1, 32], strides = [1, 1]} : vector<1x128xf32> to vector<1x32xf32>
    %169 = arith.negf %168 : vector<1x32xf32>
    %170 = math.exp %169 : vector<1x32xf32>
    %cst_84 = arith.constant 1.000000e+00 : f32
    %171 = vector.broadcast %cst_84 : f32 to vector<1x32xf32>
    %172 = arith.addf %171, %170 : vector<1x32xf32>
    %173 = arith.divf %171, %172 : vector<1x32xf32>
    %174 = vector.extract_strided_slice %161 {offsets = [0, 64], sizes = [1, 32], strides = [1, 1]} : vector<1x128xf32> to vector<1x32xf32>
    %175 = math.tanh %174 : vector<1x32xf32>
    %176 = vector.extract_strided_slice %161 {offsets = [0, 96], sizes = [1, 32], strides = [1, 1]} : vector<1x128xf32> to vector<1x32xf32>
    %177 = arith.negf %176 : vector<1x32xf32>
    %178 = math.exp %177 : vector<1x32xf32>
    %cst_85 = arith.constant 1.000000e+00 : f32
    %179 = vector.broadcast %cst_85 : f32 to vector<1x32xf32>
    %180 = arith.addf %179, %178 : vector<1x32xf32>
    %181 = arith.divf %179, %180 : vector<1x32xf32>
    %c0_86 = arith.constant 0 : index
    %c0_87 = arith.constant 0 : index
    %182 = vector.load %arg6[%c0_86, %c0_87] : memref<1x32xf32, #tpu.memory_space<vmem>>, vector<1x32xf32>
    %183 = arith.mulf %173, %182 : vector<1x32xf32>
    %184 = arith.mulf %167, %175 : vector<1x32xf32>
    %185 = arith.addf %183, %184 : vector<1x32xf32>
    %186 = math.tanh %185 : vector<1x32xf32>
    %187 = arith.mulf %181, %186 : vector<1x32xf32>
    %c0_88 = arith.constant 0 : index
    %c0_89 = arith.constant 0 : index
    %188 = vector.load %arg6[%c0_88, %c0_89] : memref<1x32xf32, #tpu.memory_space<vmem>>, vector<1x32xf32>
    tpu.vector_store %arg6[%c0_88, %c0_89], %185 {strides = array<i32>} : memref<1x32xf32, #tpu.memory_space<vmem>>, vector<1x32xf32>,
    %c0_90 = arith.constant 0 : index
    %c0_91 = arith.constant 0 : index
    %189 = vector.load %arg5[%c0_90, %c0_91] : memref<1x32xf32, #tpu.memory_space<vmem>>, vector<1x32xf32>
    tpu.vector_store %arg5[%c0_90, %c0_91], %187 {strides = array<i32>} : memref<1x32xf32, #tpu.memory_space<vmem>>, vector<1x32xf32>,
    %c0_92 = arith.constant 0 : index
    %c4_93 = arith.constant 4 : index
    %c0_94 = arith.constant 0 : index
    %190 = vector.load %arg4[%c0_92, %c4_93, %c0_94] : memref<1x16x32xf32, #tpu.memory_space<vmem>>, vector<1x1x32xf32>
    %191 = vector.shape_cast %190 : vector<1x1x32xf32> to vector<1x32xf32>
    %192 = vector.shape_cast %187 : vector<1x32xf32> to vector<1x1x32xf32>
    tpu.vector_store %arg4[%c0_92, %c4_93, %c0_94], %192 {strides = array<i32>} : memref<1x16x32xf32, #tpu.memory_space<vmem>>, vector<1x1x32xf32>,
    %c0_95 = arith.constant 0 : index
    %c5 = arith.constant 5 : index
    %c0_96 = arith.constant 0 : index
    %193 = vector.load %arg2[%c0_95, %c5, %c0_96] : memref<1x16x128xf32, #tpu.memory_space<vmem>>, vector<1x1x128xf32>
    %194 = vector.shape_cast %193 : vector<1x1x128xf32> to vector<1x128xf32>
    %c0_97 = arith.constant 0 : index
    %c0_98 = arith.constant 0 : index
    %195 = vector.load %arg5[%c0_97, %c0_98] : memref<1x32xf32, #tpu.memory_space<vmem>>, vector<1x32xf32>
    %196 = arith.truncf %195 : vector<1x32xf32> to vector<1x32xbf16>
    %c0_99 = arith.constant 0 : index
    %c0_100 = arith.constant 0 : index
    %197 = vector.load %arg3[%c0_99, %c0_100] : memref<32x128xbf16, #tpu.memory_space<vmem>>, vector<32x128xbf16>
    %cst_101 = arith.constant dense<0.000000e+00> : vector<1x128xf32>
    %198 = tpu.matmul %196, %197, %cst_101 {dimension_numbers = #tpu.dot_dimension_numbers<[1], [0], [0], [1], [0, 0, 1, 1], [], []>} : vector<1x32xbf16>, vector<32x128xbf16>, vector<1x128xf32> -> vector<1x128xf32>
    %199 = arith.addf %194, %198 : vector<1x128xf32>
    %200 = vector.extract_strided_slice %199 {offsets = [0, 0], sizes = [1, 32], strides = [1, 1]} : vector<1x128xf32> to vector<1x32xf32>
    %201 = arith.negf %200 : vector<1x32xf32>
    %202 = math.exp %201 : vector<1x32xf32>
    %cst_102 = arith.constant 1.000000e+00 : f32
    %203 = vector.broadcast %cst_102 : f32 to vector<1x32xf32>
    %204 = arith.addf %203, %202 : vector<1x32xf32>
    %205 = arith.divf %203, %204 : vector<1x32xf32>
    %206 = vector.extract_strided_slice %199 {offsets = [0, 32], sizes = [1, 32], strides = [1, 1]} : vector<1x128xf32> to vector<1x32xf32>
    %207 = arith.negf %206 : vector<1x32xf32>
    %208 = math.exp %207 : vector<1x32xf32>
    %cst_103 = arith.constant 1.000000e+00 : f32
    %209 = vector.broadcast %cst_103 : f32 to vector<1x32xf32>
    %210 = arith.addf %209, %208 : vector<1x32xf32>
    %211 = arith.divf %209, %210 : vector<1x32xf32>
    %212 = vector.extract_strided_slice %199 {offsets = [0, 64], sizes = [1, 32], strides = [1, 1]} : vector<1x128xf32> to vector<1x32xf32>
    %213 = math.tanh %212 : vector<1x32xf32>
    %214 = vector.extract_strided_slice %199 {offsets = [0, 96], sizes = [1, 32], strides = [1, 1]} : vector<1x128xf32> to vector<1x32xf32>
    %215 = arith.negf %214 : vector<1x32xf32>
    %216 = math.exp %215 : vector<1x32xf32>
    %cst_104 = arith.constant 1.000000e+00 : f32
    %217 = vector.broadcast %cst_104 : f32 to vector<1x32xf32>
    %218 = arith.addf %217, %216 : vector<1x32xf32>
    %219 = arith.divf %217, %218 : vector<1x32xf32>
    %c0_105 = arith.constant 0 : index
    %c0_106 = arith.constant 0 : index
    %220 = vector.load %arg6[%c0_105, %c0_106] : memref<1x32xf32, #tpu.memory_space<vmem>>, vector<1x32xf32>
    %221 = arith.mulf %211, %220 : vector<1x32xf32>
    %222 = arith.mulf %205, %213 : vector<1x32xf32>
    %223 = arith.addf %221, %222 : vector<1x32xf32>
    %224 = math.tanh %223 : vector<1x32xf32>
    %225 = arith.mulf %219, %224 : vector<1x32xf32>
    %c0_107 = arith.constant 0 : index
    %c0_108 = arith.constant 0 : index
    %226 = vector.load %arg6[%c0_107, %c0_108] : memref<1x32xf32, #tpu.memory_space<vmem>>, vector<1x32xf32>
    tpu.vector_store %arg6[%c0_107, %c0_108], %223 {strides = array<i32>} : memref<1x32xf32, #tpu.memory_space<vmem>>, vector<1x32xf32>,
    %c0_109 = arith.constant 0 : index
    %c0_110 = arith.constant 0 : index
    %227 = vector.load %arg5[%c0_109, %c0_110] : memref<1x32xf32, #tpu.memory_space<vmem>>, vector<1x32xf32>
    tpu.vector_store %arg5[%c0_109, %c0_110], %225 {strides = array<i32>} : memref<1x32xf32, #tpu.memory_space<vmem>>, vector<1x32xf32>,
    %c0_111 = arith.constant 0 : index
    %c5_112 = arith.constant 5 : index
    %c0_113 = arith.constant 0 : index
    %228 = vector.load %arg4[%c0_111, %c5_112, %c0_113] : memref<1x16x32xf32, #tpu.memory_space<vmem>>, vector<1x1x32xf32>
    %229 = vector.shape_cast %228 : vector<1x1x32xf32> to vector<1x32xf32>
    %230 = vector.shape_cast %225 : vector<1x32xf32> to vector<1x1x32xf32>
    tpu.vector_store %arg4[%c0_111, %c5_112, %c0_113], %230 {strides = array<i32>} : memref<1x16x32xf32, #tpu.memory_space<vmem>>, vector<1x1x32xf32>,
    %c0_114 = arith.constant 0 : index
    %c6 = arith.constant 6 : index
    %c0_115 = arith.constant 0 : index
    %231 = vector.load %arg2[%c0_114, %c6, %c0_115] : memref<1x16x128xf32, #tpu.memory_space<vmem>>, vector<1x1x128xf32>
    %232 = vector.shape_cast %231 : vector<1x1x128xf32> to vector<1x128xf32>
    %c0_116 = arith.constant 0 : index
    %c0_117 = arith.constant 0 : index
    %233 = vector.load %arg5[%c0_116, %c0_117] : memref<1x32xf32, #tpu.memory_space<vmem>>, vector<1x32xf32>
    %234 = arith.truncf %233 : vector<1x32xf32> to vector<1x32xbf16>
    %c0_118 = arith.constant 0 : index
    %c0_119 = arith.constant 0 : index
    %235 = vector.load %arg3[%c0_118, %c0_119] : memref<32x128xbf16, #tpu.memory_space<vmem>>, vector<32x128xbf16>
    %cst_120 = arith.constant dense<0.000000e+00> : vector<1x128xf32>
    %236 = tpu.matmul %234, %235, %cst_120 {dimension_numbers = #tpu.dot_dimension_numbers<[1], [0], [0], [1], [0, 0, 1, 1], [], []>} : vector<1x32xbf16>, vector<32x128xbf16>, vector<1x128xf32> -> vector<1x128xf32>
    %237 = arith.addf %232, %236 : vector<1x128xf32>
    %238 = vector.extract_strided_slice %237 {offsets = [0, 0], sizes = [1, 32], strides = [1, 1]} : vector<1x128xf32> to vector<1x32xf32>
    %239 = arith.negf %238 : vector<1x32xf32>
    %240 = math.exp %239 : vector<1x32xf32>
    %cst_121 = arith.constant 1.000000e+00 : f32
    %241 = vector.broadcast %cst_121 : f32 to vector<1x32xf32>
    %242 = arith.addf %241, %240 : vector<1x32xf32>
    %243 = arith.divf %241, %242 : vector<1x32xf32>
    %244 = vector.extract_strided_slice %237 {offsets = [0, 32], sizes = [1, 32], strides = [1, 1]} : vector<1x128xf32> to vector<1x32xf32>
    %245 = arith.negf %244 : vector<1x32xf32>
    %246 = math.exp %245 : vector<1x32xf32>
    %cst_122 = arith.constant 1.000000e+00 : f32
    %247 = vector.broadcast %cst_122 : f32 to vector<1x32xf32>
    %248 = arith.addf %247, %246 : vector<1x32xf32>
    %249 = arith.divf %247, %248 : vector<1x32xf32>
    %250 = vector.extract_strided_slice %237 {offsets = [0, 64], sizes = [1, 32], strides = [1, 1]} : vector<1x128xf32> to vector<1x32xf32>
    %251 = math.tanh %250 : vector<1x32xf32>
    %252 = vector.extract_strided_slice %237 {offsets = [0, 96], sizes = [1, 32], strides = [1, 1]} : vector<1x128xf32> to vector<1x32xf32>
    %253 = arith.negf %252 : vector<1x32xf32>
    %254 = math.exp %253 : vector<1x32xf32>
    %cst_123 = arith.constant 1.000000e+00 : f32
    %255 = vector.broadcast %cst_123 : f32 to vector<1x32xf32>
    %256 = arith.addf %255, %254 : vector<1x32xf32>
    %257 = arith.divf %255, %256 : vector<1x32xf32>
    %c0_124 = arith.constant 0 : index
    %c0_125 = arith.constant 0 : index
    %258 = vector.load %arg6[%c0_124, %c0_125] : memref<1x32xf32, #tpu.memory_space<vmem>>, vector<1x32xf32>
    %259 = arith.mulf %249, %258 : vector<1x32xf32>
    %260 = arith.mulf %243, %251 : vector<1x32xf32>
    %261 = arith.addf %259, %260 : vector<1x32xf32>
    %262 = math.tanh %261 : vector<1x32xf32>
    %263 = arith.mulf %257, %262 : vector<1x32xf32>
    %c0_126 = arith.constant 0 : index
    %c0_127 = arith.constant 0 : index
    %264 = vector.load %arg6[%c0_126, %c0_127] : memref<1x32xf32, #tpu.memory_space<vmem>>, vector<1x32xf32>
    tpu.vector_store %arg6[%c0_126, %c0_127], %261 {strides = array<i32>} : memref<1x32xf32, #tpu.memory_space<vmem>>, vector<1x32xf32>,
    %c0_128 = arith.constant 0 : index
    %c0_129 = arith.constant 0 : index
    %265 = vector.load %arg5[%c0_128, %c0_129] : memref<1x32xf32, #tpu.memory_space<vmem>>, vector<1x32xf32>
    tpu.vector_store %arg5[%c0_128, %c0_129], %263 {strides = array<i32>} : memref<1x32xf32, #tpu.memory_space<vmem>>, vector<1x32xf32>,
    %c0_130 = arith.constant 0 : index
    %c6_131 = arith.constant 6 : index
    %c0_132 = arith.constant 0 : index
    %266 = vector.load %arg4[%c0_130, %c6_131, %c0_132] : memref<1x16x32xf32, #tpu.memory_space<vmem>>, vector<1x1x32xf32>
    %267 = vector.shape_cast %266 : vector<1x1x32xf32> to vector<1x32xf32>
    %268 = vector.shape_cast %263 : vector<1x32xf32> to vector<1x1x32xf32>
    tpu.vector_store %arg4[%c0_130, %c6_131, %c0_132], %268 {strides = array<i32>} : memref<1x16x32xf32, #tpu.memory_space<vmem>>, vector<1x1x32xf32>,
    %c0_133 = arith.constant 0 : index
    %c7 = arith.constant 7 : index
    %c0_134 = arith.constant 0 : index
    %269 = vector.load %arg2[%c0_133, %c7, %c0_134] : memref<1x16x128xf32, #tpu.memory_space<vmem>>, vector<1x1x128xf32>
    %270 = vector.shape_cast %269 : vector<1x1x128xf32> to vector<1x128xf32>
    %c0_135 = arith.constant 0 : index
    %c0_136 = arith.constant 0 : index
    %271 = vector.load %arg5[%c0_135, %c0_136] : memref<1x32xf32, #tpu.memory_space<vmem>>, vector<1x32xf32>
    %272 = arith.truncf %271 : vector<1x32xf32> to vector<1x32xbf16>
    %c0_137 = arith.constant 0 : index
    %c0_138 = arith.constant 0 : index
    %273 = vector.load %arg3[%c0_137, %c0_138] : memref<32x128xbf16, #tpu.memory_space<vmem>>, vector<32x128xbf16>
    %cst_139 = arith.constant dense<0.000000e+00> : vector<1x128xf32>
    %274 = tpu.matmul %272, %273, %cst_139 {dimension_numbers = #tpu.dot_dimension_numbers<[1], [0], [0], [1], [0, 0, 1, 1], [], []>} : vector<1x32xbf16>, vector<32x128xbf16>, vector<1x128xf32> -> vector<1x128xf32>
    %275 = arith.addf %270, %274 : vector<1x128xf32>
    %276 = vector.extract_strided_slice %275 {offsets = [0, 0], sizes = [1, 32], strides = [1, 1]} : vector<1x128xf32> to vector<1x32xf32>
    %277 = arith.negf %276 : vector<1x32xf32>
    %278 = math.exp %277 : vector<1x32xf32>
    %cst_140 = arith.constant 1.000000e+00 : f32
    %279 = vector.broadcast %cst_140 : f32 to vector<1x32xf32>
    %280 = arith.addf %279, %278 : vector<1x32xf32>
    %281 = arith.divf %279, %280 : vector<1x32xf32>
    %282 = vector.extract_strided_slice %275 {offsets = [0, 32], sizes = [1, 32], strides = [1, 1]} : vector<1x128xf32> to vector<1x32xf32>
    %283 = arith.negf %282 : vector<1x32xf32>
    %284 = math.exp %283 : vector<1x32xf32>
    %cst_141 = arith.constant 1.000000e+00 : f32
    %285 = vector.broadcast %cst_141 : f32 to vector<1x32xf32>
    %286 = arith.addf %285, %284 : vector<1x32xf32>
    %287 = arith.divf %285, %286 : vector<1x32xf32>
    %288 = vector.extract_strided_slice %275 {offsets = [0, 64], sizes = [1, 32], strides = [1, 1]} : vector<1x128xf32> to vector<1x32xf32>
    %289 = math.tanh %288 : vector<1x32xf32>
    %290 = vector.extract_strided_slice %275 {offsets = [0, 96], sizes = [1, 32], strides = [1, 1]} : vector<1x128xf32> to vector<1x32xf32>
    %291 = arith.negf %290 : vector<1x32xf32>
    %292 = math.exp %291 : vector<1x32xf32>
    %cst_142 = arith.constant 1.000000e+00 : f32
    %293 = vector.broadcast %cst_142 : f32 to vector<1x32xf32>
    %294 = arith.addf %293, %292 : vector<1x32xf32>
    %295 = arith.divf %293, %294 : vector<1x32xf32>
    %c0_143 = arith.constant 0 : index
    %c0_144 = arith.constant 0 : index
    %296 = vector.load %arg6[%c0_143, %c0_144] : memref<1x32xf32, #tpu.memory_space<vmem>>, vector<1x32xf32>
    %297 = arith.mulf %287, %296 : vector<1x32xf32>
    %298 = arith.mulf %281, %289 : vector<1x32xf32>
    %299 = arith.addf %297, %298 : vector<1x32xf32>
    %300 = math.tanh %299 : vector<1x32xf32>
    %301 = arith.mulf %295, %300 : vector<1x32xf32>
    %c0_145 = arith.constant 0 : index
    %c0_146 = arith.constant 0 : index
    %302 = vector.load %arg6[%c0_145, %c0_146] : memref<1x32xf32, #tpu.memory_space<vmem>>, vector<1x32xf32>
    tpu.vector_store %arg6[%c0_145, %c0_146], %299 {strides = array<i32>} : memref<1x32xf32, #tpu.memory_space<vmem>>, vector<1x32xf32>,
    %c0_147 = arith.constant 0 : index
    %c0_148 = arith.constant 0 : index
    %303 = vector.load %arg5[%c0_147, %c0_148] : memref<1x32xf32, #tpu.memory_space<vmem>>, vector<1x32xf32>
    tpu.vector_store %arg5[%c0_147, %c0_148], %301 {strides = array<i32>} : memref<1x32xf32, #tpu.memory_space<vmem>>, vector<1x32xf32>,
    %c0_149 = arith.constant 0 : index
    %c7_150 = arith.constant 7 : index
    %c0_151 = arith.constant 0 : index
    %304 = vector.load %arg4[%c0_149, %c7_150, %c0_151] : memref<1x16x32xf32, #tpu.memory_space<vmem>>, vector<1x1x32xf32>
    %305 = vector.shape_cast %304 : vector<1x1x32xf32> to vector<1x32xf32>
    %306 = vector.shape_cast %301 : vector<1x32xf32> to vector<1x1x32xf32>
    tpu.vector_store %arg4[%c0_149, %c7_150, %c0_151], %306 {strides = array<i32>} : memref<1x16x32xf32, #tpu.memory_space<vmem>>, vector<1x1x32xf32>,
    %c0_152 = arith.constant 0 : index
    %c8 = arith.constant 8 : index
    %c0_153 = arith.constant 0 : index
    %307 = vector.load %arg2[%c0_152, %c8, %c0_153] : memref<1x16x128xf32, #tpu.memory_space<vmem>>, vector<1x1x128xf32>
    %308 = vector.shape_cast %307 : vector<1x1x128xf32> to vector<1x128xf32>
    %c0_154 = arith.constant 0 : index
    %c0_155 = arith.constant 0 : index
    %309 = vector.load %arg5[%c0_154, %c0_155] : memref<1x32xf32, #tpu.memory_space<vmem>>, vector<1x32xf32>
    %310 = arith.truncf %309 : vector<1x32xf32> to vector<1x32xbf16>
    %c0_156 = arith.constant 0 : index
    %c0_157 = arith.constant 0 : index
    %311 = vector.load %arg3[%c0_156, %c0_157] : memref<32x128xbf16, #tpu.memory_space<vmem>>, vector<32x128xbf16>
    %cst_158 = arith.constant dense<0.000000e+00> : vector<1x128xf32>
    %312 = tpu.matmul %310, %311, %cst_158 {dimension_numbers = #tpu.dot_dimension_numbers<[1], [0], [0], [1], [0, 0, 1, 1], [], []>} : vector<1x32xbf16>, vector<32x128xbf16>, vector<1x128xf32> -> vector<1x128xf32>
    %313 = arith.addf %308, %312 : vector<1x128xf32>
    %314 = vector.extract_strided_slice %313 {offsets = [0, 0], sizes = [1, 32], strides = [1, 1]} : vector<1x128xf32> to vector<1x32xf32>
    %315 = arith.negf %314 : vector<1x32xf32>
    %316 = math.exp %315 : vector<1x32xf32>
    %cst_159 = arith.constant 1.000000e+00 : f32
    %317 = vector.broadcast %cst_159 : f32 to vector<1x32xf32>
    %318 = arith.addf %317, %316 : vector<1x32xf32>
    %319 = arith.divf %317, %318 : vector<1x32xf32>
    %320 = vector.extract_strided_slice %313 {offsets = [0, 32], sizes = [1, 32], strides = [1, 1]} : vector<1x128xf32> to vector<1x32xf32>
    %321 = arith.negf %320 : vector<1x32xf32>
    %322 = math.exp %321 : vector<1x32xf32>
    %cst_160 = arith.constant 1.000000e+00 : f32
    %323 = vector.broadcast %cst_160 : f32 to vector<1x32xf32>
    %324 = arith.addf %323, %322 : vector<1x32xf32>
    %325 = arith.divf %323, %324 : vector<1x32xf32>
    %326 = vector.extract_strided_slice %313 {offsets = [0, 64], sizes = [1, 32], strides = [1, 1]} : vector<1x128xf32> to vector<1x32xf32>
    %327 = math.tanh %326 : vector<1x32xf32>
    %328 = vector.extract_strided_slice %313 {offsets = [0, 96], sizes = [1, 32], strides = [1, 1]} : vector<1x128xf32> to vector<1x32xf32>
    %329 = arith.negf %328 : vector<1x32xf32>
    %330 = math.exp %329 : vector<1x32xf32>
    %cst_161 = arith.constant 1.000000e+00 : f32
    %331 = vector.broadcast %cst_161 : f32 to vector<1x32xf32>
    %332 = arith.addf %331, %330 : vector<1x32xf32>
    %333 = arith.divf %331, %332 : vector<1x32xf32>
    %c0_162 = arith.constant 0 : index
    %c0_163 = arith.constant 0 : index
    %334 = vector.load %arg6[%c0_162, %c0_163] : memref<1x32xf32, #tpu.memory_space<vmem>>, vector<1x32xf32>
    %335 = arith.mulf %325, %334 : vector<1x32xf32>
    %336 = arith.mulf %319, %327 : vector<1x32xf32>
    %337 = arith.addf %335, %336 : vector<1x32xf32>
    %338 = math.tanh %337 : vector<1x32xf32>
    %339 = arith.mulf %333, %338 : vector<1x32xf32>
    %c0_164 = arith.constant 0 : index
    %c0_165 = arith.constant 0 : index
    %340 = vector.load %arg6[%c0_164, %c0_165] : memref<1x32xf32, #tpu.memory_space<vmem>>, vector<1x32xf32>
    tpu.vector_store %arg6[%c0_164, %c0_165], %337 {strides = array<i32>} : memref<1x32xf32, #tpu.memory_space<vmem>>, vector<1x32xf32>,
    %c0_166 = arith.constant 0 : index
    %c0_167 = arith.constant 0 : index
    %341 = vector.load %arg5[%c0_166, %c0_167] : memref<1x32xf32, #tpu.memory_space<vmem>>, vector<1x32xf32>
    tpu.vector_store %arg5[%c0_166, %c0_167], %339 {strides = array<i32>} : memref<1x32xf32, #tpu.memory_space<vmem>>, vector<1x32xf32>,
    %c0_168 = arith.constant 0 : index
    %c8_169 = arith.constant 8 : index
    %c0_170 = arith.constant 0 : index
    %342 = vector.load %arg4[%c0_168, %c8_169, %c0_170] : memref<1x16x32xf32, #tpu.memory_space<vmem>>, vector<1x1x32xf32>
    %343 = vector.shape_cast %342 : vector<1x1x32xf32> to vector<1x32xf32>
    %344 = vector.shape_cast %339 : vector<1x32xf32> to vector<1x1x32xf32>
    tpu.vector_store %arg4[%c0_168, %c8_169, %c0_170], %344 {strides = array<i32>} : memref<1x16x32xf32, #tpu.memory_space<vmem>>, vector<1x1x32xf32>,
    %c0_171 = arith.constant 0 : index
    %c9 = arith.constant 9 : index
    %c0_172 = arith.constant 0 : index
    %345 = vector.load %arg2[%c0_171, %c9, %c0_172] : memref<1x16x128xf32, #tpu.memory_space<vmem>>, vector<1x1x128xf32>
    %346 = vector.shape_cast %345 : vector<1x1x128xf32> to vector<1x128xf32>
    %c0_173 = arith.constant 0 : index
    %c0_174 = arith.constant 0 : index
    %347 = vector.load %arg5[%c0_173, %c0_174] : memref<1x32xf32, #tpu.memory_space<vmem>>, vector<1x32xf32>
    %348 = arith.truncf %347 : vector<1x32xf32> to vector<1x32xbf16>
    %c0_175 = arith.constant 0 : index
    %c0_176 = arith.constant 0 : index
    %349 = vector.load %arg3[%c0_175, %c0_176] : memref<32x128xbf16, #tpu.memory_space<vmem>>, vector<32x128xbf16>
    %cst_177 = arith.constant dense<0.000000e+00> : vector<1x128xf32>
    %350 = tpu.matmul %348, %349, %cst_177 {dimension_numbers = #tpu.dot_dimension_numbers<[1], [0], [0], [1], [0, 0, 1, 1], [], []>} : vector<1x32xbf16>, vector<32x128xbf16>, vector<1x128xf32> -> vector<1x128xf32>
    %351 = arith.addf %346, %350 : vector<1x128xf32>
    %352 = vector.extract_strided_slice %351 {offsets = [0, 0], sizes = [1, 32], strides = [1, 1]} : vector<1x128xf32> to vector<1x32xf32>
    %353 = arith.negf %352 : vector<1x32xf32>
    %354 = math.exp %353 : vector<1x32xf32>
    %cst_178 = arith.constant 1.000000e+00 : f32
    %355 = vector.broadcast %cst_178 : f32 to vector<1x32xf32>
    %356 = arith.addf %355, %354 : vector<1x32xf32>
    %357 = arith.divf %355, %356 : vector<1x32xf32>
    %358 = vector.extract_strided_slice %351 {offsets = [0, 32], sizes = [1, 32], strides = [1, 1]} : vector<1x128xf32> to vector<1x32xf32>
    %359 = arith.negf %358 : vector<1x32xf32>
    %360 = math.exp %359 : vector<1x32xf32>
    %cst_179 = arith.constant 1.000000e+00 : f32
    %361 = vector.broadcast %cst_179 : f32 to vector<1x32xf32>
    %362 = arith.addf %361, %360 : vector<1x32xf32>
    %363 = arith.divf %361, %362 : vector<1x32xf32>
    %364 = vector.extract_strided_slice %351 {offsets = [0, 64], sizes = [1, 32], strides = [1, 1]} : vector<1x128xf32> to vector<1x32xf32>
    %365 = math.tanh %364 : vector<1x32xf32>
    %366 = vector.extract_strided_slice %351 {offsets = [0, 96], sizes = [1, 32], strides = [1, 1]} : vector<1x128xf32> to vector<1x32xf32>
    %367 = arith.negf %366 : vector<1x32xf32>
    %368 = math.exp %367 : vector<1x32xf32>
    %cst_180 = arith.constant 1.000000e+00 : f32
    %369 = vector.broadcast %cst_180 : f32 to vector<1x32xf32>
    %370 = arith.addf %369, %368 : vector<1x32xf32>
    %371 = arith.divf %369, %370 : vector<1x32xf32>
    %c0_181 = arith.constant 0 : index
    %c0_182 = arith.constant 0 : index
    %372 = vector.load %arg6[%c0_181, %c0_182] : memref<1x32xf32, #tpu.memory_space<vmem>>, vector<1x32xf32>
    %373 = arith.mulf %363, %372 : vector<1x32xf32>
    %374 = arith.mulf %357, %365 : vector<1x32xf32>
    %375 = arith.addf %373, %374 : vector<1x32xf32>
    %376 = math.tanh %375 : vector<1x32xf32>
    %377 = arith.mulf %371, %376 : vector<1x32xf32>
    %c0_183 = arith.constant 0 : index
    %c0_184 = arith.constant 0 : index
    %378 = vector.load %arg6[%c0_183, %c0_184] : memref<1x32xf32, #tpu.memory_space<vmem>>, vector<1x32xf32>
    tpu.vector_store %arg6[%c0_183, %c0_184], %375 {strides = array<i32>} : memref<1x32xf32, #tpu.memory_space<vmem>>, vector<1x32xf32>,
    %c0_185 = arith.constant 0 : index
    %c0_186 = arith.constant 0 : index
    %379 = vector.load %arg5[%c0_185, %c0_186] : memref<1x32xf32, #tpu.memory_space<vmem>>, vector<1x32xf32>
    tpu.vector_store %arg5[%c0_185, %c0_186], %377 {strides = array<i32>} : memref<1x32xf32, #tpu.memory_space<vmem>>, vector<1x32xf32>,
    %c0_187 = arith.constant 0 : index
    %c9_188 = arith.constant 9 : index
    %c0_189 = arith.constant 0 : index
    %380 = vector.load %arg4[%c0_187, %c9_188, %c0_189] : memref<1x16x32xf32, #tpu.memory_space<vmem>>, vector<1x1x32xf32>
    %381 = vector.shape_cast %380 : vector<1x1x32xf32> to vector<1x32xf32>
    %382 = vector.shape_cast %377 : vector<1x32xf32> to vector<1x1x32xf32>
    tpu.vector_store %arg4[%c0_187, %c9_188, %c0_189], %382 {strides = array<i32>} : memref<1x16x32xf32, #tpu.memory_space<vmem>>, vector<1x1x32xf32>,
    %c0_190 = arith.constant 0 : index
    %c10 = arith.constant 10 : index
    %c0_191 = arith.constant 0 : index
    %383 = vector.load %arg2[%c0_190, %c10, %c0_191] : memref<1x16x128xf32, #tpu.memory_space<vmem>>, vector<1x1x128xf32>
    %384 = vector.shape_cast %383 : vector<1x1x128xf32> to vector<1x128xf32>
    %c0_192 = arith.constant 0 : index
    %c0_193 = arith.constant 0 : index
    %385 = vector.load %arg5[%c0_192, %c0_193] : memref<1x32xf32, #tpu.memory_space<vmem>>, vector<1x32xf32>
    %386 = arith.truncf %385 : vector<1x32xf32> to vector<1x32xbf16>
    %c0_194 = arith.constant 0 : index
    %c0_195 = arith.constant 0 : index
    %387 = vector.load %arg3[%c0_194, %c0_195] : memref<32x128xbf16, #tpu.memory_space<vmem>>, vector<32x128xbf16>
    %cst_196 = arith.constant dense<0.000000e+00> : vector<1x128xf32>
    %388 = tpu.matmul %386, %387, %cst_196 {dimension_numbers = #tpu.dot_dimension_numbers<[1], [0], [0], [1], [0, 0, 1, 1], [], []>} : vector<1x32xbf16>, vector<32x128xbf16>, vector<1x128xf32> -> vector<1x128xf32>
    %389 = arith.addf %384, %388 : vector<1x128xf32>
    %390 = vector.extract_strided_slice %389 {offsets = [0, 0], sizes = [1, 32], strides = [1, 1]} : vector<1x128xf32> to vector<1x32xf32>
    %391 = arith.negf %390 : vector<1x32xf32>
    %392 = math.exp %391 : vector<1x32xf32>
    %cst_197 = arith.constant 1.000000e+00 : f32
    %393 = vector.broadcast %cst_197 : f32 to vector<1x32xf32>
    %394 = arith.addf %393, %392 : vector<1x32xf32>
    %395 = arith.divf %393, %394 : vector<1x32xf32>
    %396 = vector.extract_strided_slice %389 {offsets = [0, 32], sizes = [1, 32], strides = [1, 1]} : vector<1x128xf32> to vector<1x32xf32>
    %397 = arith.negf %396 : vector<1x32xf32>
    %398 = math.exp %397 : vector<1x32xf32>
    %cst_198 = arith.constant 1.000000e+00 : f32
    %399 = vector.broadcast %cst_198 : f32 to vector<1x32xf32>
    %400 = arith.addf %399, %398 : vector<1x32xf32>
    %401 = arith.divf %399, %400 : vector<1x32xf32>
    %402 = vector.extract_strided_slice %389 {offsets = [0, 64], sizes = [1, 32], strides = [1, 1]} : vector<1x128xf32> to vector<1x32xf32>
    %403 = math.tanh %402 : vector<1x32xf32>
    %404 = vector.extract_strided_slice %389 {offsets = [0, 96], sizes = [1, 32], strides = [1, 1]} : vector<1x128xf32> to vector<1x32xf32>
    %405 = arith.negf %404 : vector<1x32xf32>
    %406 = math.exp %405 : vector<1x32xf32>
    %cst_199 = arith.constant 1.000000e+00 : f32
    %407 = vector.broadcast %cst_199 : f32 to vector<1x32xf32>
    %408 = arith.addf %407, %406 : vector<1x32xf32>
    %409 = arith.divf %407, %408 : vector<1x32xf32>
    %c0_200 = arith.constant 0 : index
    %c0_201 = arith.constant 0 : index
    %410 = vector.load %arg6[%c0_200, %c0_201] : memref<1x32xf32, #tpu.memory_space<vmem>>, vector<1x32xf32>
    %411 = arith.mulf %401, %410 : vector<1x32xf32>
    %412 = arith.mulf %395, %403 : vector<1x32xf32>
    %413 = arith.addf %411, %412 : vector<1x32xf32>
    %414 = math.tanh %413 : vector<1x32xf32>
    %415 = arith.mulf %409, %414 : vector<1x32xf32>
    %c0_202 = arith.constant 0 : index
    %c0_203 = arith.constant 0 : index
    %416 = vector.load %arg6[%c0_202, %c0_203] : memref<1x32xf32, #tpu.memory_space<vmem>>, vector<1x32xf32>
    tpu.vector_store %arg6[%c0_202, %c0_203], %413 {strides = array<i32>} : memref<1x32xf32, #tpu.memory_space<vmem>>, vector<1x32xf32>,
    %c0_204 = arith.constant 0 : index
    %c0_205 = arith.constant 0 : index
    %417 = vector.load %arg5[%c0_204, %c0_205] : memref<1x32xf32, #tpu.memory_space<vmem>>, vector<1x32xf32>
    tpu.vector_store %arg5[%c0_204, %c0_205], %415 {strides = array<i32>} : memref<1x32xf32, #tpu.memory_space<vmem>>, vector<1x32xf32>,
    %c0_206 = arith.constant 0 : index
    %c10_207 = arith.constant 10 : index
    %c0_208 = arith.constant 0 : index
    %418 = vector.load %arg4[%c0_206, %c10_207, %c0_208] : memref<1x16x32xf32, #tpu.memory_space<vmem>>, vector<1x1x32xf32>
    %419 = vector.shape_cast %418 : vector<1x1x32xf32> to vector<1x32xf32>
    %420 = vector.shape_cast %415 : vector<1x32xf32> to vector<1x1x32xf32>
    tpu.vector_store %arg4[%c0_206, %c10_207, %c0_208], %420 {strides = array<i32>} : memref<1x16x32xf32, #tpu.memory_space<vmem>>, vector<1x1x32xf32>,
    %c0_209 = arith.constant 0 : index
    %c11 = arith.constant 11 : index
    %c0_210 = arith.constant 0 : index
    %421 = vector.load %arg2[%c0_209, %c11, %c0_210] : memref<1x16x128xf32, #tpu.memory_space<vmem>>, vector<1x1x128xf32>
    %422 = vector.shape_cast %421 : vector<1x1x128xf32> to vector<1x128xf32>
    %c0_211 = arith.constant 0 : index
    %c0_212 = arith.constant 0 : index
    %423 = vector.load %arg5[%c0_211, %c0_212] : memref<1x32xf32, #tpu.memory_space<vmem>>, vector<1x32xf32>
    %424 = arith.truncf %423 : vector<1x32xf32> to vector<1x32xbf16>
    %c0_213 = arith.constant 0 : index
    %c0_214 = arith.constant 0 : index
    %425 = vector.load %arg3[%c0_213, %c0_214] : memref<32x128xbf16, #tpu.memory_space<vmem>>, vector<32x128xbf16>
    %cst_215 = arith.constant dense<0.000000e+00> : vector<1x128xf32>
    %426 = tpu.matmul %424, %425, %cst_215 {dimension_numbers = #tpu.dot_dimension_numbers<[1], [0], [0], [1], [0, 0, 1, 1], [], []>} : vector<1x32xbf16>, vector<32x128xbf16>, vector<1x128xf32> -> vector<1x128xf32>
    %427 = arith.addf %422, %426 : vector<1x128xf32>
    %428 = vector.extract_strided_slice %427 {offsets = [0, 0], sizes = [1, 32], strides = [1, 1]} : vector<1x128xf32> to vector<1x32xf32>
    %429 = arith.negf %428 : vector<1x32xf32>
    %430 = math.exp %429 : vector<1x32xf32>
    %cst_216 = arith.constant 1.000000e+00 : f32
    %431 = vector.broadcast %cst_216 : f32 to vector<1x32xf32>
    %432 = arith.addf %431, %430 : vector<1x32xf32>
    %433 = arith.divf %431, %432 : vector<1x32xf32>
    %434 = vector.extract_strided_slice %427 {offsets = [0, 32], sizes = [1, 32], strides = [1, 1]} : vector<1x128xf32> to vector<1x32xf32>
    %435 = arith.negf %434 : vector<1x32xf32>
    %436 = math.exp %435 : vector<1x32xf32>
    %cst_217 = arith.constant 1.000000e+00 : f32
    %437 = vector.broadcast %cst_217 : f32 to vector<1x32xf32>
    %438 = arith.addf %437, %436 : vector<1x32xf32>
    %439 = arith.divf %437, %438 : vector<1x32xf32>
    %440 = vector.extract_strided_slice %427 {offsets = [0, 64], sizes = [1, 32], strides = [1, 1]} : vector<1x128xf32> to vector<1x32xf32>
    %441 = math.tanh %440 : vector<1x32xf32>
    %442 = vector.extract_strided_slice %427 {offsets = [0, 96], sizes = [1, 32], strides = [1, 1]} : vector<1x128xf32> to vector<1x32xf32>
    %443 = arith.negf %442 : vector<1x32xf32>
    %444 = math.exp %443 : vector<1x32xf32>
    %cst_218 = arith.constant 1.000000e+00 : f32
    %445 = vector.broadcast %cst_218 : f32 to vector<1x32xf32>
    %446 = arith.addf %445, %444 : vector<1x32xf32>
    %447 = arith.divf %445, %446 : vector<1x32xf32>
    %c0_219 = arith.constant 0 : index
    %c0_220 = arith.constant 0 : index
    %448 = vector.load %arg6[%c0_219, %c0_220] : memref<1x32xf32, #tpu.memory_space<vmem>>, vector<1x32xf32>
    %449 = arith.mulf %439, %448 : vector<1x32xf32>
    %450 = arith.mulf %433, %441 : vector<1x32xf32>
    %451 = arith.addf %449, %450 : vector<1x32xf32>
    %452 = math.tanh %451 : vector<1x32xf32>
    %453 = arith.mulf %447, %452 : vector<1x32xf32>
    %c0_221 = arith.constant 0 : index
    %c0_222 = arith.constant 0 : index
    %454 = vector.load %arg6[%c0_221, %c0_222] : memref<1x32xf32, #tpu.memory_space<vmem>>, vector<1x32xf32>
    tpu.vector_store %arg6[%c0_221, %c0_222], %451 {strides = array<i32>} : memref<1x32xf32, #tpu.memory_space<vmem>>, vector<1x32xf32>,
    %c0_223 = arith.constant 0 : index
    %c0_224 = arith.constant 0 : index
    %455 = vector.load %arg5[%c0_223, %c0_224] : memref<1x32xf32, #tpu.memory_space<vmem>>, vector<1x32xf32>
    tpu.vector_store %arg5[%c0_223, %c0_224], %453 {strides = array<i32>} : memref<1x32xf32, #tpu.memory_space<vmem>>, vector<1x32xf32>,
    %c0_225 = arith.constant 0 : index
    %c11_226 = arith.constant 11 : index
    %c0_227 = arith.constant 0 : index
    %456 = vector.load %arg4[%c0_225, %c11_226, %c0_227] : memref<1x16x32xf32, #tpu.memory_space<vmem>>, vector<1x1x32xf32>
    %457 = vector.shape_cast %456 : vector<1x1x32xf32> to vector<1x32xf32>
    %458 = vector.shape_cast %453 : vector<1x32xf32> to vector<1x1x32xf32>
    tpu.vector_store %arg4[%c0_225, %c11_226, %c0_227], %458 {strides = array<i32>} : memref<1x16x32xf32, #tpu.memory_space<vmem>>, vector<1x1x32xf32>,
    %c0_228 = arith.constant 0 : index
    %c12 = arith.constant 12 : index
    %c0_229 = arith.constant 0 : index
    %459 = vector.load %arg2[%c0_228, %c12, %c0_229] : memref<1x16x128xf32, #tpu.memory_space<vmem>>, vector<1x1x128xf32>
    %460 = vector.shape_cast %459 : vector<1x1x128xf32> to vector<1x128xf32>
    %c0_230 = arith.constant 0 : index
    %c0_231 = arith.constant 0 : index
    %461 = vector.load %arg5[%c0_230, %c0_231] : memref<1x32xf32, #tpu.memory_space<vmem>>, vector<1x32xf32>
    %462 = arith.truncf %461 : vector<1x32xf32> to vector<1x32xbf16>
    %c0_232 = arith.constant 0 : index
    %c0_233 = arith.constant 0 : index
    %463 = vector.load %arg3[%c0_232, %c0_233] : memref<32x128xbf16, #tpu.memory_space<vmem>>, vector<32x128xbf16>
    %cst_234 = arith.constant dense<0.000000e+00> : vector<1x128xf32>
    %464 = tpu.matmul %462, %463, %cst_234 {dimension_numbers = #tpu.dot_dimension_numbers<[1], [0], [0], [1], [0, 0, 1, 1], [], []>} : vector<1x32xbf16>, vector<32x128xbf16>, vector<1x128xf32> -> vector<1x128xf32>
    %465 = arith.addf %460, %464 : vector<1x128xf32>
    %466 = vector.extract_strided_slice %465 {offsets = [0, 0], sizes = [1, 32], strides = [1, 1]} : vector<1x128xf32> to vector<1x32xf32>
    %467 = arith.negf %466 : vector<1x32xf32>
    %468 = math.exp %467 : vector<1x32xf32>
    %cst_235 = arith.constant 1.000000e+00 : f32
    %469 = vector.broadcast %cst_235 : f32 to vector<1x32xf32>
    %470 = arith.addf %469, %468 : vector<1x32xf32>
    %471 = arith.divf %469, %470 : vector<1x32xf32>
    %472 = vector.extract_strided_slice %465 {offsets = [0, 32], sizes = [1, 32], strides = [1, 1]} : vector<1x128xf32> to vector<1x32xf32>
    %473 = arith.negf %472 : vector<1x32xf32>
    %474 = math.exp %473 : vector<1x32xf32>
    %cst_236 = arith.constant 1.000000e+00 : f32
    %475 = vector.broadcast %cst_236 : f32 to vector<1x32xf32>
    %476 = arith.addf %475, %474 : vector<1x32xf32>
    %477 = arith.divf %475, %476 : vector<1x32xf32>
    %478 = vector.extract_strided_slice %465 {offsets = [0, 64], sizes = [1, 32], strides = [1, 1]} : vector<1x128xf32> to vector<1x32xf32>
    %479 = math.tanh %478 : vector<1x32xf32>
    %480 = vector.extract_strided_slice %465 {offsets = [0, 96], sizes = [1, 32], strides = [1, 1]} : vector<1x128xf32> to vector<1x32xf32>
    %481 = arith.negf %480 : vector<1x32xf32>
    %482 = math.exp %481 : vector<1x32xf32>
    %cst_237 = arith.constant 1.000000e+00 : f32
    %483 = vector.broadcast %cst_237 : f32 to vector<1x32xf32>
    %484 = arith.addf %483, %482 : vector<1x32xf32>
    %485 = arith.divf %483, %484 : vector<1x32xf32>
    %c0_238 = arith.constant 0 : index
    %c0_239 = arith.constant 0 : index
    %486 = vector.load %arg6[%c0_238, %c0_239] : memref<1x32xf32, #tpu.memory_space<vmem>>, vector<1x32xf32>
    %487 = arith.mulf %477, %486 : vector<1x32xf32>
    %488 = arith.mulf %471, %479 : vector<1x32xf32>
    %489 = arith.addf %487, %488 : vector<1x32xf32>
    %490 = math.tanh %489 : vector<1x32xf32>
    %491 = arith.mulf %485, %490 : vector<1x32xf32>
    %c0_240 = arith.constant 0 : index
    %c0_241 = arith.constant 0 : index
    %492 = vector.load %arg6[%c0_240, %c0_241] : memref<1x32xf32, #tpu.memory_space<vmem>>, vector<1x32xf32>
    tpu.vector_store %arg6[%c0_240, %c0_241], %489 {strides = array<i32>} : memref<1x32xf32, #tpu.memory_space<vmem>>, vector<1x32xf32>,
    %c0_242 = arith.constant 0 : index
    %c0_243 = arith.constant 0 : index
    %493 = vector.load %arg5[%c0_242, %c0_243] : memref<1x32xf32, #tpu.memory_space<vmem>>, vector<1x32xf32>
    tpu.vector_store %arg5[%c0_242, %c0_243], %491 {strides = array<i32>} : memref<1x32xf32, #tpu.memory_space<vmem>>, vector<1x32xf32>,
    %c0_244 = arith.constant 0 : index
    %c12_245 = arith.constant 12 : index
    %c0_246 = arith.constant 0 : index
    %494 = vector.load %arg4[%c0_244, %c12_245, %c0_246] : memref<1x16x32xf32, #tpu.memory_space<vmem>>, vector<1x1x32xf32>
    %495 = vector.shape_cast %494 : vector<1x1x32xf32> to vector<1x32xf32>
    %496 = vector.shape_cast %491 : vector<1x32xf32> to vector<1x1x32xf32>
    tpu.vector_store %arg4[%c0_244, %c12_245, %c0_246], %496 {strides = array<i32>} : memref<1x16x32xf32, #tpu.memory_space<vmem>>, vector<1x1x32xf32>,
    %c0_247 = arith.constant 0 : index
    %c13 = arith.constant 13 : index
    %c0_248 = arith.constant 0 : index
    %497 = vector.load %arg2[%c0_247, %c13, %c0_248] : memref<1x16x128xf32, #tpu.memory_space<vmem>>, vector<1x1x128xf32>
    %498 = vector.shape_cast %497 : vector<1x1x128xf32> to vector<1x128xf32>
    %c0_249 = arith.constant 0 : index
    %c0_250 = arith.constant 0 : index
    %499 = vector.load %arg5[%c0_249, %c0_250] : memref<1x32xf32, #tpu.memory_space<vmem>>, vector<1x32xf32>
    %500 = arith.truncf %499 : vector<1x32xf32> to vector<1x32xbf16>
    %c0_251 = arith.constant 0 : index
    %c0_252 = arith.constant 0 : index
    %501 = vector.load %arg3[%c0_251, %c0_252] : memref<32x128xbf16, #tpu.memory_space<vmem>>, vector<32x128xbf16>
    %cst_253 = arith.constant dense<0.000000e+00> : vector<1x128xf32>
    %502 = tpu.matmul %500, %501, %cst_253 {dimension_numbers = #tpu.dot_dimension_numbers<[1], [0], [0], [1], [0, 0, 1, 1], [], []>} : vector<1x32xbf16>, vector<32x128xbf16>, vector<1x128xf32> -> vector<1x128xf32>
    %503 = arith.addf %498, %502 : vector<1x128xf32>
    %504 = vector.extract_strided_slice %503 {offsets = [0, 0], sizes = [1, 32], strides = [1, 1]} : vector<1x128xf32> to vector<1x32xf32>
    %505 = arith.negf %504 : vector<1x32xf32>
    %506 = math.exp %505 : vector<1x32xf32>
    %cst_254 = arith.constant 1.000000e+00 : f32
    %507 = vector.broadcast %cst_254 : f32 to vector<1x32xf32>
    %508 = arith.addf %507, %506 : vector<1x32xf32>
    %509 = arith.divf %507, %508 : vector<1x32xf32>
    %510 = vector.extract_strided_slice %503 {offsets = [0, 32], sizes = [1, 32], strides = [1, 1]} : vector<1x128xf32> to vector<1x32xf32>
    %511 = arith.negf %510 : vector<1x32xf32>
    %512 = math.exp %511 : vector<1x32xf32>
    %cst_255 = arith.constant 1.000000e+00 : f32
    %513 = vector.broadcast %cst_255 : f32 to vector<1x32xf32>
    %514 = arith.addf %513, %512 : vector<1x32xf32>
    %515 = arith.divf %513, %514 : vector<1x32xf32>
    %516 = vector.extract_strided_slice %503 {offsets = [0, 64], sizes = [1, 32], strides = [1, 1]} : vector<1x128xf32> to vector<1x32xf32>
    %517 = math.tanh %516 : vector<1x32xf32>
    %518 = vector.extract_strided_slice %503 {offsets = [0, 96], sizes = [1, 32], strides = [1, 1]} : vector<1x128xf32> to vector<1x32xf32>
    %519 = arith.negf %518 : vector<1x32xf32>
    %520 = math.exp %519 : vector<1x32xf32>
    %cst_256 = arith.constant 1.000000e+00 : f32
    %521 = vector.broadcast %cst_256 : f32 to vector<1x32xf32>
    %522 = arith.addf %521, %520 : vector<1x32xf32>
    %523 = arith.divf %521, %522 : vector<1x32xf32>
    %c0_257 = arith.constant 0 : index
    %c0_258 = arith.constant 0 : index
    %524 = vector.load %arg6[%c0_257, %c0_258] : memref<1x32xf32, #tpu.memory_space<vmem>>, vector<1x32xf32>
    %525 = arith.mulf %515, %524 : vector<1x32xf32>
    %526 = arith.mulf %509, %517 : vector<1x32xf32>
    %527 = arith.addf %525, %526 : vector<1x32xf32>
    %528 = math.tanh %527 : vector<1x32xf32>
    %529 = arith.mulf %523, %528 : vector<1x32xf32>
    %c0_259 = arith.constant 0 : index
    %c0_260 = arith.constant 0 : index
    %530 = vector.load %arg6[%c0_259, %c0_260] : memref<1x32xf32, #tpu.memory_space<vmem>>, vector<1x32xf32>
    tpu.vector_store %arg6[%c0_259, %c0_260], %527 {strides = array<i32>} : memref<1x32xf32, #tpu.memory_space<vmem>>, vector<1x32xf32>,
    %c0_261 = arith.constant 0 : index
    %c0_262 = arith.constant 0 : index
    %531 = vector.load %arg5[%c0_261, %c0_262] : memref<1x32xf32, #tpu.memory_space<vmem>>, vector<1x32xf32>
    tpu.vector_store %arg5[%c0_261, %c0_262], %529 {strides = array<i32>} : memref<1x32xf32, #tpu.memory_space<vmem>>, vector<1x32xf32>,
    %c0_263 = arith.constant 0 : index
    %c13_264 = arith.constant 13 : index
    %c0_265 = arith.constant 0 : index
    %532 = vector.load %arg4[%c0_263, %c13_264, %c0_265] : memref<1x16x32xf32, #tpu.memory_space<vmem>>, vector<1x1x32xf32>
    %533 = vector.shape_cast %532 : vector<1x1x32xf32> to vector<1x32xf32>
    %534 = vector.shape_cast %529 : vector<1x32xf32> to vector<1x1x32xf32>
    tpu.vector_store %arg4[%c0_263, %c13_264, %c0_265], %534 {strides = array<i32>} : memref<1x16x32xf32, #tpu.memory_space<vmem>>, vector<1x1x32xf32>,
    %c0_266 = arith.constant 0 : index
    %c14 = arith.constant 14 : index
    %c0_267 = arith.constant 0 : index
    %535 = vector.load %arg2[%c0_266, %c14, %c0_267] : memref<1x16x128xf32, #tpu.memory_space<vmem>>, vector<1x1x128xf32>
    %536 = vector.shape_cast %535 : vector<1x1x128xf32> to vector<1x128xf32>
    %c0_268 = arith.constant 0 : index
    %c0_269 = arith.constant 0 : index
    %537 = vector.load %arg5[%c0_268, %c0_269] : memref<1x32xf32, #tpu.memory_space<vmem>>, vector<1x32xf32>
    %538 = arith.truncf %537 : vector<1x32xf32> to vector<1x32xbf16>
    %c0_270 = arith.constant 0 : index
    %c0_271 = arith.constant 0 : index
    %539 = vector.load %arg3[%c0_270, %c0_271] : memref<32x128xbf16, #tpu.memory_space<vmem>>, vector<32x128xbf16>
    %cst_272 = arith.constant dense<0.000000e+00> : vector<1x128xf32>
    %540 = tpu.matmul %538, %539, %cst_272 {dimension_numbers = #tpu.dot_dimension_numbers<[1], [0], [0], [1], [0, 0, 1, 1], [], []>} : vector<1x32xbf16>, vector<32x128xbf16>, vector<1x128xf32> -> vector<1x128xf32>
    %541 = arith.addf %536, %540 : vector<1x128xf32>
    %542 = vector.extract_strided_slice %541 {offsets = [0, 0], sizes = [1, 32], strides = [1, 1]} : vector<1x128xf32> to vector<1x32xf32>
    %543 = arith.negf %542 : vector<1x32xf32>
    %544 = math.exp %543 : vector<1x32xf32>
    %cst_273 = arith.constant 1.000000e+00 : f32
    %545 = vector.broadcast %cst_273 : f32 to vector<1x32xf32>
    %546 = arith.addf %545, %544 : vector<1x32xf32>
    %547 = arith.divf %545, %546 : vector<1x32xf32>
    %548 = vector.extract_strided_slice %541 {offsets = [0, 32], sizes = [1, 32], strides = [1, 1]} : vector<1x128xf32> to vector<1x32xf32>
    %549 = arith.negf %548 : vector<1x32xf32>
    %550 = math.exp %549 : vector<1x32xf32>
    %cst_274 = arith.constant 1.000000e+00 : f32
    %551 = vector.broadcast %cst_274 : f32 to vector<1x32xf32>
    %552 = arith.addf %551, %550 : vector<1x32xf32>
    %553 = arith.divf %551, %552 : vector<1x32xf32>
    %554 = vector.extract_strided_slice %541 {offsets = [0, 64], sizes = [1, 32], strides = [1, 1]} : vector<1x128xf32> to vector<1x32xf32>
    %555 = math.tanh %554 : vector<1x32xf32>
    %556 = vector.extract_strided_slice %541 {offsets = [0, 96], sizes = [1, 32], strides = [1, 1]} : vector<1x128xf32> to vector<1x32xf32>
    %557 = arith.negf %556 : vector<1x32xf32>
    %558 = math.exp %557 : vector<1x32xf32>
    %cst_275 = arith.constant 1.000000e+00 : f32
    %559 = vector.broadcast %cst_275 : f32 to vector<1x32xf32>
    %560 = arith.addf %559, %558 : vector<1x32xf32>
    %561 = arith.divf %559, %560 : vector<1x32xf32>
    %c0_276 = arith.constant 0 : index
    %c0_277 = arith.constant 0 : index
    %562 = vector.load %arg6[%c0_276, %c0_277] : memref<1x32xf32, #tpu.memory_space<vmem>>, vector<1x32xf32>
    %563 = arith.mulf %553, %562 : vector<1x32xf32>
    %564 = arith.mulf %547, %555 : vector<1x32xf32>
    %565 = arith.addf %563, %564 : vector<1x32xf32>
    %566 = math.tanh %565 : vector<1x32xf32>
    %567 = arith.mulf %561, %566 : vector<1x32xf32>
    %c0_278 = arith.constant 0 : index
    %c0_279 = arith.constant 0 : index
    %568 = vector.load %arg6[%c0_278, %c0_279] : memref<1x32xf32, #tpu.memory_space<vmem>>, vector<1x32xf32>
    tpu.vector_store %arg6[%c0_278, %c0_279], %565 {strides = array<i32>} : memref<1x32xf32, #tpu.memory_space<vmem>>, vector<1x32xf32>,
    %c0_280 = arith.constant 0 : index
    %c0_281 = arith.constant 0 : index
    %569 = vector.load %arg5[%c0_280, %c0_281] : memref<1x32xf32, #tpu.memory_space<vmem>>, vector<1x32xf32>
    tpu.vector_store %arg5[%c0_280, %c0_281], %567 {strides = array<i32>} : memref<1x32xf32, #tpu.memory_space<vmem>>, vector<1x32xf32>,
    %c0_282 = arith.constant 0 : index
    %c14_283 = arith.constant 14 : index
    %c0_284 = arith.constant 0 : index
    %570 = vector.load %arg4[%c0_282, %c14_283, %c0_284] : memref<1x16x32xf32, #tpu.memory_space<vmem>>, vector<1x1x32xf32>
    %571 = vector.shape_cast %570 : vector<1x1x32xf32> to vector<1x32xf32>
    %572 = vector.shape_cast %567 : vector<1x32xf32> to vector<1x1x32xf32>
    tpu.vector_store %arg4[%c0_282, %c14_283, %c0_284], %572 {strides = array<i32>} : memref<1x16x32xf32, #tpu.memory_space<vmem>>, vector<1x1x32xf32>,
    %c0_285 = arith.constant 0 : index
    %c15 = arith.constant 15 : index
    %c0_286 = arith.constant 0 : index
    %573 = vector.load %arg2[%c0_285, %c15, %c0_286] : memref<1x16x128xf32, #tpu.memory_space<vmem>>, vector<1x1x128xf32>
    %574 = vector.shape_cast %573 : vector<1x1x128xf32> to vector<1x128xf32>
    %c0_287 = arith.constant 0 : index
    %c0_288 = arith.constant 0 : index
    %575 = vector.load %arg5[%c0_287, %c0_288] : memref<1x32xf32, #tpu.memory_space<vmem>>, vector<1x32xf32>
    %576 = arith.truncf %575 : vector<1x32xf32> to vector<1x32xbf16>
    %c0_289 = arith.constant 0 : index
    %c0_290 = arith.constant 0 : index
    %577 = vector.load %arg3[%c0_289, %c0_290] : memref<32x128xbf16, #tpu.memory_space<vmem>>, vector<32x128xbf16>
    %cst_291 = arith.constant dense<0.000000e+00> : vector<1x128xf32>
    %578 = tpu.matmul %576, %577, %cst_291 {dimension_numbers = #tpu.dot_dimension_numbers<[1], [0], [0], [1], [0, 0, 1, 1], [], []>} : vector<1x32xbf16>, vector<32x128xbf16>, vector<1x128xf32> -> vector<1x128xf32>
    %579 = arith.addf %574, %578 : vector<1x128xf32>
    %580 = vector.extract_strided_slice %579 {offsets = [0, 0], sizes = [1, 32], strides = [1, 1]} : vector<1x128xf32> to vector<1x32xf32>
    %581 = arith.negf %580 : vector<1x32xf32>
    %582 = math.exp %581 : vector<1x32xf32>
    %cst_292 = arith.constant 1.000000e+00 : f32
    %583 = vector.broadcast %cst_292 : f32 to vector<1x32xf32>
    %584 = arith.addf %583, %582 : vector<1x32xf32>
    %585 = arith.divf %583, %584 : vector<1x32xf32>
    %586 = vector.extract_strided_slice %579 {offsets = [0, 32], sizes = [1, 32], strides = [1, 1]} : vector<1x128xf32> to vector<1x32xf32>
    %587 = arith.negf %586 : vector<1x32xf32>
    %588 = math.exp %587 : vector<1x32xf32>
    %cst_293 = arith.constant 1.000000e+00 : f32
    %589 = vector.broadcast %cst_293 : f32 to vector<1x32xf32>
    %590 = arith.addf %589, %588 : vector<1x32xf32>
    %591 = arith.divf %589, %590 : vector<1x32xf32>
    %592 = vector.extract_strided_slice %579 {offsets = [0, 64], sizes = [1, 32], strides = [1, 1]} : vector<1x128xf32> to vector<1x32xf32>
    %593 = math.tanh %592 : vector<1x32xf32>
    %594 = vector.extract_strided_slice %579 {offsets = [0, 96], sizes = [1, 32], strides = [1, 1]} : vector<1x128xf32> to vector<1x32xf32>
    %595 = arith.negf %594 : vector<1x32xf32>
    %596 = math.exp %595 : vector<1x32xf32>
    %cst_294 = arith.constant 1.000000e+00 : f32
    %597 = vector.broadcast %cst_294 : f32 to vector<1x32xf32>
    %598 = arith.addf %597, %596 : vector<1x32xf32>
    %599 = arith.divf %597, %598 : vector<1x32xf32>
    %c0_295 = arith.constant 0 : index
    %c0_296 = arith.constant 0 : index
    %600 = vector.load %arg6[%c0_295, %c0_296] : memref<1x32xf32, #tpu.memory_space<vmem>>, vector<1x32xf32>
    %601 = arith.mulf %591, %600 : vector<1x32xf32>
    %602 = arith.mulf %585, %593 : vector<1x32xf32>
    %603 = arith.addf %601, %602 : vector<1x32xf32>
    %604 = math.tanh %603 : vector<1x32xf32>
    %605 = arith.mulf %599, %604 : vector<1x32xf32>
    %c0_297 = arith.constant 0 : index
    %c0_298 = arith.constant 0 : index
    %606 = vector.load %arg6[%c0_297, %c0_298] : memref<1x32xf32, #tpu.memory_space<vmem>>, vector<1x32xf32>
    tpu.vector_store %arg6[%c0_297, %c0_298], %603 {strides = array<i32>} : memref<1x32xf32, #tpu.memory_space<vmem>>, vector<1x32xf32>,
    %c0_299 = arith.constant 0 : index
    %c0_300 = arith.constant 0 : index
    %607 = vector.load %arg5[%c0_299, %c0_300] : memref<1x32xf32, #tpu.memory_space<vmem>>, vector<1x32xf32>
    tpu.vector_store %arg5[%c0_299, %c0_300], %605 {strides = array<i32>} : memref<1x32xf32, #tpu.memory_space<vmem>>, vector<1x32xf32>,
    %c0_301 = arith.constant 0 : index
    %c15_302 = arith.constant 15 : index
    %c0_303 = arith.constant 0 : index
    %608 = vector.load %arg4[%c0_301, %c15_302, %c0_303] : memref<1x16x32xf32, #tpu.memory_space<vmem>>, vector<1x1x32xf32>
    %609 = vector.shape_cast %608 : vector<1x1x32xf32> to vector<1x32xf32>
    %610 = vector.shape_cast %605 : vector<1x32xf32> to vector<1x1x32xf32>
    tpu.vector_store %arg4[%c0_301, %c15_302, %c0_303], %610 {strides = array<i32>} : memref<1x16x32xf32, #tpu.memory_space<vmem>>, vector<1x1x32xf32>,
    return
  }
  func.func @transform_0(%arg0: i32, %arg1: i32) -> (i32, i32, i32) {
    %c0_i32 = arith.constant 0 : i32
    %c0_i32_0 = arith.constant 0 : i32
    return %arg0, %arg1, %c0_i32 : i32, i32, i32
  }
  func.func @transform_1(%arg0: i32, %arg1: i32) -> (i32, i32) {
    %c0_i32 = arith.constant 0 : i32
    %c0_i32_0 = arith.constant 0 : i32
    %c0_i32_1 = arith.constant 0 : i32
    return %c0_i32, %c0_i32_0 : i32, i32
  }
  func.func @transform_2(%arg0: i32, %arg1: i32) -> (i32, i32, i32) {
    %c0_i32 = arith.constant 0 : i32
    %c0_i32_0 = arith.constant 0 : i32
    return %arg0, %arg1, %c0_i32 : i32, i32, i32
  }
}

</mosaic_0001>

<bundles_post_ra>
// kernel: wd_gcn_forward.2
= control target key start
LH: loop header
LB: loop body
LE: loop exit
PB: predicated region body
PF: predicated region fallthrough
CT: control target
= control target key end

     0   :  { %s810_s21 = smov 0   ;;  %s812_s22 = smov 0   ;;  %s870_s0 = inlined_call_operand.vmem [shape: bf16[2,16,16], index: 0, kind: input, shape index: {}]   ;;  %s871_s1 = inlined_call_operand.vmem [shape: bf16[2,16,8], index: 1, kind: input, shape index: {}]   ;;  %s872_s2 = inlined_call_operand.vmem [shape: bf16[8,32], index: 2, kind: input, shape index: {}]   ;;  %s873_s3 = inlined_call_operand.vmem [shape: f32[1,32], index: 3, kind: input, shape index: {}]   ;;  %s874_s4 = inlined_call_operand.vmem [shape: bf16[32,128], index: 4, kind: input, shape index: {}]   ;;  %s875_s5 = inlined_call_operand.vmem [shape: f32[1,128], index: 5, kind: input, shape index: {}]   ;;  %s876_s6 = inlined_call_operand.vmem [shape: f32[2,16,128], index: 6, kind: output, shape index: {}]  }
   0x1   :  { %s814_s23 = smov 0  }
   0x2 LB: > { %s35_s24 = sadd.s32 1, %s767_s22  ;;  %p671_p0 = scmp.ge.s32.totalorder %s771_s23, 1  ;;  %s771_s23 = sphi %s814_s23, %s16_s23   ;;  %s767_s22 = sphi %s812_s22, %s878_s22   ;;  %s763_s21 = sphi %s810_s21, %s877_s21  }
   0x3   : > { %p37_p1 = scmp.ge.s32.totalorder %s35_s24, 2  ;;  %p262_p2 = scmp.lt.s32.totalorder %s771_s23, 3 }
   0x5   : > { %s880_s24 = smov (%p37_p1, %s35_s24), 0  ;;  %p263_p3 = pnand %p671_p0, %p262_p2 }
   0x6   : > { %v355_v0 = vld [vmem:[%s872_s2] sm:$0xf] (!%p263_p3)  ;;  %vm365_vm0 = vcmask (!%p263_p3), 1043456   ;;  %p313_p4 = scmp.lt.s32.totalorder (!%p263_p3), %s763_s21, 1  ;;  %v773_v1 = vmov (!%p263_p3), 0.0   ;;  %vm774_vm1 = vmmov (!%p263_p3), 0  }
   0x7   : > { %266 = sbr.rel (%p263_p3) target bundleno = 684 (0x2ac), region = 44  ;;  %699 = vmatprep.subr.bf16.mxu0 (!%p263_p3), %v773_v1  ;;  %v367_v2 = vsel (!%p263_p3), %vm365_vm0, %v355_v0, 0  ;;  %701 = vmatprep.mubr.msk.bf16.mxu0 (!%p263_p3), %vm774_vm1, %v773_v1  ;;  %vm361_vm2 = vcmask (!%p263_p3), 64512   ;;  %vm350_vm3 = vcmask (!%p263_p3), 261120   ;;  %vm420_vm4 = vcmask (!%p263_p3), 130048   ;;  %v747_v10 = vld [vmem:[%s874_s4] sm:$0xff] (!%p263_p3)  }
   0x8   : > { %700 = vmatpush3.bf16.msra.mxu0 (!%p263_p3), %v367_v2  ;;  %705 = vmatprep.subr.bf16.mxu1 (!%p263_p3), %v773_v1  ;;  %351 = vst.msk [vmem:[#allocation2] sm:$0xff] (!%p263_p3), %vm350_vm3, %v773_v1  ;;  %352 = vst.msk [vmem:[#allocation2 + $0x8] sm:$0xff] (!%p263_p3), %vm350_vm3, %v773_v1  ;;  %v748_v11 = vld [vmem:[%s874_s4 + $0x8] sm:$0xff] (!%p263_p3)   ;;  %v682_v20 = vld [vmem:[%s873_s3] ss:$0 sm:$0xff] (!%p263_p3) }
   0x9   : > { %707 = vmatprep.mubr.msk.bf16.mxu1 (!%p263_p3), %vm774_vm1, %v773_v1  ;;  %711 = vmatprep.subr.bf16.mxu0 (!%p263_p3), %v773_v1  ;;  %v683_v28 = vld [vmem:[%s875_s5] ss:$0 sm:$0xff] (!%p263_p3) }
   0xe   : > { %s882_s21 = smov (!%p313_p4, %s763_s21), 1 }
   0xf   : > { %s689_s27 = sshll.u32 %s882_s21, 3  ;;  %v411_v12 = vld [vmem:[#allocation2] sm:$0xff]  ;;  %v412_v14 = vld [vmem:[#allocation2 + $0x8] sm:$0xff]  ;;  %s691_s16 = sshll.u32 %s882_s21, 4 }
  0x10   : > { %s333_s30 = scalar_lea.vmem %s871_s1, %s689_s27  ;;  %s323_s9 = scalar_lea.vmem %s870_s0, %s689_s27 }
  0x11   : > { %v745_v3 = vld [vmem:[%s333_s30] sm:$0xff]   ;;  %s343_s25 = scalar_lea.vmem %s876_s6, %s691_s16 }
  0x12   : > { %702 = vmatmul.mubr.msk.bf16.vlgmr.msra.gmra.mrb[0].mxu0 %vm361_vm2, %v745_v3  ;;  %v746_v9 = vld [vmem:[%s323_s9] sm:$0xff]  }
  0x13   : > { %715 = vmatprep.mubr.msk.bf16.mxu0 %vm774_vm1, %v773_v1  ;;  %712 = vmatpush3.bf16.msra.mxu0 %v747_v10 }
  0x14   : > { %713 = vmatprep.subr.bf16.mxu0 %v773_v1 }
  0x17   : > { %714 = vmatpush3.bf16.msra.mxu0 %v748_v11 }
  0xe5   : > { %v403_v4 = vpop.f32.mrb[0].mxu0 }
  0xe6   : > { %v703_v5 = vpop.f32.mrb[1].mxu0 }
  0xe7   : > { %v406_v6 = vpop.f32.mrb[2].mxu0 }
  0xe8   : > { %v410_v7 = vpack.c.bf16 %v406_v6, %v403_v4  ;;  %v704_v8 = vpop.f32.mrb[3].mxu0 }
  0xea   : > { %706 = vmatpush3.bf16.msra.mxu1 %v410_v7 }
  0xed   : > { %708 = vmatmul.mubr.msk.bf16.vlgmr.msra.gmra.mrb[0].mxu1 %vm420_vm4, %v746_v9 }
 0x1c0   : > { %v458_v13 = vpop.f32.mrb[0].mxu1 }
 0x1c1   : > { %v465_v15 = vadd.f32 %v458_v13, %v411_v12  ;;  %v709_v16 = vpop.f32.mrb[1].mxu1 }
 0x1c2   : > { %v461_v17 = vpop.f32.mrb[2].mxu1 }
 0x1c3   : > { %468 = vst.msk [vmem:[#allocation2] sm:$0xff] %vm350_vm3, %v465_v15  ;;  %v466_v18 = vadd.f32 %v461_v17, %v412_v14  ;;  %v710_v19 = vpop.f32.mrb[3].mxu1 }
 0x1c5   : > { %469 = vst.msk [vmem:[#allocation2 + $0x8] sm:$0xff] %vm350_vm3, %v466_v18 }
 0x1ca   : > { %v473_v21 = vld [vmem:[#allocation2] sm:$0xff] }
 0x1cb   : > { %v482_v22 = vadd.f32 %v682_v20, %v473_v21 }
 0x1cc   : > { %v474_v23 = vld [vmem:[#allocation2 + $0x8] sm:$0xff] }
 0x1cd   : > { %v483_v24 = vadd.f32 %v682_v20, %v474_v23  ;;  %v484_v25 = vmax.f32 %v482_v22, 0.0 }
 0x1cf   : > { %v485_v26 = vmax.f32 %v483_v24, 0.0 }
 0x1d1   : > { %v486_v27 = vpack.c.bf16 %v485_v26, %v484_v25 }
 0x1d3   : > { %716 = vmatmul.mubr.msk.bf16.vlgmr.msra.gmra.mrb[4].mxu0 %vm350_vm3, %v486_v27 }
 0x2a6   : > { %v547_v29 = vpop.f32.mrb[4].mxu0 }
 0x2a7   : > { %v548_v30 = vadd.f32 %v683_v28, %v547_v29  ;;  %v717_v31 = vpop.f32.mrb[5].mxu0 }
 0x2a8   : > { %v550_v32 = vpop.f32.mrb[6].mxu0 }
 0x2a9   : > { %554 = vst [vmem:[%s343_s25] sm:$0xff] %v548_v30  ;;  %v551_v33 = vadd.f32 %v683_v28, %v550_v32  ;;  %v718_v34 = vpop.f32.mrb[7].mxu0 }
 0x2ab   : > { %555 = vst [vmem:[%s343_s25 + $0x8] sm:$0xff] %v551_v33 }
 0x2ac PF: > { %s16_s23 = sadd.s32 1, %s771_s23   ;;  %s877_s21 = smov %s767_s22 }
 0x2ad   : > { %p13_p5 = scmp.ge.s32.totalorder %s16_s23, 4   ;;  %s878_s22 = smov %s880_s24 }
 0x2af   :  { %15 = sbr.rel (!%p13_p5) target bundleno = 2 (0x2), region = 85 }

// kernel: wd_gcn_forward.3
= control target key start
LH: loop header
LB: loop body
LE: loop exit
PB: predicated region body
PF: predicated region fallthrough
CT: control target
= control target key end

     0   :  { %7 = vsyncpa [#allocation5], 0  ;;  %s3066_s0 = inlined_call_operand.vmem [shape: f32[2,16,128], index: 0, kind: input, shape index: {}]   ;;  %s3067_s1 = inlined_call_operand.vmem [shape: bf16[32,128], index: 1, kind: input, shape index: {}]   ;;  %s3068_s2 = inlined_call_operand.hbm [shape: f32[2,16,32], index: 2, kind: output, shape index: {}]  }
   0x1   :  { %9 = vsyncpa [#allocation5 + $0x1], 0  ;;  %s2586_s9 = smov 0   ;;  %s2588_s10 = smov 0  }
   0x2   :  { %s2590_s11 = smov 0   ;;  %s2592_s12 = smov 0  }
   0x3   :  { %s2594_s13 = smov 0   ;;  %s2596_s14 = smov 0  }
   0x4 LB: > { %s1990_s15 = sadd.s32 4294967295, %s2561_s14   ;;  %s1991_s16 = sadd.s32 4294967294, %s2561_s14   ;;  %s2561_s14 = sphi %s2596_s14, %s15_s14   ;;  %s2557_s13 = sphi %s2594_s13, %s3075_s13   ;;  %s2553_s12 = sphi %s2592_s12, %s3074_s12   ;;  %s2549_s11 = sphi %s2590_s11, %s3073_s11   ;;  %s2545_s10 = sphi %s2588_s10, %s3072_s10   ;;  %s2541_s9 = sphi %s2586_s9, %s3071_s9  }
   0x5   : > { %s27_s17 = sadd.s32 1, %s2557_s13  ;;  %s85_s18 = sadd.s32 1, %s2549_s11 }
   0x6   : > { %p29_p0 = scmp.ge.s32.totalorder %s27_s17, 2  ;;  %p95_p1 = scmp.ne.s32.totalorder %s2549_s11, %s2545_s10 }
   0x7   : > { %p96_p2 = scmp.eq.s32.totalorder %s1990_s15, 1  ;;  %p101_p3 = scmp.ne.s32.totalorder %s2545_s10, %s2541_s9 }
   0x8   : > { %s3077_s17 = smov (%p29_p0, %s27_s17), 0  ;;  %p102_p5 = scmp.eq.s32.totalorder %s1991_s16, 1 }
   0x9   : > { %p2626_p4 = por %p96_p2, %p95_p1  ;;  %s80_s20 = ssub.s32 %s2557_s13, %s3077_s17 }
   0xa   : > { %p1994_p6 = scmp.ge.s32.totalorder %s2561_s14, 1  ;;  %p83_p7 = scmp.eq.s32.totalorder %s80_s20, 0 }
   0xb   : > { %p2633_p8 = por %p102_p5, %p101_p3  ;;  %p136_p9 = scmp.lt.s32.totalorder %s2561_s14, 3 }
   0xc   : > { %s2639_s22 = scalar_select %p83_p7, %s2549_s11, %s85_s18  }
   0xd   : > { %p137_p10 = pnand %p1994_p6, %p136_p9 }
   0xe   : > { %v2323_v0 = vld [vmem:[%s3067_s1] sm:$0xff] (!%p137_p10)   ;;  %v2563_v1 = vmov (!%p137_p10), 0.0   ;;  %v2324_v2 = vld [vmem:[%s3067_s1 + $0x8] sm:$0xff] (!%p137_p10)   ;;  %vm2564_vm0 = vmmov (!%p137_p10), 0   ;;  %vm178_vm1 = vcmask (!%p137_p10), 253952   ;;  %vm200_vm2 = vcmask (!%p137_p10), 261120  }
   0xf   : > { %140 = sbr.rel (%p137_p10) target bundleno = 11422 (0x2c9e), region = 28  ;;  %2133 = vmatprep.subr.bf16.mxu0 (!%p137_p10), %v2563_v1  ;;  %2141 = vmatprep.subr.bf16.mxu1 (!%p137_p10), %v2563_v1  ;;  %179 = vst.msk [vmem:[#allocation2] sm:$0x1] (!%p137_p10), %vm178_vm1, %v2563_v1  ;;  %180 = vst.msk [vmem:[#allocation3] sm:$0x1] (!%p137_p10), %vm178_vm1, %v2563_v1  ;;  %p163_p11 = scmp.lt.s32.totalorder (!%p137_p10), %s2553_s12, 1 }
  0x10   : > { %2134 = vmatpush3.bf16.msra.mxu0 (!%p137_p10), %v2323_v0  ;;  %2137 = vmatprep.mubr.msk.bf16.mxu0 (!%p137_p10), %vm2564_vm0, %v2563_v1  ;;  %s2565_s4 = smov (!%p137_p10), 64   ;;  %s2566_s5 = smov (!%p137_p10), 32   ;;  %v2325_v24 = vld [vmem:[%s3067_s1] sm:$0xff] (!%p137_p10)   ;;  %v2326_v25 = vld [vmem:[%s3067_s1 + $0x8] sm:$0xff] (!%p137_p10)  }
  0x11   : > { %2135 = vmatprep.subr.bf16.mxu0 (!%p137_p10), %v2563_v1  ;;  %2145 = vmatprep.mubr.msk.bf16.mxu1 (!%p137_p10), %vm2564_vm0, %v2563_v1  ;;  %s2567_s6 = smov (!%p137_p10), 96   ;;  %s159_s18 = sand.u32 (!%p137_p10), 1, %s2545_s10   ;;  %v2327_v51 = vld [vmem:[%s3067_s1] sm:$0xff] (!%p137_p10)   ;;  %v2328_v52 = vld [vmem:[%s3067_s1 + $0x8] sm:$0xff] (!%p137_p10)  }
  0x12   : > { %2142 = vmatpush3.bf16.msra.mxu1 (!%p137_p10), %v2325_v24  ;;  %s1995_s20 = sshll.u32 (!%p137_p10), %s159_s18, 4 }
  0x13   : > { %2143 = vmatprep.subr.bf16.mxu1 (!%p137_p10), %v2563_v1  ;;  %s2690_s23 = scalar_lea.vmem (!%p137_p10), [#allocation4], %s1995_s20 }
  0x14   : > { %2136 = vmatpush3.bf16.msra.mxu0 (!%p137_p10), %v2324_v2  ;;  %s1911_s8 = sshll.u32 (!%p137_p10), %s2690_s23, 4  ;;  %s3013_s8 = int_to_ptr.vmem [resolvable:$true] %s1911_s8 }
  0x15   : > { %2149 = vmatprep.subr.bf16.mxu0 (!%p137_p10), %v2563_v1 }
  0x16   : > { %v182_v3 = vld [vmem:[#allocation2] sm:$0x1]  ;;  %s164_s27 = scalar_select %p163_p11, %s2553_s12, 1  ;;  %v2002_v12 = vld [vmem:[#allocation3] ss:$0 sm:$0xff]  ;;  %2144 = vmatpush3.bf16.msra.mxu1 %v2326_v25 }
  0x17   : > { %v183_v4 = vpack.c.bf16 %v182_v3, %v182_v3  ;;  %2157 = vmatprep.subr.bf16.mxu1 %v2563_v1 }
  0x18   : > { %s2083_s28 = sshll.u32 %s164_s27, 4 }
  0x19   : > { %2138 = vmatmul.mubr.msk.bf16.vlgmr.msra.gmra.mrb[0].mxu0 %vm200_vm2, %v183_v4  ;;  %s2667_s3 = scalar_lea.vmem %s3066_s0, %s2083_s28 }
  0x1a   : > { %2153 = vmatprep.mubr.msk.bf16.mxu0 %vm2564_vm0, %v2563_v1  ;;  %v181_v5 = vld [vmem:[%s2667_s3] sm:$0x1]  ;;  %v290_v33 = vld [vmem:[%s2667_s3 + $0x1] sm:$0x1]  ;;  %2150 = vmatpush3.bf16.msra.mxu0 %v2327_v51  ;;  %v397_v60 = vld [vmem:[%s2667_s3 + $0x2] sm:$0x1] }
  0x1b   : > { %2151 = vmatprep.subr.bf16.mxu0 %v2563_v1  ;;  %v504_v24 = vld [vmem:[%s2667_s3 + $0x3] sm:$0x1]  ;;  %v611_v51 = vld [vmem:[%s2667_s3 + $0x4] sm:$0x1] }
  0x1e   : > { %2152 = vmatpush3.bf16.msra.mxu0 %v2328_v52 }
  0x1f   : > { %2165 = vmatprep.subr.bf16.mxu0 %v2563_v1 }
  0xec   : > { %v238_v6 = vpop.f32.mrb[0].mxu0 }
  0xed   : > { %v244_v7 = vadd.f32 %v238_v6, %v181_v5  ;;  %v2139_v8 = vpop.f32.mrb[1].mxu0 }
  0xee   : > { %v241_v9 = vpop.f32.mrb[2].mxu0 }
  0xef   : > { %2355 = vtanh.f32 %v244_v7  ;;  %v2140_v10 = vpop.f32.mrb[3].mxu0  ;;  %v2001_v13 = vmul.f32 -1.442695, %v244_v7 }
  0xf1   : > { %2357 = vpow2.f32 %v2001_v13 }
  0xf9   : > { %v2356_v11 = vpop.eup %2355 }
  0xfa   : > { %263 = vrot.lane.b32.xlu0 %v2356_v11, %s2565_s4 }
  0xfb   : > { %v2358_v14 = vpop.eup %2357 }
  0xfc   : > { %v248_v15 = vadd.f32 1.0, %v2358_v14 }
  0xfe   : > { %258 = vrot.lane.b32.xlu0 %v2002_v12, %s2566_s5  ;;  %2359 = vrcp.f32 %v248_v15  ;;  %v2329_v15 = vld [vmem:[%s3067_s1] sm:$0xff]  }
 0x108   : > { %v2360_v16 = vpop.eup %2359 }
 0x16c   : > { %v264_v17 = vpop.permute.xlu0 %263 }
 0x16d   : > { %v266_v18 = vmul.f32 %v2360_v16, %v264_v17 }
 0x16f   : > { %268 = vrot.lane.b32.xlu1 %v266_v18, %s2566_s5 }
 0x170   : > { %v259_v19 = vpop.permute.xlu0 %258 }
 0x171   : > { %v261_v20 = vmul.f32 %v2360_v16, %v259_v19 }
 0x1e1   : > { %v269_v21 = vpop.permute.xlu1 %268 }
 0x1e2   : > { %v271_v22 = vadd.f32 %v269_v21, %v261_v20 }
 0x1e4   : > { %2361 = vtanh.f32 %v271_v22 }
 0x1ee   : > { %v2362_v23 = vpop.eup %2361 }
 0x1ef   : > { %274 = vrot.lane.b32.xlu1 %v2362_v23, %s2565_s4 }
 0x1f3   : > { %279 = vrot.lane.b32.xlu1 %v271_v22, %s2567_s6 }
 0x261   : > { %v275_v26 = vpop.permute.xlu1 %274 }
 0x262   : > { %v277_v27 = vmul.f32 %v2360_v16, %v275_v26  ;;  %v2330_v16 = vld [vmem:[%s3067_s1 + $0x8] sm:$0xff]  }
 0x264   : > { %285 = vrot.lane.b32.xlu0 %v277_v27, %s2566_s5 }
 0x265   : > { %v280_v28 = vpop.permute.xlu1 %279 }
 0x266   : > { %283 = vst.msk [vmem:[#allocation3] sm:$0x1] %vm178_vm1, %v280_v28 }
 0x26d   : > { %v2007_v29 = vld [vmem:[#allocation3] ss:$0 sm:$0xff] }
 0x26e   : > { %366 = vrot.lane.b32.xlu1 %v2007_v29, %s2566_s5 }
 0x2d6   : > { %v286_v30 = vpop.permute.xlu0 %285 }
 0x2d7   : > { %288 = vst.msk [vmem:[#allocation2] sm:$0x1] %vm178_vm1, %v286_v30  ;;  %289 = vst.msk [vmem:[%s2690_s23] sm:$0x1] %vm178_vm1, %v286_v30 }
 0x2de   : > { %v291_v31 = vld [vmem:[#allocation2] sm:$0x1] }
 0x2df   : > { %v292_v32 = vpack.c.bf16 %v291_v31, %v291_v31 }
 0x2e0   : > { %v367_v46 = vpop.permute.xlu1 %366 }
 0x2e1   : > { %2146 = vmatmul.mubr.msk.bf16.vlgmr.msra.gmra.mrb[0].mxu1 %vm200_vm2, %v292_v32 }
 0x2e2   : > { %2161 = vmatprep.mubr.msk.bf16.mxu1 %vm2564_vm0, %v2563_v1  ;;  %2158 = vmatpush3.bf16.msra.mxu1 %v2329_v15  ;;  %v718_v15 = vld [vmem:[%s2667_s3 + $0x5] sm:$0x1] }
 0x2e3   : > { %2159 = vmatprep.subr.bf16.mxu1 %v2563_v1 }
 0x2e6   : > { %2160 = vmatpush3.bf16.msra.mxu1 %v2330_v16 }
 0x2e7   : > { %2173 = vmatprep.subr.bf16.mxu1 %v2563_v1 }
 0x3b4   : > { %v346_v34 = vpop.f32.mrb[0].mxu1 }
 0x3b5   : > { %v352_v35 = vadd.f32 %v346_v34, %v290_v33  ;;  %v2147_v36 = vpop.f32.mrb[1].mxu1 }
 0x3b6   : > { %v349_v37 = vpop.f32.mrb[2].mxu1 }
 0x3b7   : > { %2363 = vtanh.f32 %v352_v35  ;;  %v2148_v38 = vpop.f32.mrb[3].mxu1  ;;  %v2006_v40 = vmul.f32 -1.442695, %v352_v35 }
 0x3b9   : > { %2365 = vpow2.f32 %v2006_v40 }
 0x3c1   : > { %v2364_v39 = vpop.eup %2363 }
 0x3c2   : > { %371 = vrot.lane.b32.xlu0 %v2364_v39, %s2565_s4 }
 0x3c3   : > { %v2366_v41 = vpop.eup %2365 }
 0x3c4   : > { %v356_v42 = vadd.f32 1.0, %v2366_v41 }
 0x3c6   : > { %2367 = vrcp.f32 %v356_v42  ;;  %v2331_v42 = vld [vmem:[%s3067_s1] sm:$0xff]  }
 0x3d0   : > { %v2368_v43 = vpop.eup %2367 }
 0x3d1   : > { %v369_v47 = vmul.f32 %v2368_v43, %v367_v46 }
 0x434   : > { %v372_v44 = vpop.permute.xlu0 %371 }
 0x435   : > { %v374_v45 = vmul.f32 %v2368_v43, %v372_v44 }
 0x437   : > { %376 = vrot.lane.b32.xlu0 %v374_v45, %s2566_s5 }
 0x4a9   : > { %v377_v48 = vpop.permute.xlu0 %376 }
 0x4aa   : > { %v379_v49 = vadd.f32 %v377_v48, %v369_v47 }
 0x4ac   : > { %2369 = vtanh.f32 %v379_v49 }
 0x4b6   : > { %v2370_v50 = vpop.eup %2369 }
 0x4b7   : > { %382 = vrot.lane.b32.xlu1 %v2370_v50, %s2565_s4 }
 0x4bb   : > { %387 = vrot.lane.b32.xlu1 %v379_v49, %s2567_s6 }
 0x529   : > { %v383_v53 = vpop.permute.xlu1 %382 }
 0x52a   : > { %v385_v54 = vmul.f32 %v2368_v43, %v383_v53  ;;  %v2332_v43 = vld [vmem:[%s3067_s1 + $0x8] sm:$0xff]  }
 0x52c   : > { %392 = vrot.lane.b32.xlu0 %v385_v54, %s2566_s5 }
 0x52d   : > { %v388_v55 = vpop.permute.xlu1 %387 }
 0x52e   : > { %390 = vst.msk [vmem:[#allocation3] sm:$0x1] %vm178_vm1, %v388_v55 }
 0x535   : > { %v2012_v56 = vld [vmem:[#allocation3] ss:$0 sm:$0xff] }
 0x536   : > { %473 = vrot.lane.b32.xlu1 %v2012_v56, %s2566_s5 }
 0x59e   : > { %v393_v57 = vpop.permute.xlu0 %392 }
 0x59f   : > { %395 = vst.msk [vmem:[#allocation2] sm:$0x1] %vm178_vm1, %v393_v57  ;;  %396 = vst.msk [vmem:[%s2690_s23 + $0x1] sm:$0x1] %vm178_vm1, %v393_v57 }
 0x5a6   : > { %v398_v58 = vld [vmem:[#allocation2] sm:$0x1] }
 0x5a7   : > { %v399_v59 = vpack.c.bf16 %v398_v58, %v398_v58 }
 0x5a8   : > { %v474_v10 = vpop.permute.xlu1 %473 }
 0x5a9   : > { %2154 = vmatmul.mubr.msk.bf16.vlgmr.msra.gmra.mrb[4].mxu0 %vm200_vm2, %v399_v59 }
 0x5aa   : > { %2169 = vmatprep.mubr.msk.bf16.mxu0 %vm2564_vm0, %v2563_v1  ;;  %2166 = vmatpush3.bf16.msra.mxu0 %v2331_v42  ;;  %v825_v42 = vld [vmem:[%s2667_s3 + $0x6] sm:$0x1] }
 0x5ab   : > { %2167 = vmatprep.subr.bf16.mxu0 %v2563_v1 }
 0x5ae   : > { %2168 = vmatpush3.bf16.msra.mxu0 %v2332_v43 }
 0x5af   : > { %2181 = vmatprep.subr.bf16.mxu0 %v2563_v1 }
 0x67c   : > { %v453_v61 = vpop.f32.mrb[4].mxu0 }
 0x67d   : > { %v459_v62 = vadd.f32 %v453_v61, %v397_v60  ;;  %v2155_v63 = vpop.f32.mrb[5].mxu0 }
 0x67e   : > { %v456_v0 = vpop.f32.mrb[6].mxu0 }
 0x67f   : > { %2371 = vtanh.f32 %v459_v62  ;;  %v2156_v2 = vpop.f32.mrb[7].mxu0  ;;  %v2011_v4 = vmul.f32 -1.442695, %v459_v62 }
 0x681   : > { %2373 = vpow2.f32 %v2011_v4 }
 0x689   : > { %v2372_v3 = vpop.eup %2371 }
 0x68a   : > { %478 = vrot.lane.b32.xlu0 %v2372_v3, %s2565_s4 }
 0x68b   : > { %v2374_v5 = vpop.eup %2373 }
 0x68c   : > { %v463_v6 = vadd.f32 1.0, %v2374_v5 }
 0x68e   : > { %2375 = vrcp.f32 %v463_v6  ;;  %v2333_v6 = vld [vmem:[%s3067_s1] sm:$0xff]  }
 0x698   : > { %v2376_v7 = vpop.eup %2375 }
 0x699   : > { %v476_v11 = vmul.f32 %v2376_v7, %v474_v10 }
 0x6fc   : > { %v479_v8 = vpop.permute.xlu0 %478 }
 0x6fd   : > { %v481_v9 = vmul.f32 %v2376_v7, %v479_v8 }
 0x6ff   : > { %483 = vrot.lane.b32.xlu0 %v481_v9, %s2566_s5 }
 0x771   : > { %v484_v12 = vpop.permute.xlu0 %483 }
 0x772   : > { %v486_v13 = vadd.f32 %v484_v12, %v476_v11 }
 0x774   : > { %2377 = vtanh.f32 %v486_v13 }
 0x77e   : > { %v2378_v14 = vpop.eup %2377 }
 0x77f   : > { %489 = vrot.lane.b32.xlu1 %v2378_v14, %s2565_s4 }
 0x783   : > { %494 = vrot.lane.b32.xlu1 %v486_v13, %s2567_s6 }
 0x7f1   : > { %v490_v17 = vpop.permute.xlu1 %489 }
 0x7f2   : > { %v492_v18 = vmul.f32 %v2376_v7, %v490_v17  ;;  %v2334_v7 = vld [vmem:[%s3067_s1 + $0x8] sm:$0xff]  }
 0x7f4   : > { %499 = vrot.lane.b32.xlu0 %v492_v18, %s2566_s5 }
 0x7f5   : > { %v495_v19 = vpop.permute.xlu1 %494 }
 0x7f6   : > { %497 = vst.msk [vmem:[#allocation3] sm:$0x1] %vm178_vm1, %v495_v19 }
 0x7fd   : > { %v2017_v20 = vld [vmem:[#allocation3] ss:$0 sm:$0xff] }
 0x7fe   : > { %580 = vrot.lane.b32.xlu1 %v2017_v20, %s2566_s5 }
 0x866   : > { %v500_v21 = vpop.permute.xlu0 %499 }
 0x867   : > { %502 = vst.msk [vmem:[#allocation2] sm:$0x1] %vm178_vm1, %v500_v21  ;;  %503 = vst.msk [vmem:[%s2690_s23 + $0x2] sm:$0x1] %vm178_vm1, %v500_v21 }
 0x86e   : > { %v505_v22 = vld [vmem:[#allocation2] sm:$0x1] }
 0x86f   : > { %v506_v23 = vpack.c.bf16 %v505_v22, %v505_v22 }
 0x870   : > { %v581_v37 = vpop.permute.xlu1 %580 }
 0x871   : > { %2162 = vmatmul.mubr.msk.bf16.vlgmr.msra.gmra.mrb[4].mxu1 %vm200_vm2, %v506_v23 }
 0x872   : > { %2177 = vmatprep.mubr.msk.bf16.mxu1 %vm2564_vm0, %v2563_v1  ;;  %2174 = vmatpush3.bf16.msra.mxu1 %v2333_v6  ;;  %v932_v6 = vld [vmem:[%s2667_s3 + $0x7] sm:$0x1] }
 0x873   : > { %2175 = vmatprep.subr.bf16.mxu1 %v2563_v1 }
 0x876   : > { %2176 = vmatpush3.bf16.msra.mxu1 %v2334_v7 }
 0x877   : > { %2189 = vmatprep.subr.bf16.mxu1 %v2563_v1 }
 0x944   : > { %v560_v25 = vpop.f32.mrb[4].mxu1 }
 0x945   : > { %v566_v26 = vadd.f32 %v560_v25, %v504_v24  ;;  %v2163_v27 = vpop.f32.mrb[5].mxu1 }
 0x946   : > { %v563_v28 = vpop.f32.mrb[6].mxu1 }
 0x947   : > { %2379 = vtanh.f32 %v566_v26  ;;  %v2164_v29 = vpop.f32.mrb[7].mxu1  ;;  %v2016_v31 = vmul.f32 -1.442695, %v566_v26 }
 0x949   : > { %2381 = vpow2.f32 %v2016_v31 }
 0x951   : > { %v2380_v30 = vpop.eup %2379 }
 0x952   : > { %585 = vrot.lane.b32.xlu0 %v2380_v30, %s2565_s4 }
 0x953   : > { %v2382_v32 = vpop.eup %2381 }
 0x954   : > { %v570_v33 = vadd.f32 1.0, %v2382_v32 }
 0x956   : > { %2383 = vrcp.f32 %v570_v33  ;;  %v2335_v33 = vld [vmem:[%s3067_s1] sm:$0xff]  }
 0x960   : > { %v2384_v34 = vpop.eup %2383 }
 0x961   : > { %v583_v38 = vmul.f32 %v2384_v34, %v581_v37 }
 0x9c4   : > { %v586_v35 = vpop.permute.xlu0 %585 }
 0x9c5   : > { %v588_v36 = vmul.f32 %v2384_v34, %v586_v35 }
 0x9c7   : > { %590 = vrot.lane.b32.xlu0 %v588_v36, %s2566_s5 }
 0xa39   : > { %v591_v39 = vpop.permute.xlu0 %590 }
 0xa3a   : > { %v593_v40 = vadd.f32 %v591_v39, %v583_v38 }
 0xa3c   : > { %2385 = vtanh.f32 %v593_v40 }
 0xa46   : > { %v2386_v41 = vpop.eup %2385 }
 0xa47   : > { %596 = vrot.lane.b32.xlu1 %v2386_v41, %s2565_s4 }
 0xa4b   : > { %601 = vrot.lane.b32.xlu1 %v593_v40, %s2567_s6 }
 0xab9   : > { %v597_v44 = vpop.permute.xlu1 %596 }
 0xaba   : > { %v599_v45 = vmul.f32 %v2384_v34, %v597_v44  ;;  %v2336_v34 = vld [vmem:[%s3067_s1 + $0x8] sm:$0xff]  }
 0xabc   : > { %606 = vrot.lane.b32.xlu0 %v599_v45, %s2566_s5 }
 0xabd   : > { %v602_v46 = vpop.permute.xlu1 %601 }
 0xabe   : > { %604 = vst.msk [vmem:[#allocation3] sm:$0x1] %vm178_vm1, %v602_v46 }
 0xac5   : > { %v2022_v47 = vld [vmem:[#allocation3] ss:$0 sm:$0xff] }
 0xac6   : > { %687 = vrot.lane.b32.xlu1 %v2022_v47, %s2566_s5 }
 0xb2e   : > { %v607_v48 = vpop.permute.xlu0 %606 }
 0xb2f   : > { %609 = vst.msk [vmem:[#allocation2] sm:$0x1] %vm178_vm1, %v607_v48  ;;  %610 = vst.msk [vmem:[%s2690_s23 + $0x3] sm:$0x1] %vm178_vm1, %v607_v48 }
 0xb36   : > { %v612_v49 = vld [vmem:[#allocation2] sm:$0x1] }
 0xb37   : > { %v613_v50 = vpack.c.bf16 %v612_v49, %v612_v49 }
 0xb38   : > { %v688_v0 = vpop.permute.xlu1 %687 }
 0xb39   : > { %2170 = vmatmul.mubr.msk.bf16.vlgmr.msra.gmra.mrb[8].mxu0 %vm200_vm2, %v613_v50 }
 0xb3a   : > { %2185 = vmatprep.mubr.msk.bf16.mxu0 %vm2564_vm0, %v2563_v1  ;;  %2182 = vmatpush3.bf16.msra.mxu0 %v2335_v33  ;;  %v1039_v33 = vld [vmem:[%s2667_s3 + $0x8] sm:$0x1] }
 0xb3b   : > { %2183 = vmatprep.subr.bf16.mxu0 %v2563_v1 }
 0xb3e   : > { %2184 = vmatpush3.bf16.msra.mxu0 %v2336_v34 }
 0xb3f   : > { %2197 = vmatprep.subr.bf16.mxu0 %v2563_v1 }
 0xc0c   : > { %v667_v52 = vpop.f32.mrb[8].mxu0 }
 0xc0d   : > { %v673_v53 = vadd.f32 %v667_v52, %v611_v51  ;;  %v2171_v54 = vpop.f32.mrb[9].mxu0 }
 0xc0e   : > { %v670_v55 = vpop.f32.mrb[10].mxu0 }
 0xc0f   : > { %2387 = vtanh.f32 %v673_v53  ;;  %v2172_v56 = vpop.f32.mrb[11].mxu0  ;;  %v2021_v58 = vmul.f32 -1.442695, %v673_v53 }
 0xc11   : > { %2389 = vpow2.f32 %v2021_v58 }
 0xc19   : > { %v2388_v57 = vpop.eup %2387 }
 0xc1a   : > { %692 = vrot.lane.b32.xlu0 %v2388_v57, %s2565_s4 }
 0xc1b   : > { %v2390_v59 = vpop.eup %2389 }
 0xc1c   : > { %v677_v60 = vadd.f32 1.0, %v2390_v59 }
 0xc1e   : > { %2391 = vrcp.f32 %v677_v60  ;;  %v2337_v60 = vld [vmem:[%s3067_s1] sm:$0xff]  }
 0xc28   : > { %v2392_v61 = vpop.eup %2391 }
 0xc29   : > { %v690_v2 = vmul.f32 %v2392_v61, %v688_v0 }
 0xc8c   : > { %v693_v62 = vpop.permute.xlu0 %692 }
 0xc8d   : > { %v695_v63 = vmul.f32 %v2392_v61, %v693_v62 }
 0xc8f   : > { %697 = vrot.lane.b32.xlu0 %v695_v63, %s2566_s5 }
 0xd01   : > { %v698_v3 = vpop.permute.xlu0 %697 }
 0xd02   : > { %v700_v4 = vadd.f32 %v698_v3, %v690_v2 }
 0xd04   : > { %2393 = vtanh.f32 %v700_v4 }
 0xd0e   : > { %v2394_v5 = vpop.eup %2393 }
 0xd0f   : > { %703 = vrot.lane.b32.xlu1 %v2394_v5, %s2565_s4 }
 0xd13   : > { %708 = vrot.lane.b32.xlu1 %v700_v4, %s2567_s6 }
 0xd81   : > { %v704_v8 = vpop.permute.xlu1 %703 }
 0xd82   : > { %v706_v9 = vmul.f32 %v2392_v61, %v704_v8  ;;  %v2338_v61 = vld [vmem:[%s3067_s1 + $0x8] sm:$0xff]  }
 0xd84   : > { %713 = vrot.lane.b32.xlu0 %v706_v9, %s2566_s5 }
 0xd85   : > { %v709_v10 = vpop.permute.xlu1 %708 }
 0xd86   : > { %711 = vst.msk [vmem:[#allocation3] sm:$0x1] %vm178_vm1, %v709_v10 }
 0xd8d   : > { %v2027_v11 = vld [vmem:[#allocation3] ss:$0 sm:$0xff] }
 0xd8e   : > { %794 = vrot.lane.b32.xlu1 %v2027_v11, %s2566_s5 }
 0xdf6   : > { %v714_v12 = vpop.permute.xlu0 %713 }
 0xdf7   : > { %716 = vst.msk [vmem:[#allocation2] sm:$0x1] %vm178_vm1, %v714_v12  ;;  %717 = vst.msk [vmem:[%s2690_s23 + $0x4] sm:$0x1] %vm178_vm1, %v714_v12 }
 0xdfe   : > { %v719_v13 = vld [vmem:[#allocation2] sm:$0x1] }
 0xdff   : > { %v720_v14 = vpack.c.bf16 %v719_v13, %v719_v13 }
 0xe00   : > { %v795_v28 = vpop.permute.xlu1 %794 }
 0xe01   : > { %2178 = vmatmul.mubr.msk.bf16.vlgmr.msra.gmra.mrb[8].mxu1 %vm200_vm2, %v720_v14 }
 0xe02   : > { %2193 = vmatprep.mubr.msk.bf16.mxu1 %vm2564_vm0, %v2563_v1  ;;  %2190 = vmatpush3.bf16.msra.mxu1 %v2337_v60  ;;  %v1146_v60 = vld [vmem:[%s2667_s3 + $0x9] sm:$0x1] }
 0xe03   : > { %2191 = vmatprep.subr.bf16.mxu1 %v2563_v1 }
 0xe06   : > { %2192 = vmatpush3.bf16.msra.mxu1 %v2338_v61 }
 0xe07   : > { %2205 = vmatprep.subr.bf16.mxu1 %v2563_v1 }
 0xed4   : > { %v774_v16 = vpop.f32.mrb[8].mxu1 }
 0xed5   : > { %v780_v17 = vadd.f32 %v774_v16, %v718_v15  ;;  %v2179_v18 = vpop.f32.mrb[9].mxu1 }
 0xed6   : > { %v777_v19 = vpop.f32.mrb[10].mxu1 }
 0xed7   : > { %2395 = vtanh.f32 %v780_v17  ;;  %v2180_v20 = vpop.f32.mrb[11].mxu1  ;;  %v2026_v22 = vmul.f32 -1.442695, %v780_v17 }
 0xed9   : > { %2397 = vpow2.f32 %v2026_v22 }
 0xee1   : > { %v2396_v21 = vpop.eup %2395 }
 0xee2   : > { %799 = vrot.lane.b32.xlu0 %v2396_v21, %s2565_s4 }
 0xee3   : > { %v2398_v23 = vpop.eup %2397 }
 0xee4   : > { %v784_v24 = vadd.f32 1.0, %v2398_v23 }
 0xee6   : > { %2399 = vrcp.f32 %v784_v24  ;;  %v2339_v24 = vld [vmem:[%s3067_s1] sm:$0xff]  }
 0xef0   : > { %v2400_v25 = vpop.eup %2399 }
 0xef1   : > { %v797_v29 = vmul.f32 %v2400_v25, %v795_v28 }
 0xf54   : > { %v800_v26 = vpop.permute.xlu0 %799 }
 0xf55   : > { %v802_v27 = vmul.f32 %v2400_v25, %v800_v26 }
 0xf57   : > { %804 = vrot.lane.b32.xlu0 %v802_v27, %s2566_s5 }
 0xfc9   : > { %v805_v30 = vpop.permute.xlu0 %804 }
 0xfca   : > { %v807_v31 = vadd.f32 %v805_v30, %v797_v29 }
 0xfcc   : > { %2401 = vtanh.f32 %v807_v31 }
 0xfd6   : > { %v2402_v32 = vpop.eup %2401 }
 0xfd7   : > { %810 = vrot.lane.b32.xlu1 %v2402_v32, %s2565_s4 }
 0xfdb   : > { %815 = vrot.lane.b32.xlu1 %v807_v31, %s2567_s6 }
0x1049   : > { %v811_v35 = vpop.permute.xlu1 %810 }
0x104a   : > { %v813_v36 = vmul.f32 %v2400_v25, %v811_v35  ;;  %v2340_v25 = vld [vmem:[%s3067_s1 + $0x8] sm:$0xff]  }
0x104c   : > { %820 = vrot.lane.b32.xlu0 %v813_v36, %s2566_s5 }
0x104d   : > { %v816_v37 = vpop.permute.xlu1 %815 }
0x104e   : > { %818 = vst.msk [vmem:[#allocation3] sm:$0x1] %vm178_vm1, %v816_v37 }
0x1055   : > { %v2032_v38 = vld [vmem:[#allocation3] ss:$0 sm:$0xff] }
0x1056   : > { %901 = vrot.lane.b32.xlu1 %v2032_v38, %s2566_s5 }
0x10be   : > { %v821_v39 = vpop.permute.xlu0 %820 }
0x10bf   : > { %823 = vst.msk [vmem:[#allocation2] sm:$0x1] %vm178_vm1, %v821_v39  ;;  %824 = vst.msk [vmem:[%s2690_s23 + $0x5] sm:$0x1] %vm178_vm1, %v821_v39 }
0x10c6   : > { %v826_v40 = vld [vmem:[#allocation2] sm:$0x1] }
0x10c7   : > { %v827_v41 = vpack.c.bf16 %v826_v40, %v826_v40 }
0x10c8   : > { %v902_v55 = vpop.permute.xlu1 %901 }
0x10c9   : > { %2186 = vmatmul.mubr.msk.bf16.vlgmr.msra.gmra.mrb[12].mxu0 %vm200_vm2, %v827_v41 }
0x10ca   : > { %2201 = vmatprep.mubr.msk.bf16.mxu0 %vm2564_vm0, %v2563_v1  ;;  %2198 = vmatpush3.bf16.msra.mxu0 %v2339_v24  ;;  %v1253_v24 = vld [vmem:[%s2667_s3 + $0xa] sm:$0x1] }
0x10cb   : > { %2199 = vmatprep.subr.bf16.mxu0 %v2563_v1 }
0x10ce   : > { %2200 = vmatpush3.bf16.msra.mxu0 %v2340_v25 }
0x10cf   : > { %2213 = vmatprep.subr.bf16.mxu0 %v2563_v1 }
0x119c   : > { %v881_v43 = vpop.f32.mrb[12].mxu0 }
0x119d   : > { %v887_v44 = vadd.f32 %v881_v43, %v825_v42  ;;  %v2187_v45 = vpop.f32.mrb[13].mxu0 }
0x119e   : > { %v884_v46 = vpop.f32.mrb[14].mxu0 }
0x119f   : > { %2403 = vtanh.f32 %v887_v44  ;;  %v2188_v47 = vpop.f32.mrb[15].mxu0  ;;  %v2031_v49 = vmul.f32 -1.442695, %v887_v44 }
0x11a1   : > { %2405 = vpow2.f32 %v2031_v49 }
0x11a9   : > { %v2404_v48 = vpop.eup %2403 }
0x11aa   : > { %906 = vrot.lane.b32.xlu0 %v2404_v48, %s2565_s4 }
0x11ab   : > { %v2406_v50 = vpop.eup %2405 }
0x11ac   : > { %v891_v51 = vadd.f32 1.0, %v2406_v50 }
0x11ae   : > { %2407 = vrcp.f32 %v891_v51  ;;  %v2341_v51 = vld [vmem:[%s3067_s1] sm:$0xff]  }
0x11b8   : > { %v2408_v52 = vpop.eup %2407 }
0x11b9   : > { %v904_v56 = vmul.f32 %v2408_v52, %v902_v55 }
0x121c   : > { %v907_v53 = vpop.permute.xlu0 %906 }
0x121d   : > { %v909_v54 = vmul.f32 %v2408_v52, %v907_v53 }
0x121f   : > { %911 = vrot.lane.b32.xlu0 %v909_v54, %s2566_s5 }
0x1291   : > { %v912_v57 = vpop.permute.xlu0 %911 }
0x1292   : > { %v914_v58 = vadd.f32 %v912_v57, %v904_v56 }
0x1294   : > { %2409 = vtanh.f32 %v914_v58 }
0x129e   : > { %v2410_v59 = vpop.eup %2409 }
0x129f   : > { %917 = vrot.lane.b32.xlu1 %v2410_v59, %s2565_s4 }
0x12a3   : > { %922 = vrot.lane.b32.xlu1 %v914_v58, %s2567_s6 }
0x1311   : > { %v918_v62 = vpop.permute.xlu1 %917 }
0x1312   : > { %v920_v63 = vmul.f32 %v2408_v52, %v918_v62  ;;  %v2342_v52 = vld [vmem:[%s3067_s1 + $0x8] sm:$0xff]  }
0x1314   : > { %927 = vrot.lane.b32.xlu0 %v920_v63, %s2566_s5 }
0x1315   : > { %v923_v0 = vpop.permute.xlu1 %922 }
0x1316   : > { %925 = vst.msk [vmem:[#allocation3] sm:$0x1] %vm178_vm1, %v923_v0 }
0x131d   : > { %v2037_v2 = vld [vmem:[#allocation3] ss:$0 sm:$0xff] }
0x131e   : > { %1008 = vrot.lane.b32.xlu1 %v2037_v2, %s2566_s5 }
0x1386   : > { %v928_v3 = vpop.permute.xlu0 %927 }
0x1387   : > { %930 = vst.msk [vmem:[#allocation2] sm:$0x1] %vm178_vm1, %v928_v3  ;;  %931 = vst.msk [vmem:[%s2690_s23 + $0x6] sm:$0x1] %vm178_vm1, %v928_v3 }
0x138e   : > { %v933_v4 = vld [vmem:[#allocation2] sm:$0x1] }
0x138f   : > { %v934_v5 = vpack.c.bf16 %v933_v4, %v933_v4 }
0x1390   : > { %v1009_v19 = vpop.permute.xlu1 %1008 }
0x1391   : > { %2194 = vmatmul.mubr.msk.bf16.vlgmr.msra.gmra.mrb[12].mxu1 %vm200_vm2, %v934_v5 }
0x1392   : > { %2209 = vmatprep.mubr.msk.bf16.mxu1 %vm2564_vm0, %v2563_v1  ;;  %2206 = vmatpush3.bf16.msra.mxu1 %v2341_v51  ;;  %v1360_v51 = vld [vmem:[%s2667_s3 + $0xb] sm:$0x1] }
0x1393   : > { %2207 = vmatprep.subr.bf16.mxu1 %v2563_v1 }
0x1396   : > { %2208 = vmatpush3.bf16.msra.mxu1 %v2342_v52 }
0x1397   : > { %2221 = vmatprep.subr.bf16.mxu1 %v2563_v1 }
0x1464   : > { %v988_v7 = vpop.f32.mrb[12].mxu1 }
0x1465   : > { %v994_v8 = vadd.f32 %v988_v7, %v932_v6  ;;  %v2195_v9 = vpop.f32.mrb[13].mxu1 }
0x1466   : > { %v991_v10 = vpop.f32.mrb[14].mxu1 }
0x1467   : > { %2411 = vtanh.f32 %v994_v8  ;;  %v2196_v11 = vpop.f32.mrb[15].mxu1  ;;  %v2036_v13 = vmul.f32 -1.442695, %v994_v8 }
0x1469   : > { %2413 = vpow2.f32 %v2036_v13 }
0x1471   : > { %v2412_v12 = vpop.eup %2411 }
0x1472   : > { %1013 = vrot.lane.b32.xlu0 %v2412_v12, %s2565_s4 }
0x1473   : > { %v2414_v14 = vpop.eup %2413 }
0x1474   : > { %v998_v15 = vadd.f32 1.0, %v2414_v14 }
0x1476   : > { %2415 = vrcp.f32 %v998_v15  ;;  %v2343_v15 = vld [vmem:[%s3067_s1] sm:$0xff]  }
0x1480   : > { %v2416_v16 = vpop.eup %2415 }
0x1481   : > { %v1011_v20 = vmul.f32 %v2416_v16, %v1009_v19 }
0x14e4   : > { %v1014_v17 = vpop.permute.xlu0 %1013 }
0x14e5   : > { %v1016_v18 = vmul.f32 %v2416_v16, %v1014_v17 }
0x14e7   : > { %1018 = vrot.lane.b32.xlu0 %v1016_v18, %s2566_s5 }
0x1559   : > { %v1019_v21 = vpop.permute.xlu0 %1018 }
0x155a   : > { %v1021_v22 = vadd.f32 %v1019_v21, %v1011_v20 }
0x155c   : > { %2417 = vtanh.f32 %v1021_v22 }
0x1566   : > { %v2418_v23 = vpop.eup %2417 }
0x1567   : > { %1024 = vrot.lane.b32.xlu1 %v2418_v23, %s2565_s4 }
0x156b   : > { %1029 = vrot.lane.b32.xlu1 %v1021_v22, %s2567_s6 }
0x15d9   : > { %v1025_v26 = vpop.permute.xlu1 %1024 }
0x15da   : > { %v1027_v27 = vmul.f32 %v2416_v16, %v1025_v26  ;;  %v2344_v16 = vld [vmem:[%s3067_s1 + $0x8] sm:$0xff]  }
0x15dc   : > { %1034 = vrot.lane.b32.xlu0 %v1027_v27, %s2566_s5 }
0x15dd   : > { %v1030_v28 = vpop.permute.xlu1 %1029 }
0x15de   : > { %1032 = vst.msk [vmem:[#allocation3] sm:$0x1] %vm178_vm1, %v1030_v28 }
0x15e5   : > { %v2042_v29 = vld [vmem:[#allocation3] ss:$0 sm:$0xff] }
0x15e6   : > { %1115 = vrot.lane.b32.xlu1 %v2042_v29, %s2566_s5 }
0x164e   : > { %v1035_v30 = vpop.permute.xlu0 %1034 }
0x164f   : > { %1037 = vst.msk [vmem:[#allocation2] sm:$0x1] %vm178_vm1, %v1035_v30  ;;  %1038 = vst.msk [vmem:[%s2690_s23 + $0x7] sm:$0x1] %vm178_vm1, %v1035_v30 }
0x1656   : > { %v1040_v31 = vld [vmem:[#allocation2] sm:$0x1] }
0x1657   : > { %v1041_v32 = vpack.c.bf16 %v1040_v31, %v1040_v31 }
0x1658   : > { %v1116_v46 = vpop.permute.xlu1 %1115 }
0x1659   : > { %2202 = vmatmul.mubr.msk.bf16.vlgmr.msra.gmra.mrb[16].mxu0 %vm200_vm2, %v1041_v32 }
0x165a   : > { %2217 = vmatprep.mubr.msk.bf16.mxu0 %vm2564_vm0, %v2563_v1  ;;  %2214 = vmatpush3.bf16.msra.mxu0 %v2343_v15  ;;  %v1467_v15 = vld [vmem:[%s2667_s3 + $0xc] sm:$0x1] }
0x165b   : > { %2215 = vmatprep.subr.bf16.mxu0 %v2563_v1 }
0x165e   : > { %2216 = vmatpush3.bf16.msra.mxu0 %v2344_v16 }
0x165f   : > { %2229 = vmatprep.subr.bf16.mxu0 %v2563_v1 }
0x172c   : > { %v1095_v34 = vpop.f32.mrb[16].mxu0 }
0x172d   : > { %v1101_v35 = vadd.f32 %v1095_v34, %v1039_v33  ;;  %v2203_v36 = vpop.f32.mrb[17].mxu0 }
0x172e   : > { %v1098_v37 = vpop.f32.mrb[18].mxu0 }
0x172f   : > { %2419 = vtanh.f32 %v1101_v35  ;;  %v2204_v38 = vpop.f32.mrb[19].mxu0  ;;  %v2041_v40 = vmul.f32 -1.442695, %v1101_v35 }
0x1731   : > { %2421 = vpow2.f32 %v2041_v40 }
0x1739   : > { %v2420_v39 = vpop.eup %2419 }
0x173a   : > { %1120 = vrot.lane.b32.xlu0 %v2420_v39, %s2565_s4 }
0x173b   : > { %v2422_v41 = vpop.eup %2421 }
0x173c   : > { %v1105_v42 = vadd.f32 1.0, %v2422_v41 }
0x173e   : > { %2423 = vrcp.f32 %v1105_v42  ;;  %v2345_v42 = vld [vmem:[%s3067_s1] sm:$0xff]  }
0x1748   : > { %v2424_v43 = vpop.eup %2423 }
0x1749   : > { %v1118_v47 = vmul.f32 %v2424_v43, %v1116_v46 }
0x17ac   : > { %v1121_v44 = vpop.permute.xlu0 %1120 }
0x17ad   : > { %v1123_v45 = vmul.f32 %v2424_v43, %v1121_v44 }
0x17af   : > { %1125 = vrot.lane.b32.xlu0 %v1123_v45, %s2566_s5 }
0x1821   : > { %v1126_v48 = vpop.permute.xlu0 %1125 }
0x1822   : > { %v1128_v49 = vadd.f32 %v1126_v48, %v1118_v47 }
0x1824   : > { %2425 = vtanh.f32 %v1128_v49 }
0x182e   : > { %v2426_v50 = vpop.eup %2425 }
0x182f   : > { %1131 = vrot.lane.b32.xlu1 %v2426_v50, %s2565_s4 }
0x1833   : > { %1136 = vrot.lane.b32.xlu1 %v1128_v49, %s2567_s6 }
0x18a1   : > { %v1132_v53 = vpop.permute.xlu1 %1131 }
0x18a2   : > { %v1134_v54 = vmul.f32 %v2424_v43, %v1132_v53  ;;  %v2346_v43 = vld [vmem:[%s3067_s1 + $0x8] sm:$0xff]  }
0x18a4   : > { %1141 = vrot.lane.b32.xlu0 %v1134_v54, %s2566_s5 }
0x18a5   : > { %v1137_v55 = vpop.permute.xlu1 %1136 }
0x18a6   : > { %1139 = vst.msk [vmem:[#allocation3] sm:$0x1] %vm178_vm1, %v1137_v55 }
0x18ad   : > { %v2047_v56 = vld [vmem:[#allocation3] ss:$0 sm:$0xff] }
0x18ae   : > { %1222 = vrot.lane.b32.xlu1 %v2047_v56, %s2566_s5 }
0x1916   : > { %v1142_v57 = vpop.permute.xlu0 %1141 }
0x1917   : > { %1144 = vst.msk [vmem:[#allocation2] sm:$0x1] %vm178_vm1, %v1142_v57  ;;  %1145 = vst.msk [vmem:[%s2690_s23 + $0x8] sm:$0x1] %vm178_vm1, %v1142_v57 }
0x191e   : > { %v1147_v58 = vld [vmem:[#allocation2] sm:$0x1] }
0x191f   : > { %v1148_v59 = vpack.c.bf16 %v1147_v58, %v1147_v58 }
0x1920   : > { %v1223_v10 = vpop.permute.xlu1 %1222 }
0x1921   : > { %2210 = vmatmul.mubr.msk.bf16.vlgmr.msra.gmra.mrb[16].mxu1 %vm200_vm2, %v1148_v59 }
0x1922   : > { %2225 = vmatprep.mubr.msk.bf16.mxu1 %vm2564_vm0, %v2563_v1  ;;  %2222 = vmatpush3.bf16.msra.mxu1 %v2345_v42  ;;  %v1574_v42 = vld [vmem:[%s2667_s3 + $0xd] sm:$0x1] }
0x1923   : > { %2223 = vmatprep.subr.bf16.mxu1 %v2563_v1 }
0x1926   : > { %2224 = vmatpush3.bf16.msra.mxu1 %v2346_v43 }
0x1927   : > { %2237 = vmatprep.subr.bf16.mxu1 %v2563_v1 }
0x19f4   : > { %v1202_v61 = vpop.f32.mrb[16].mxu1 }
0x19f5   : > { %v1208_v62 = vadd.f32 %v1202_v61, %v1146_v60  ;;  %v2211_v63 = vpop.f32.mrb[17].mxu1 }
0x19f6   : > { %v1205_v0 = vpop.f32.mrb[18].mxu1 }
0x19f7   : > { %2427 = vtanh.f32 %v1208_v62  ;;  %v2212_v2 = vpop.f32.mrb[19].mxu1  ;;  %v2046_v4 = vmul.f32 -1.442695, %v1208_v62 }
0x19f9   : > { %2429 = vpow2.f32 %v2046_v4 }
0x1a01   : > { %v2428_v3 = vpop.eup %2427 }
0x1a02   : > { %1227 = vrot.lane.b32.xlu0 %v2428_v3, %s2565_s4 }
0x1a03   : > { %v2430_v5 = vpop.eup %2429 }
0x1a04   : > { %v1212_v6 = vadd.f32 1.0, %v2430_v5 }
0x1a06   : > { %2431 = vrcp.f32 %v1212_v6  ;;  %v2347_v6 = vld [vmem:[%s3067_s1] sm:$0xff]  }
0x1a10   : > { %v2432_v7 = vpop.eup %2431 }
0x1a11   : > { %v1225_v11 = vmul.f32 %v2432_v7, %v1223_v10 }
0x1a74   : > { %v1228_v8 = vpop.permute.xlu0 %1227 }
0x1a75   : > { %v1230_v9 = vmul.f32 %v2432_v7, %v1228_v8 }
0x1a77   : > { %1232 = vrot.lane.b32.xlu0 %v1230_v9, %s2566_s5 }
0x1ae9   : > { %v1233_v12 = vpop.permute.xlu0 %1232 }
0x1aea   : > { %v1235_v13 = vadd.f32 %v1233_v12, %v1225_v11 }
0x1aec   : > { %2433 = vtanh.f32 %v1235_v13 }
0x1af6   : > { %v2434_v14 = vpop.eup %2433 }
0x1af7   : > { %1238 = vrot.lane.b32.xlu1 %v2434_v14, %s2565_s4 }
0x1afb   : > { %1243 = vrot.lane.b32.xlu1 %v1235_v13, %s2567_s6 }
0x1b69   : > { %v1239_v17 = vpop.permute.xlu1 %1238 }
0x1b6a   : > { %v1241_v18 = vmul.f32 %v2432_v7, %v1239_v17  ;;  %v2348_v7 = vld [vmem:[%s3067_s1 + $0x8] sm:$0xff]  }
0x1b6c   : > { %1248 = vrot.lane.b32.xlu0 %v1241_v18, %s2566_s5 }
0x1b6d   : > { %v1244_v19 = vpop.permute.xlu1 %1243 }
0x1b6e   : > { %1246 = vst.msk [vmem:[#allocation3] sm:$0x1] %vm178_vm1, %v1244_v19 }
0x1b75   : > { %v2052_v20 = vld [vmem:[#allocation3] ss:$0 sm:$0xff] }
0x1b76   : > { %1329 = vrot.lane.b32.xlu1 %v2052_v20, %s2566_s5 }
0x1bde   : > { %v1249_v21 = vpop.permute.xlu0 %1248 }
0x1bdf   : > { %1251 = vst.msk [vmem:[#allocation2] sm:$0x1] %vm178_vm1, %v1249_v21  ;;  %1252 = vst.msk [vmem:[%s2690_s23 + $0x9] sm:$0x1] %vm178_vm1, %v1249_v21 }
0x1be6   : > { %v1254_v22 = vld [vmem:[#allocation2] sm:$0x1] }
0x1be7   : > { %v1255_v23 = vpack.c.bf16 %v1254_v22, %v1254_v22 }
0x1be8   : > { %v1330_v37 = vpop.permute.xlu1 %1329 }
0x1be9   : > { %2218 = vmatmul.mubr.msk.bf16.vlgmr.msra.gmra.mrb[20].mxu0 %vm200_vm2, %v1255_v23 }
0x1bea   : > { %2233 = vmatprep.mubr.msk.bf16.mxu0 %vm2564_vm0, %v2563_v1  ;;  %2230 = vmatpush3.bf16.msra.mxu0 %v2347_v6  ;;  %v1681_v6 = vld [vmem:[%s2667_s3 + $0xe] sm:$0x1] }
0x1beb   : > { %2231 = vmatprep.subr.bf16.mxu0 %v2563_v1 }
0x1bee   : > { %2232 = vmatpush3.bf16.msra.mxu0 %v2348_v7 }
0x1bef   : > { %2245 = vmatprep.subr.bf16.mxu0 %v2563_v1 }
0x1cbc   : > { %v1309_v25 = vpop.f32.mrb[20].mxu0 }
0x1cbd   : > { %v1315_v26 = vadd.f32 %v1309_v25, %v1253_v24  ;;  %v2219_v27 = vpop.f32.mrb[21].mxu0 }
0x1cbe   : > { %v1312_v28 = vpop.f32.mrb[22].mxu0 }
0x1cbf   : > { %2435 = vtanh.f32 %v1315_v26  ;;  %v2220_v29 = vpop.f32.mrb[23].mxu0  ;;  %v2051_v31 = vmul.f32 -1.442695, %v1315_v26 }
0x1cc1   : > { %2437 = vpow2.f32 %v2051_v31 }
0x1cc9   : > { %v2436_v30 = vpop.eup %2435 }
0x1cca   : > { %1334 = vrot.lane.b32.xlu0 %v2436_v30, %s2565_s4 }
0x1ccb   : > { %v2438_v32 = vpop.eup %2437 }
0x1ccc   : > { %v1319_v33 = vadd.f32 1.0, %v2438_v32 }
0x1cce   : > { %2439 = vrcp.f32 %v1319_v33  ;;  %v2349_v33 = vld [vmem:[%s3067_s1] sm:$0xff]  }
0x1cd8   : > { %v2440_v34 = vpop.eup %2439 }
0x1cd9   : > { %v1332_v38 = vmul.f32 %v2440_v34, %v1330_v37 }
0x1d3c   : > { %v1335_v35 = vpop.permute.xlu0 %1334 }
0x1d3d   : > { %v1337_v36 = vmul.f32 %v2440_v34, %v1335_v35 }
0x1d3f   : > { %1339 = vrot.lane.b32.xlu0 %v1337_v36, %s2566_s5 }
0x1db1   : > { %v1340_v39 = vpop.permute.xlu0 %1339 }
0x1db2   : > { %v1342_v40 = vadd.f32 %v1340_v39, %v1332_v38 }
0x1db4   : > { %2441 = vtanh.f32 %v1342_v40 }
0x1dbe   : > { %v2442_v41 = vpop.eup %2441 }
0x1dbf   : > { %1345 = vrot.lane.b32.xlu1 %v2442_v41, %s2565_s4 }
0x1dc3   : > { %1350 = vrot.lane.b32.xlu1 %v1342_v40, %s2567_s6 }
0x1e31   : > { %v1346_v44 = vpop.permute.xlu1 %1345 }
0x1e32   : > { %v1348_v45 = vmul.f32 %v2440_v34, %v1346_v44  ;;  %v2350_v34 = vld [vmem:[%s3067_s1 + $0x8] sm:$0xff]  }
0x1e34   : > { %1355 = vrot.lane.b32.xlu0 %v1348_v45, %s2566_s5 }
0x1e35   : > { %v1351_v46 = vpop.permute.xlu1 %1350 }
0x1e36   : > { %1353 = vst.msk [vmem:[#allocation3] sm:$0x1] %vm178_vm1, %v1351_v46 }
0x1e3d   : > { %v2057_v47 = vld [vmem:[#allocation3] ss:$0 sm:$0xff] }
0x1e3e   : > { %1436 = vrot.lane.b32.xlu1 %v2057_v47, %s2566_s5 }
0x1ea6   : > { %v1356_v48 = vpop.permute.xlu0 %1355 }
0x1ea7   : > { %1358 = vst.msk [vmem:[#allocation2] sm:$0x1] %vm178_vm1, %v1356_v48  ;;  %1359 = vst.msk [vmem:[%s2690_s23 + $0xa] sm:$0x1] %vm178_vm1, %v1356_v48 }
0x1eae   : > { %v1361_v49 = vld [vmem:[#allocation2] sm:$0x1] }
0x1eaf   : > { %v1362_v50 = vpack.c.bf16 %v1361_v49, %v1361_v49 }
0x1eb0   : > { %v1437_v0 = vpop.permute.xlu1 %1436 }
0x1eb1   : > { %2226 = vmatmul.mubr.msk.bf16.vlgmr.msra.gmra.mrb[20].mxu1 %vm200_vm2, %v1362_v50 }
0x1eb2   : > { %2241 = vmatprep.mubr.msk.bf16.mxu1 %vm2564_vm0, %v2563_v1  ;;  %2238 = vmatpush3.bf16.msra.mxu1 %v2349_v33 }
0x1eb3   : > { %2239 = vmatprep.subr.bf16.mxu1 %v2563_v1 }
0x1eb6   : > { %2240 = vmatpush3.bf16.msra.mxu1 %v2350_v34 }
0x1eb7   : > { %2253 = vmatprep.subr.bf16.mxu1 %v2563_v1 }
0x1f84   : > { %v1416_v52 = vpop.f32.mrb[20].mxu1 }
0x1f85   : > { %v1422_v53 = vadd.f32 %v1416_v52, %v1360_v51  ;;  %v2227_v54 = vpop.f32.mrb[21].mxu1 }
0x1f86   : > { %v1419_v55 = vpop.f32.mrb[22].mxu1 }
0x1f87   : > { %2443 = vtanh.f32 %v1422_v53  ;;  %v2228_v56 = vpop.f32.mrb[23].mxu1  ;;  %v2056_v58 = vmul.f32 -1.442695, %v1422_v53 }
0x1f89   : > { %2445 = vpow2.f32 %v2056_v58 }
0x1f91   : > { %v2444_v57 = vpop.eup %2443 }
0x1f92   : > { %1441 = vrot.lane.b32.xlu0 %v2444_v57, %s2565_s4 }
0x1f93   : > { %v2446_v59 = vpop.eup %2445 }
0x1f94   : > { %v1426_v60 = vadd.f32 1.0, %v2446_v59 }
0x1f96   : > { %2447 = vrcp.f32 %v1426_v60  ;;  %v2351_v60 = vld [vmem:[%s3067_s1] sm:$0xff]  }
0x1fa0   : > { %v2448_v61 = vpop.eup %2447 }
0x1fa1   : > { %v1439_v2 = vmul.f32 %v2448_v61, %v1437_v0 }
0x2004   : > { %v1442_v62 = vpop.permute.xlu0 %1441 }
0x2005   : > { %v1444_v63 = vmul.f32 %v2448_v61, %v1442_v62 }
0x2007   : > { %1446 = vrot.lane.b32.xlu0 %v1444_v63, %s2566_s5 }
0x2079   : > { %v1447_v3 = vpop.permute.xlu0 %1446 }
0x207a   : > { %v1449_v4 = vadd.f32 %v1447_v3, %v1439_v2 }
0x207c   : > { %2449 = vtanh.f32 %v1449_v4 }
0x2086   : > { %v2450_v5 = vpop.eup %2449 }
0x2087   : > { %1452 = vrot.lane.b32.xlu1 %v2450_v5, %s2565_s4 }
0x208b   : > { %1457 = vrot.lane.b32.xlu1 %v1449_v4, %s2567_s6 }
0x20f9   : > { %v1453_v8 = vpop.permute.xlu1 %1452 }
0x20fa   : > { %v1455_v9 = vmul.f32 %v2448_v61, %v1453_v8  ;;  %v2352_v61 = vld [vmem:[%s3067_s1 + $0x8] sm:$0xff]  }
0x20fc   : > { %1462 = vrot.lane.b32.xlu0 %v1455_v9, %s2566_s5 }
0x20fd   : > { %v1458_v10 = vpop.permute.xlu1 %1457 }
0x20fe   : > { %1460 = vst.msk [vmem:[#allocation3] sm:$0x1] %vm178_vm1, %v1458_v10 }
0x2105   : > { %v2062_v11 = vld [vmem:[#allocation3] ss:$0 sm:$0xff] }
0x2106   : > { %1543 = vrot.lane.b32.xlu1 %v2062_v11, %s2566_s5 }
0x216e   : > { %v1463_v12 = vpop.permute.xlu0 %1462 }
0x216f   : > { %1466 = vst.msk [vmem:[%s2690_s23 + $0xb] sm:$0x1] %vm178_vm1, %v1463_v12  ;;  %1465 = vst.msk [vmem:[#allocation2] sm:$0x1] %vm178_vm1, %v1463_v12 }
0x2176   : > { %v1468_v13 = vld [vmem:[#allocation2] sm:$0x1] }
0x2177   : > { %v1469_v14 = vpack.c.bf16 %v1468_v13, %v1468_v13 }
0x2178   : > { %v1544_v28 = vpop.permute.xlu1 %1543 }
0x2179   : > { %2234 = vmatmul.mubr.msk.bf16.vlgmr.msra.gmra.mrb[24].mxu0 %vm200_vm2, %v1469_v14 }
0x217a   : > { %2249 = vmatprep.mubr.msk.bf16.mxu0 %vm2564_vm0, %v2563_v1  ;;  %2246 = vmatpush3.bf16.msra.mxu0 %v2351_v60 }
0x217b   : > { %2247 = vmatprep.subr.bf16.mxu0 %v2563_v1 }
0x217e   : > { %2248 = vmatpush3.bf16.msra.mxu0 %v2352_v61 }
0x224c   : > { %v1523_v16 = vpop.f32.mrb[24].mxu0 }
0x224d   : > { %v1529_v17 = vadd.f32 %v1523_v16, %v1467_v15  ;;  %v2235_v18 = vpop.f32.mrb[25].mxu0 }
0x224e   : > { %v1526_v19 = vpop.f32.mrb[26].mxu0 }
0x224f   : > { %2451 = vtanh.f32 %v1529_v17  ;;  %v2236_v20 = vpop.f32.mrb[27].mxu0  ;;  %v2061_v22 = vmul.f32 -1.442695, %v1529_v17 }
0x2251   : > { %2453 = vpow2.f32 %v2061_v22 }
0x2259   : > { %v2452_v21 = vpop.eup %2451 }
0x225a   : > { %1548 = vrot.lane.b32.xlu0 %v2452_v21, %s2565_s4 }
0x225b   : > { %v2454_v23 = vpop.eup %2453 }
0x225c   : > { %v1533_v24 = vadd.f32 1.0, %v2454_v23 }
0x225e   : > { %2455 = vrcp.f32 %v1533_v24  ;;  %v2353_v24 = vld [vmem:[%s3067_s1] sm:$0xff]  }
0x2268   : > { %v2456_v25 = vpop.eup %2455 }
0x2269   : > { %v1546_v29 = vmul.f32 %v2456_v25, %v1544_v28 }
0x22cc   : > { %v1549_v26 = vpop.permute.xlu0 %1548 }
0x22cd   : > { %v1551_v27 = vmul.f32 %v2456_v25, %v1549_v26 }
0x22cf   : > { %1553 = vrot.lane.b32.xlu0 %v1551_v27, %s2566_s5 }
0x2341   : > { %v1554_v30 = vpop.permute.xlu0 %1553 }
0x2342   : > { %v1556_v31 = vadd.f32 %v1554_v30, %v1546_v29 }
0x2344   : > { %2457 = vtanh.f32 %v1556_v31 }
0x234e   : > { %v2458_v32 = vpop.eup %2457 }
0x234f   : > { %1559 = vrot.lane.b32.xlu1 %v2458_v32, %s2565_s4 }
0x2353   : > { %1564 = vrot.lane.b32.xlu1 %v1556_v31, %s2567_s6 }
0x23c1   : > { %v1560_v35 = vpop.permute.xlu1 %1559 }
0x23c2   : > { %v1562_v36 = vmul.f32 %v2456_v25, %v1560_v35  ;;  %v2354_v25 = vld [vmem:[%s3067_s1 + $0x8] sm:$0xff]  }
0x23c4   : > { %1569 = vrot.lane.b32.xlu0 %v1562_v36, %s2566_s5 }
0x23c5   : > { %v1565_v37 = vpop.permute.xlu1 %1564 }
0x23c6   : > { %1567 = vst.msk [vmem:[#allocation3] sm:$0x1] %vm178_vm1, %v1565_v37 }
0x23cd   : > { %v2067_v38 = vld [vmem:[#allocation3] ss:$0 sm:$0xff] }
0x23ce   : > { %1650 = vrot.lane.b32.xlu1 %v2067_v38, %s2566_s5 }
0x2436   : > { %v1570_v39 = vpop.permute.xlu0 %1569 }
0x2437   : > { %1573 = vst.msk [vmem:[%s2690_s23 + $0xc] sm:$0x1] %vm178_vm1, %v1570_v39  ;;  %1572 = vst.msk [vmem:[#allocation2] sm:$0x1] %vm178_vm1, %v1570_v39 }
0x243e   : > { %v1575_v40 = vld [vmem:[#allocation2] sm:$0x1] }
0x243f   : > { %v1576_v41 = vpack.c.bf16 %v1575_v40, %v1575_v40 }
0x2440   : > { %v1651_v55 = vpop.permute.xlu1 %1650 }
0x2441   : > { %2242 = vmatmul.mubr.msk.bf16.vlgmr.msra.gmra.mrb[24].mxu1 %vm200_vm2, %v1576_v41 }
0x2442   : > { %2257 = vmatprep.mubr.msk.bf16.mxu1 %vm2564_vm0, %v2563_v1  ;;  %2254 = vmatpush3.bf16.msra.mxu1 %v2353_v24 }
0x2443   : > { %2255 = vmatprep.subr.bf16.mxu1 %v2563_v1  ;;  %v1788_v1 = vld [vmem:[%s2667_s3 + $0xf] sm:$0x1]  ;;  %s2084_s3 = sshll.u32 %s2553_s12, 8  ;;  %s2483_s12 = scalar_lea.vmem %s3013_s8, 256 }
0x2444   : > { %s3011_s20 = scalar_lea.hbm %s3068_s2, %s2084_s3  ;;  %p2484_p12 = scmp.ne.s32.totalorder %s3013_s8, %s2483_s12 }
0x2446   : > { %2256 = vmatpush3.bf16.msra.mxu1 %v2354_v25  ;;  %p2485_p13 = pnand %p2484_p12, %p2626_p4 }
0x2448   : > { %p2486_p0 = pneg %p2485_p13 }
0x2514   : > { %v1630_v43 = vpop.f32.mrb[24].mxu1 }
0x2515   : > { %v1636_v44 = vadd.f32 %v1630_v43, %v1574_v42  ;;  %v2243_v45 = vpop.f32.mrb[25].mxu1 }
0x2516   : > { %v1633_v46 = vpop.f32.mrb[26].mxu1 }
0x2517   : > { %2459 = vtanh.f32 %v1636_v44  ;;  %v2244_v47 = vpop.f32.mrb[27].mxu1  ;;  %v2066_v49 = vmul.f32 -1.442695, %v1636_v44 }
0x2519   : > { %2461 = vpow2.f32 %v2066_v49 }
0x2521   : > { %v2460_v48 = vpop.eup %2459 }
0x2522   : > { %1655 = vrot.lane.b32.xlu0 %v2460_v48, %s2565_s4 }
0x2523   : > { %v2462_v50 = vpop.eup %2461 }
0x2524   : > { %v1640_v51 = vadd.f32 1.0, %v2462_v50 }
0x2526   : > { %2463 = vrcp.f32 %v1640_v51 }
0x2530   : > { %v2464_v52 = vpop.eup %2463 }
0x2531   : > { %v1653_v56 = vmul.f32 %v2464_v52, %v1651_v55 }
0x2594   : > { %v1656_v53 = vpop.permute.xlu0 %1655 }
0x2595   : > { %v1658_v54 = vmul.f32 %v2464_v52, %v1656_v53 }
0x2597   : > { %1660 = vrot.lane.b32.xlu0 %v1658_v54, %s2566_s5 }
0x2609   : > { %v1661_v57 = vpop.permute.xlu0 %1660 }
0x260a   : > { %v1663_v58 = vadd.f32 %v1661_v57, %v1653_v56 }
0x260c   : > { %2465 = vtanh.f32 %v1663_v58 }
0x2616   : > { %v2466_v59 = vpop.eup %2465 }
0x2617   : > { %1666 = vrot.lane.b32.xlu1 %v2466_v59, %s2565_s4 }
0x261b   : > { %1671 = vrot.lane.b32.xlu1 %v1663_v58, %s2567_s6 }
0x2689   : > { %v1667_v62 = vpop.permute.xlu1 %1666 }
0x268a   : > { %v1669_v63 = vmul.f32 %v2464_v52, %v1667_v62 }
0x268c   : > { %1676 = vrot.lane.b32.xlu0 %v1669_v63, %s2566_s5 }
0x268d   : > { %v1672_v0 = vpop.permute.xlu1 %1671 }
0x268e   : > { %1674 = vst.msk [vmem:[#allocation3] sm:$0x1] %vm178_vm1, %v1672_v0 }
0x2695   : > { %v2072_v2 = vld [vmem:[#allocation3] ss:$0 sm:$0xff] }
0x2696   : > { %1757 = vrot.lane.b32.xlu1 %v2072_v2, %s2566_s5 }
0x26fe   : > { %v1677_v3 = vpop.permute.xlu0 %1676 }
0x26ff   : > { %1680 = vst.msk [vmem:[%s2690_s23 + $0xd] sm:$0x1] %vm178_vm1, %v1677_v3  ;;  %1679 = vst.msk [vmem:[#allocation2] sm:$0x1] %vm178_vm1, %v1677_v3 }
0x2706   : > { %v1682_v4 = vld [vmem:[#allocation2] sm:$0x1] }
0x2707   : > { %v1683_v5 = vpack.c.bf16 %v1682_v4, %v1682_v4 }
0x2708   : > { %v1758_v19 = vpop.permute.xlu1 %1757 }
0x2709   : > { %2250 = vmatmul.mubr.msk.bf16.vlgmr.msra.gmra.mrb[28].mxu0 %vm200_vm2, %v1683_v5 }
0x27dc   : > { %v1737_v7 = vpop.f32.mrb[28].mxu0 }
0x27dd   : > { %v1743_v8 = vadd.f32 %v1737_v7, %v1681_v6  ;;  %v2251_v9 = vpop.f32.mrb[29].mxu0 }
0x27de   : > { %v1740_v10 = vpop.f32.mrb[30].mxu0 }
0x27df   : > { %2467 = vtanh.f32 %v1743_v8  ;;  %v2252_v11 = vpop.f32.mrb[31].mxu0  ;;  %v2071_v13 = vmul.f32 -1.442695, %v1743_v8 }
0x27e1   : > { %2469 = vpow2.f32 %v2071_v13 }
0x27e9   : > { %v2468_v12 = vpop.eup %2467 }
0x27ea   : > { %1762 = vrot.lane.b32.xlu0 %v2468_v12, %s2565_s4 }
0x27eb   : > { %v2470_v14 = vpop.eup %2469 }
0x27ec   : > { %v1747_v15 = vadd.f32 1.0, %v2470_v14 }
0x27ee   : > { %2471 = vrcp.f32 %v1747_v15 }
0x27f8   : > { %v2472_v16 = vpop.eup %2471 }
0x27f9   : > { %v1760_v20 = vmul.f32 %v2472_v16, %v1758_v19 }
0x285c   : > { %v1763_v17 = vpop.permute.xlu0 %1762 }
0x285d   : > { %v1765_v18 = vmul.f32 %v2472_v16, %v1763_v17 }
0x285f   : > { %1767 = vrot.lane.b32.xlu0 %v1765_v18, %s2566_s5 }
0x28d1   : > { %v1768_v21 = vpop.permute.xlu0 %1767 }
0x28d2   : > { %v1770_v22 = vadd.f32 %v1768_v21, %v1760_v20 }
0x28d4   : > { %2473 = vtanh.f32 %v1770_v22 }
0x28de   : > { %v2474_v23 = vpop.eup %2473 }
0x28df   : > { %1773 = vrot.lane.b32.xlu1 %v2474_v23, %s2565_s4 }
0x28e3   : > { %1778 = vrot.lane.b32.xlu1 %v1770_v22, %s2567_s6 }
0x2951   : > { %v1774_v26 = vpop.permute.xlu1 %1773 }
0x2952   : > { %v1776_v27 = vmul.f32 %v2472_v16, %v1774_v26 }
0x2954   : > { %1783 = vrot.lane.b32.xlu0 %v1776_v27, %s2566_s5 }
0x2955   : > { %v1779_v28 = vpop.permute.xlu1 %1778 }
0x2956   : > { %1781 = vst.msk [vmem:[#allocation3] sm:$0x1] %vm178_vm1, %v1779_v28 }
0x295d   : > { %v2077_v29 = vld [vmem:[#allocation3] ss:$0 sm:$0xff] }
0x295e   : > { %1864 = vrot.lane.b32.xlu1 %v2077_v29, %s2566_s5 }
0x29c6   : > { %v1784_v30 = vpop.permute.xlu0 %1783 }
0x29c7   : > { %1787 = vst.msk [vmem:[%s2690_s23 + $0xe] sm:$0x1] %vm178_vm1, %v1784_v30  ;;  %1786 = vst.msk [vmem:[#allocation2] sm:$0x1] %vm178_vm1, %v1784_v30 }
0x29ce   : > { %v1789_v31 = vld [vmem:[#allocation2] sm:$0x1] }
0x29cf   : > { %v1790_v32 = vpack.c.bf16 %v1789_v31, %v1789_v31 }
0x29d0   : > { %v1865_v45 = vpop.permute.xlu1 %1864 }
0x29d1   : > { %2258 = vmatmul.mubr.msk.bf16.vlgmr.msra.gmra.mrb[28].mxu1 %vm200_vm2, %v1790_v32 }
0x2aa4   : > { %v1844_v33 = vpop.f32.mrb[28].mxu1 }
0x2aa5   : > { %v1850_v34 = vadd.f32 %v1844_v33, %v1788_v1  ;;  %v2259_v35 = vpop.f32.mrb[29].mxu1 }
0x2aa6   : > { %v1847_v36 = vpop.f32.mrb[30].mxu1 }
0x2aa7   : > { %2475 = vtanh.f32 %v1850_v34  ;;  %v2260_v37 = vpop.f32.mrb[31].mxu1  ;;  %v2076_v39 = vmul.f32 -1.442695, %v1850_v34 }
0x2aa9   : > { %2477 = vpow2.f32 %v2076_v39 }
0x2ab1   : > { %v2476_v38 = vpop.eup %2475 }
0x2ab2   : > { %1869 = vrot.lane.b32.xlu0 %v2476_v38, %s2565_s4 }
0x2ab3   : > { %v2478_v40 = vpop.eup %2477 }
0x2ab4   : > { %v1854_v41 = vadd.f32 1.0, %v2478_v40 }
0x2ab6   : > { %2479 = vrcp.f32 %v1854_v41 }
0x2ac0   : > { %v2480_v42 = vpop.eup %2479 }
0x2ac1   : > { %v1867_v46 = vmul.f32 %v2480_v42, %v1865_v45 }
0x2b24   : > { %v1870_v43 = vpop.permute.xlu0 %1869 }
0x2b25   : > { %v1872_v44 = vmul.f32 %v2480_v42, %v1870_v43 }
0x2b27   : > { %1874 = vrot.lane.b32.xlu0 %v1872_v44, %s2566_s5 }
0x2b99   : > { %v1875_v47 = vpop.permute.xlu0 %1874 }
0x2b9a   : > { %v1877_v48 = vadd.f32 %v1875_v47, %v1867_v46 }
0x2b9c   : > { %2481 = vtanh.f32 %v1877_v48 }
0x2ba6   : > { %v2482_v49 = vpop.eup %2481 }
0x2ba7   : > { %1880 = vrot.lane.b32.xlu1 %v2482_v49, %s2565_s4  ;;  %s3020_s4 = scalar_lea.sflag [#allocation5], %s159_s18 }
0x2bab   : > { %1885 = vrot.lane.b32.xlu1 %v1877_v48, %s2567_s6 }
0x2c19   : > { %v1881_v50 = vpop.permute.xlu1 %1880 }
0x2c1a   : > { %v1883_v51 = vmul.f32 %v2480_v42, %v1881_v50 }
0x2c1c   : > { %1890 = vrot.lane.b32.xlu0 %v1883_v51, %s2566_s5  ;;  %s2568_s5 = smov [#allocation4]  }
0x2c1d   : > { %v1886_v52 = vpop.permute.xlu1 %1885  ;;  %s2487_s6 = sshll.u32 %s2568_s5, 4  ;;  %s2488_s6 = int_to_ptr.vmem [resolvable:$false] %s2487_s6 }
0x2c1e   : > { %1888 = vst.msk [vmem:[#allocation3] sm:$0x1] %vm178_vm1, %v1886_v52  ;;  %s2489_s24 = scalar_lea.vmem %s2488_s6, 512  ;;  %p2490_p1 = scmp.lt.s32.totalorder %s3013_s8, %s2488_s6 }
0x2c1f   : > { %p2491_p2 = scmp.lt.s32.totalorder %s2489_s24, %s2483_s12 }
0x2c21   : > { %p2492_p3 = por %p2491_p2, %p2490_p1 }
0x2c23   : > { %p2493_p5 = pnand %p2492_p3, %p2486_p0 }
0x2c8e   : > { %v1891_v53 = vpop.permute.xlu0 %1890 }
0x2c8f   : > { %1893 = vst.msk [vmem:[#allocation2] sm:$0x1] %vm178_vm1, %v1891_v53  ;;  %1894 = vst.msk [vmem:[%s2690_s23 + $0xf] sm:$0x1] %vm178_vm1, %v1891_v53 }
0x2c90   : > { %2496 = shalt.err (!%p2493_p5)
}
0x2c91   : > { %s2497_s18 = scalar_lea.hbm %s3011_s20, 256  ;;  %s2501_s26 = scalar_lea.hbm %s3068_s2, 512 }
0x2c92   : > { %p2498_p6 = scmp.ne.s32.totalorder %s3011_s20, %s2497_s18  ;;  %p2502_p10 = scmp.lt.u32.totalorder %s3011_s20, %s3068_s2 }
0x2c93   : > { %p2503_p11 = scmp.lt.u32.totalorder %s2501_s26, %s2497_s18  ;;  %p2505_p13 = scmp.lt.u32.totalorder %s2497_s18, %s3011_s20 }
0x2c94   : > { %p2499_p7 = pnand %p2498_p6, %p2626_p4 }
0x2c95   : > { %p2504_p12 = por %p2503_p11, %p2502_p10 }
0x2c96   : > { %p2500_p9 = pneg %p2499_p7 }
0x2c97   : > { %p2506_p0 = por %p2505_p13, %p2504_p12 }
0x2c99   : > { %p2507_p1 = pnand %p2506_p0, %p2500_p9 }
0x2c9b   : > { %2510 = shalt.err (!%p2507_p1)
}
0x2c9c   : > { %s2569_s29 = smov 128   ;;  %s2570_s30 = smov 8  }
0x2c9d   : > { %2261 = dma.vmem_to_hbm [thread:$0]  (%p2626_p4), %s3013_s8, 256, %s3011_s20, %s3020_s4, %s2569_s29, %s2569_s29, %s2570_s30  }
0x2c9e PF: > { %p2267_p2 = scmp.ge.s32.totalorder %s2561_s14, 2  ;;  %s1926_s7 = sand.u32 1, %s2541_s9  }
0x2c9f   : > { %s1927_s3 = scalar_lea.sflag [#allocation5], %s1926_s7 }
0x2ca0   : > { %p2264_p3 = pnand %p2267_p2, %p2633_p8 }
0x2ca2   : > { %2536 = dma.done.wait (!%p2264_p3), %s1927_s3, 256  }
0x2ca3   : > { %2538 = vsyncadd (!%p2264_p3), %s1927_s3, 4294967040  ;;  %s15_s14 = sadd.s32 1, %s2561_s14   ;;  %s3071_s9 = smov %s2545_s10 }
0x2ca4   : > { %p12_p5 = scmp.ge.s32.totalorder %s15_s14, 4   ;;  %s3072_s10 = smov %s2549_s11 }
0x2ca5   : > { %s3073_s11 = smov %s2639_s22  ;;  %s3074_s12 = smov %s2557_s13 }
0x2ca6   : > { %s3075_s13 = smov %s3077_s17  ;;  %14 = sbr.rel (!%p12_p5) target bundleno = 4 (0x4), region = 67 }
0x2cad   :  { %1932 = vsyncpa [#allocation5], 1 }
0x2cae   :  { %1934 = vsyncpa [#allocation5 + $0x1], 1 }

</bundles_post_ra>
